<compile_context>
chip_gen: v5e
topology: v5e:2x2
jax: 0.10.0
libtpu: 0.0.40
codegen_flags: <defaults>
</compile_context>

<pallas_src>
import functools

import numpy as np
import jax
import jax.numpy as jnp
from jax.experimental import pallas as pl
from jax.experimental.pallas import tpu as pltpu


# --------------------------- in-kernel im2col -------------------------------

def _im2col_into(xp_ref, cols_ref, *, cin, kh, kw, ho, wo, stride):
    """Fill cols_ref (K, Ho*Wo) from the current image block (1, Cin, Hp, Wp).

    K is ordered (tap-major, cin-minor).  All indices are static, so this
    lowers to small masked VMEM copies; the kh*kw expansion lives only in VMEM.
    """
    for t in range(kh * kw):
        i, j = divmod(t, kw)
        for h in range(ho):
            r = i + stride * h
            if stride == 1:
                src = xp_ref[0, :, r, j:j + wo]                       # (Cin, Wo)
            else:
                # general stride via strided lane slice (not exercised below)
                src = xp_ref[0, :, r, pl.ds(j, wo, stride=stride)]
            cols_ref[t * cin:(t + 1) * cin, h * wo:(h + 1) * wo] = src


# ------------------------------ kernels -------------------------------------

def _stats_kernel(xp_ref, w_ref, gamma_ref, beta_ref,        # inputs
                  scale_ref, shift_ref,                       # outputs
                  cols_ref, sum_ref, sumsq_ref,               # scratch
                  *, cin, kh, kw, ho, wo, stride, inv_count, eps, compute_dtype):
    b = pl.program_id(0)

    @pl.when(b == 0)
    def _():
        sum_ref[...] = jnp.zeros_like(sum_ref)
        sumsq_ref[...] = jnp.zeros_like(sumsq_ref)

    _im2col_into(xp_ref, cols_ref, cin=cin, kh=kh, kw=kw, ho=ho, wo=wo,
                 stride=stride)
    # conv for the pg *unique* filters only; replicated channels share stats.
    y = jnp.dot(w_ref[...].astype(compute_dtype),
                cols_ref[...].astype(compute_dtype),
                preferred_element_type=jnp.float32)            # (pg, Ho*Wo) f32

    sum_ref[...] += jnp.sum(y, axis=1, keepdims=True)          # (pg, 1)
    sumsq_ref[...] += jnp.sum(y * y, axis=1, keepdims=True)

    @pl.when(b == pl.num_programs(0) - 1)
    def _():
        mean = sum_ref[...] * inv_count                        # (pg, 1)
        var = sumsq_ref[...] * inv_count - mean * mean         # biased batch var
        rstd = jax.lax.rsqrt(var + eps)                        # (pg, 1)
        scale = gamma_ref[...] * rstd                          # (pg, groups)
        shift = beta_ref[...] - mean * scale                   # (pg, groups)
        scale_ref[...] = scale
        shift_ref[...] = shift


def _apply_kernel(xp_ref, w_ref, scale_ref, shift_ref,        # inputs
                  out_ref,                                     # output
                  cols_ref,                                    # scratch
                  *, cin, kh, kw, ho, wo, stride, groups, compute_dtype):
    _im2col_into(xp_ref, cols_ref, cin=cin, kh=kh, kw=kw, ho=ho, wo=wo,
                 stride=stride)
    y = jnp.dot(w_ref[...].astype(compute_dtype),
                cols_ref[...].astype(compute_dtype),
                preferred_element_type=jnp.float32)            # (pg, Ho*Wo) f32
    # Group replication only here: per-group affine of the shared conv rows.
    # Stores are lane-dense (last dim Ho*Wo).
    for g in range(groups):
        out_ref[0, g] = (y * scale_ref[:, g:g + 1]
                         + shift_ref[:, g:g + 1]).astype(out_ref.dtype)


# ------------------------------ wrapper --------------------------------------

def make_bn_params(out_channels, groups, a=0.1):
    # Exactly replicates the bn weight/bias construction in my_conv.__init__.
    pg = out_channels // groups
    w_arr = np.zeros(out_channels, np.float32)
    b_arr = np.zeros(out_channels, np.float32)
    w = 1
    for i in range(groups):
        w_arr[i * pg:(i + 1) * pg] = w
        if i < 2:
            b_arr[i * pg:(i + 1) * pg] = 0
        else:
            b_arr[i * pg:(i + 1) * pg] = (i + 2) // 4 * a * (-1) ** (i // 2)
        w = -w
    return jnp.asarray(w_arr), jnp.asarray(b_arr)


def my_conv_forward(x, conv_w, bn_gamma, bn_beta, *, stride, padding, groups,
                    eps=1e-5, compute_dtype=jnp.bfloat16):
    """Pallas implementation of my_conv.forward (training-mode BatchNorm)."""
    B, Cin, H, W = x.shape
    pg, _, kh, kw = conv_w.shape
    c_out = pg * groups
    K = Cin * kh * kw
    Ho = (H + 2 * padding - kh) // stride + 1
    Wo = (W + 2 * padding - kw) // stride + 1
    Hp, Wp = H + 2 * padding, W + 2 * padding
    M_img = Ho * Wo
    inv_count = 1.0 / (B * M_img)

    # Cheap host-side prep: spatial zero-pad (no im2col blow-up), weight
    # flatten in (tap-major, cin-minor) K order, gamma/beta as (pg, groups).
    xp = jnp.pad(x.astype(jnp.float32),
                 ((0, 0), (0, 0), (padding, padding), (padding, padding)))
    w_flat = jnp.transpose(conv_w, (0, 2, 3, 1)).reshape(pg, K).astype(jnp.float32)
    gamma_t = bn_gamma.astype(jnp.float32).reshape(groups, pg).T   # (pg, groups)
    beta_t = bn_beta.astype(jnp.float32).reshape(groups, pg).T

    xp_spec = pl.BlockSpec((1, Cin, Hp, Wp), lambda b: (b, 0, 0, 0))
    w_spec = pl.BlockSpec((pg, K), lambda b: (0, 0))
    ch_spec = pl.BlockSpec((pg, groups), lambda b: (0, 0))

    # Phase A: batch statistics -> fused per-channel scale/shift.
    scale, shift = pl.pallas_call(
        functools.partial(_stats_kernel, cin=Cin, kh=kh, kw=kw, ho=Ho, wo=Wo,
                          stride=stride, inv_count=inv_count, eps=eps,
                          compute_dtype=compute_dtype),
        grid=(B,),
        in_specs=[xp_spec, w_spec, ch_spec, ch_spec],
        out_specs=(pl.BlockSpec((pg, groups), lambda b: (0, 0)),
                   pl.BlockSpec((pg, groups), lambda b: (0, 0))),
        out_shape=(jax.ShapeDtypeStruct((pg, groups), jnp.float32),
                   jax.ShapeDtypeStruct((pg, groups), jnp.float32)),
        scratch_shapes=[pltpu.VMEM((K, M_img), jnp.float32),
                        pltpu.VMEM((pg, 1), jnp.float32),
                        pltpu.VMEM((pg, 1), jnp.float32)],
        compiler_params=pltpu.CompilerParams(
            dimension_semantics=("arbitrary",)),   # cross-image accumulation
    )(xp, w_flat, gamma_t, beta_t)

    # Phase B: recompute the (cheap) conv per image and apply the affine.
    # Per-image iterations are independent -> "parallel" (v7x megacore).
    out4 = pl.pallas_call(
        functools.partial(_apply_kernel, cin=Cin, kh=kh, kw=kw, ho=Ho, wo=Wo,
                          stride=stride, groups=groups,
                          compute_dtype=compute_dtype),
        grid=(B,),
        in_specs=[xp_spec, w_spec, ch_spec, ch_spec],
        out_specs=pl.BlockSpec((1, groups, pg, M_img), lambda b: (b, 0, 0, 0)),
        out_shape=jax.ShapeDtypeStruct((B, groups, pg, M_img), jnp.float32),
        scratch_shapes=[pltpu.VMEM((K, M_img), jnp.float32)],
        compiler_params=pltpu.CompilerParams(
            dimension_semantics=("parallel",)),
    )(xp, w_flat, scale, shift)

    # (B, groups, pg, Ho*Wo) -> (B, c_out, Ho, Wo): channel order g*pg + c
    # matches the PyTorch view/expand/reshape; this is a free reshape (no
    # transpose, no extra HBM pass).
    return out4.reshape(B, c_out, Ho, Wo)


# ------------------------------ reference ------------------------------------

def reference(x, conv_w, gamma, beta, *, stride, padding, groups, eps=1e-5):
    y = jax.lax.conv_general_dilated(
        x, conv_w, (stride, stride), [(padding, padding)] * 2,
        dimension_numbers=("NCHW", "OIHW", "NCHW"))
    if groups > 1:
        b, c, h, w = y.shape
        y = jnp.broadcast_to(y[:, None], (b, groups, c, h, w)).reshape(b, c * groups, h, w)
    mean = y.mean(axis=(0, 2, 3), keepdims=True)
    var = y.var(axis=(0, 2, 3), keepdims=True)
    return (y - mean) / jnp.sqrt(var + eps) * gamma[None, :, None, None] \
        + beta[None, :, None, None]


if __name__ == "__main__":
    # module config: my_conv(in_channels=4, out_channels=8, kernel_size=3,
    #                        stride=1, padding=1, groups=4)
    B, Cin, H, W = 2, 4, 16, 16
    out_channels, ksize, stride, padding, groups = 8, 3, 1, 1, 4
    pg = out_channels // groups

    key = jax.random.PRNGKey(0)
    kx, kw_ = jax.random.split(key)
    x = jax.random.normal(kx, (B, Cin, H, W), dtype=jnp.float32)
    # deterministic stand-in for norm_initialize_weights (normal init)
    conv_w = 0.1 * jax.random.normal(kw_, (pg, Cin, ksize, ksize), dtype=jnp.float32)
    bn_gamma, bn_beta = make_bn_params(out_channels, groups)

    ref = reference(x, conv_w, bn_gamma, bn_beta,
                    stride=stride, padding=padding, groups=groups)

    # f32 MXU-operand path: tight check against the f32 reference.
    out_f32 = my_conv_forward(x, conv_w, bn_gamma, bn_beta,
                              stride=stride, padding=padding, groups=groups,
                              compute_dtype=jnp.float32)
    out_f32 = jax.block_until_ready(out_f32)
    assert out_f32.shape == (B, out_channels, H, W)
    assert jnp.allclose(out_f32, ref, atol=2e-3, rtol=1e-3)

    # default path: bf16 MXU operands (f32 accumulation), looser tolerance.
    out_bf16 = my_conv_forward(x, conv_w, bn_gamma, bn_beta,
                               stride=stride, padding=padding, groups=groups)
    out_bf16 = jax.block_until_ready(out_bf16)
    assert out_bf16.shape == (B, out_channels, H, W)
    assert jnp.allclose(out_bf16, ref, atol=3e-2, rtol=3e-2)

    print("KERNEL_OK")
</pallas_src>

<mosaic_0001>
module attributes {stable_mosaic.version = 11 : i64} {
  func.func @_stats_kernel(%arg0: i32, %arg1: memref<1x4x18x18xf32, #tpu.memory_space<vmem>>, %arg2: memref<2x36xf32, #tpu.memory_space<vmem>>, %arg3: memref<2x4xf32, #tpu.memory_space<vmem>>, %arg4: memref<2x4xf32, #tpu.memory_space<vmem>>, %arg5: memref<2x4xf32, #tpu.memory_space<vmem>>, %arg6: memref<2x4xf32, #tpu.memory_space<vmem>>, %arg7: memref<36x256xf32, #tpu.memory_space<vmem>>, %arg8: memref<2x1xf32, #tpu.memory_space<vmem>>, %arg9: memref<2x1xf32, #tpu.memory_space<vmem>>) attributes {dimension_semantics = [#tpu.dimension_semantics<arbitrary>], iteration_bounds = array<i64: 2>, scalar_prefetch = 0 : i64, scratch_operands = 3 : i64, tpu.core_type = #tpu.core_type<tc>, window_params = [{transform_indices = @transform_0, window_bounds = array<i64: 1, 4, 18, 18>}, {pipeline_mode = #tpu.pipeline_mode<synchronous>, transform_indices = @transform_1, window_bounds = array<i64: 2, 36>}, {pipeline_mode = #tpu.pipeline_mode<synchronous>, transform_indices = @transform_2, window_bounds = array<i64: 2, 4>}, {pipeline_mode = #tpu.pipeline_mode<synchronous>, transform_indices = @transform_3, window_bounds = array<i64: 2, 4>}, {pipeline_mode = #tpu.pipeline_mode<synchronous>, transform_indices = @transform_4, window_bounds = array<i64: 2, 4>}, {pipeline_mode = #tpu.pipeline_mode<synchronous>, transform_indices = @transform_5, window_bounds = array<i64: 2, 4>}]} {
    %c0_i32 = arith.constant 0 : i32
    %0 = arith.cmpi eq, %arg0, %c0_i32 : i32
    %1 = arith.extui %0 : i1 to i32
    %c0_i32_0 = arith.constant 0 : i32
    %2 = arith.cmpi ne, %1, %c0_i32_0 : i32
    scf.if %2 {
      %cst_845 = arith.constant 0.000000e+00 : f32
      %452 = vector.broadcast %cst_845 : f32 to vector<2x1xf32>
      %c0_846 = arith.constant 0 : index
      %c0_847 = arith.constant 0 : index
      %453 = vector.load %arg8[%c0_846, %c0_847] : memref<2x1xf32, #tpu.memory_space<vmem>>, vector<2x1xf32>
      tpu.vector_store %arg8[%c0_846, %c0_847], %452 {strides = array<i32>} : memref<2x1xf32, #tpu.memory_space<vmem>>, vector<2x1xf32>,
      %cst_848 = arith.constant 0.000000e+00 : f32
      %454 = vector.broadcast %cst_848 : f32 to vector<2x1xf32>
      %c0_849 = arith.constant 0 : index
      %c0_850 = arith.constant 0 : index
      %455 = vector.load %arg9[%c0_849, %c0_850] : memref<2x1xf32, #tpu.memory_space<vmem>>, vector<2x1xf32>
      tpu.vector_store %arg9[%c0_849, %c0_850], %454 {strides = array<i32>} : memref<2x1xf32, #tpu.memory_space<vmem>>, vector<2x1xf32>,
    } else {
    }
    %c0 = arith.constant 0 : index
    %c0_1 = arith.constant 0 : index
    %c0_2 = arith.constant 0 : index
    %c0_3 = arith.constant 0 : index
    %3 = vector.load %arg1[%c0, %c0_1, %c0_2, %c0_3] : memref<1x4x18x18xf32, #tpu.memory_space<vmem>>, vector<1x4x1x16xf32>
    %4 = vector.shape_cast %3 : vector<1x4x1x16xf32> to vector<4x16xf32>
    %c0_4 = arith.constant 0 : index
    %c0_5 = arith.constant 0 : index
    %5 = vector.load %arg7[%c0_4, %c0_5] : memref<36x256xf32, #tpu.memory_space<vmem>>, vector<4x16xf32>
    tpu.vector_store %arg7[%c0_4, %c0_5], %4 {strides = array<i32>} : memref<36x256xf32, #tpu.memory_space<vmem>>, vector<4x16xf32>,
    %c0_6 = arith.constant 0 : index
    %c0_7 = arith.constant 0 : index
    %c1 = arith.constant 1 : index
    %c0_8 = arith.constant 0 : index
    %6 = vector.load %arg1[%c0_6, %c0_7, %c1, %c0_8] : memref<1x4x18x18xf32, #tpu.memory_space<vmem>>, vector<1x4x1x16xf32>
    %7 = vector.shape_cast %6 : vector<1x4x1x16xf32> to vector<4x16xf32>
    %c0_9 = arith.constant 0 : index
    %c16 = arith.constant 16 : index
    %8 = vector.load %arg7[%c0_9, %c16] : memref<36x256xf32, #tpu.memory_space<vmem>>, vector<4x16xf32>
    tpu.vector_store %arg7[%c0_9, %c16], %7 {strides = array<i32>} : memref<36x256xf32, #tpu.memory_space<vmem>>, vector<4x16xf32>,
    %c0_10 = arith.constant 0 : index
    %c0_11 = arith.constant 0 : index
    %c2 = arith.constant 2 : index
    %c0_12 = arith.constant 0 : index
    %9 = vector.load %arg1[%c0_10, %c0_11, %c2, %c0_12] : memref<1x4x18x18xf32, #tpu.memory_space<vmem>>, vector<1x4x1x16xf32>
    %10 = vector.shape_cast %9 : vector<1x4x1x16xf32> to vector<4x16xf32>
    %c0_13 = arith.constant 0 : index
    %c32 = arith.constant 32 : index
    %11 = vector.load %arg7[%c0_13, %c32] : memref<36x256xf32, #tpu.memory_space<vmem>>, vector<4x16xf32>
    tpu.vector_store %arg7[%c0_13, %c32], %10 {strides = array<i32>} : memref<36x256xf32, #tpu.memory_space<vmem>>, vector<4x16xf32>,
    %c0_14 = arith.constant 0 : index
    %c0_15 = arith.constant 0 : index
    %c3 = arith.constant 3 : index
    %c0_16 = arith.constant 0 : index
    %12 = vector.load %arg1[%c0_14, %c0_15, %c3, %c0_16] : memref<1x4x18x18xf32, #tpu.memory_space<vmem>>, vector<1x4x1x16xf32>
    %13 = vector.shape_cast %12 : vector<1x4x1x16xf32> to vector<4x16xf32>
    %c0_17 = arith.constant 0 : index
    %c48 = arith.constant 48 : index
    %14 = vector.load %arg7[%c0_17, %c48] : memref<36x256xf32, #tpu.memory_space<vmem>>, vector<4x16xf32>
    tpu.vector_store %arg7[%c0_17, %c48], %13 {strides = array<i32>} : memref<36x256xf32, #tpu.memory_space<vmem>>, vector<4x16xf32>,
    %c0_18 = arith.constant 0 : index
    %c0_19 = arith.constant 0 : index
    %c4 = arith.constant 4 : index
    %c0_20 = arith.constant 0 : index
    %15 = vector.load %arg1[%c0_18, %c0_19, %c4, %c0_20] : memref<1x4x18x18xf32, #tpu.memory_space<vmem>>, vector<1x4x1x16xf32>
    %16 = vector.shape_cast %15 : vector<1x4x1x16xf32> to vector<4x16xf32>
    %c0_21 = arith.constant 0 : index
    %c64 = arith.constant 64 : index
    %17 = vector.load %arg7[%c0_21, %c64] : memref<36x256xf32, #tpu.memory_space<vmem>>, vector<4x16xf32>
    tpu.vector_store %arg7[%c0_21, %c64], %16 {strides = array<i32>} : memref<36x256xf32, #tpu.memory_space<vmem>>, vector<4x16xf32>,
    %c0_22 = arith.constant 0 : index
    %c0_23 = arith.constant 0 : index
    %c5 = arith.constant 5 : index
    %c0_24 = arith.constant 0 : index
    %18 = vector.load %arg1[%c0_22, %c0_23, %c5, %c0_24] : memref<1x4x18x18xf32, #tpu.memory_space<vmem>>, vector<1x4x1x16xf32>
    %19 = vector.shape_cast %18 : vector<1x4x1x16xf32> to vector<4x16xf32>
    %c0_25 = arith.constant 0 : index
    %c80 = arith.constant 80 : index
    %20 = vector.load %arg7[%c0_25, %c80] : memref<36x256xf32, #tpu.memory_space<vmem>>, vector<4x16xf32>
    tpu.vector_store %arg7[%c0_25, %c80], %19 {strides = array<i32>} : memref<36x256xf32, #tpu.memory_space<vmem>>, vector<4x16xf32>,
    %c0_26 = arith.constant 0 : index
    %c0_27 = arith.constant 0 : index
    %c6 = arith.constant 6 : index
    %c0_28 = arith.constant 0 : index
    %21 = vector.load %arg1[%c0_26, %c0_27, %c6, %c0_28] : memref<1x4x18x18xf32, #tpu.memory_space<vmem>>, vector<1x4x1x16xf32>
    %22 = vector.shape_cast %21 : vector<1x4x1x16xf32> to vector<4x16xf32>
    %c0_29 = arith.constant 0 : index
    %c96 = arith.constant 96 : index
    %23 = vector.load %arg7[%c0_29, %c96] : memref<36x256xf32, #tpu.memory_space<vmem>>, vector<4x16xf32>
    tpu.vector_store %arg7[%c0_29, %c96], %22 {strides = array<i32>} : memref<36x256xf32, #tpu.memory_space<vmem>>, vector<4x16xf32>,
    %c0_30 = arith.constant 0 : index
    %c0_31 = arith.constant 0 : index
    %c7 = arith.constant 7 : index
    %c0_32 = arith.constant 0 : index
    %24 = vector.load %arg1[%c0_30, %c0_31, %c7, %c0_32] : memref<1x4x18x18xf32, #tpu.memory_space<vmem>>, vector<1x4x1x16xf32>
    %25 = vector.shape_cast %24 : vector<1x4x1x16xf32> to vector<4x16xf32>
    %c0_33 = arith.constant 0 : index
    %c112 = arith.constant 112 : index
    %26 = vector.load %arg7[%c0_33, %c112] : memref<36x256xf32, #tpu.memory_space<vmem>>, vector<4x16xf32>
    tpu.vector_store %arg7[%c0_33, %c112], %25 {strides = array<i32>} : memref<36x256xf32, #tpu.memory_space<vmem>>, vector<4x16xf32>,
    %c0_34 = arith.constant 0 : index
    %c0_35 = arith.constant 0 : index
    %c8 = arith.constant 8 : index
    %c0_36 = arith.constant 0 : index
    %27 = vector.load %arg1[%c0_34, %c0_35, %c8, %c0_36] : memref<1x4x18x18xf32, #tpu.memory_space<vmem>>, vector<1x4x1x16xf32>
    %28 = vector.shape_cast %27 : vector<1x4x1x16xf32> to vector<4x16xf32>
    %c0_37 = arith.constant 0 : index
    %c128 = arith.constant 128 : index
    %29 = vector.load %arg7[%c0_37, %c128] : memref<36x256xf32, #tpu.memory_space<vmem>>, vector<4x16xf32>
    tpu.vector_store %arg7[%c0_37, %c128], %28 {strides = array<i32>} : memref<36x256xf32, #tpu.memory_space<vmem>>, vector<4x16xf32>,
    %c0_38 = arith.constant 0 : index
    %c0_39 = arith.constant 0 : index
    %c9 = arith.constant 9 : index
    %c0_40 = arith.constant 0 : index
    %30 = vector.load %arg1[%c0_38, %c0_39, %c9, %c0_40] : memref<1x4x18x18xf32, #tpu.memory_space<vmem>>, vector<1x4x1x16xf32>
    %31 = vector.shape_cast %30 : vector<1x4x1x16xf32> to vector<4x16xf32>
    %c0_41 = arith.constant 0 : index
    %c144 = arith.constant 144 : index
    %32 = vector.load %arg7[%c0_41, %c144] : memref<36x256xf32, #tpu.memory_space<vmem>>, vector<4x16xf32>
    tpu.vector_store %arg7[%c0_41, %c144], %31 {strides = array<i32>} : memref<36x256xf32, #tpu.memory_space<vmem>>, vector<4x16xf32>,
    %c0_42 = arith.constant 0 : index
    %c0_43 = arith.constant 0 : index
    %c10 = arith.constant 10 : index
    %c0_44 = arith.constant 0 : index
    %33 = vector.load %arg1[%c0_42, %c0_43, %c10, %c0_44] : memref<1x4x18x18xf32, #tpu.memory_space<vmem>>, vector<1x4x1x16xf32>
    %34 = vector.shape_cast %33 : vector<1x4x1x16xf32> to vector<4x16xf32>
    %c0_45 = arith.constant 0 : index
    %c160 = arith.constant 160 : index
    %35 = vector.load %arg7[%c0_45, %c160] : memref<36x256xf32, #tpu.memory_space<vmem>>, vector<4x16xf32>
    tpu.vector_store %arg7[%c0_45, %c160], %34 {strides = array<i32>} : memref<36x256xf32, #tpu.memory_space<vmem>>, vector<4x16xf32>,
    %c0_46 = arith.constant 0 : index
    %c0_47 = arith.constant 0 : index
    %c11 = arith.constant 11 : index
    %c0_48 = arith.constant 0 : index
    %36 = vector.load %arg1[%c0_46, %c0_47, %c11, %c0_48] : memref<1x4x18x18xf32, #tpu.memory_space<vmem>>, vector<1x4x1x16xf32>
    %37 = vector.shape_cast %36 : vector<1x4x1x16xf32> to vector<4x16xf32>
    %c0_49 = arith.constant 0 : index
    %c176 = arith.constant 176 : index
    %38 = vector.load %arg7[%c0_49, %c176] : memref<36x256xf32, #tpu.memory_space<vmem>>, vector<4x16xf32>
    tpu.vector_store %arg7[%c0_49, %c176], %37 {strides = array<i32>} : memref<36x256xf32, #tpu.memory_space<vmem>>, vector<4x16xf32>,
    %c0_50 = arith.constant 0 : index
    %c0_51 = arith.constant 0 : index
    %c12 = arith.constant 12 : index
    %c0_52 = arith.constant 0 : index
    %39 = vector.load %arg1[%c0_50, %c0_51, %c12, %c0_52] : memref<1x4x18x18xf32, #tpu.memory_space<vmem>>, vector<1x4x1x16xf32>
    %40 = vector.shape_cast %39 : vector<1x4x1x16xf32> to vector<4x16xf32>
    %c0_53 = arith.constant 0 : index
    %c192 = arith.constant 192 : index
    %41 = vector.load %arg7[%c0_53, %c192] : memref<36x256xf32, #tpu.memory_space<vmem>>, vector<4x16xf32>
    tpu.vector_store %arg7[%c0_53, %c192], %40 {strides = array<i32>} : memref<36x256xf32, #tpu.memory_space<vmem>>, vector<4x16xf32>,
    %c0_54 = arith.constant 0 : index
    %c0_55 = arith.constant 0 : index
    %c13 = arith.constant 13 : index
    %c0_56 = arith.constant 0 : index
    %42 = vector.load %arg1[%c0_54, %c0_55, %c13, %c0_56] : memref<1x4x18x18xf32, #tpu.memory_space<vmem>>, vector<1x4x1x16xf32>
    %43 = vector.shape_cast %42 : vector<1x4x1x16xf32> to vector<4x16xf32>
    %c0_57 = arith.constant 0 : index
    %c208 = arith.constant 208 : index
    %44 = vector.load %arg7[%c0_57, %c208] : memref<36x256xf32, #tpu.memory_space<vmem>>, vector<4x16xf32>
    tpu.vector_store %arg7[%c0_57, %c208], %43 {strides = array<i32>} : memref<36x256xf32, #tpu.memory_space<vmem>>, vector<4x16xf32>,
    %c0_58 = arith.constant 0 : index
    %c0_59 = arith.constant 0 : index
    %c14 = arith.constant 14 : index
    %c0_60 = arith.constant 0 : index
    %45 = vector.load %arg1[%c0_58, %c0_59, %c14, %c0_60] : memref<1x4x18x18xf32, #tpu.memory_space<vmem>>, vector<1x4x1x16xf32>
    %46 = vector.shape_cast %45 : vector<1x4x1x16xf32> to vector<4x16xf32>
    %c0_61 = arith.constant 0 : index
    %c224 = arith.constant 224 : index
    %47 = vector.load %arg7[%c0_61, %c224] : memref<36x256xf32, #tpu.memory_space<vmem>>, vector<4x16xf32>
    tpu.vector_store %arg7[%c0_61, %c224], %46 {strides = array<i32>} : memref<36x256xf32, #tpu.memory_space<vmem>>, vector<4x16xf32>,
    %c0_62 = arith.constant 0 : index
    %c0_63 = arith.constant 0 : index
    %c15 = arith.constant 15 : index
    %c0_64 = arith.constant 0 : index
    %48 = vector.load %arg1[%c0_62, %c0_63, %c15, %c0_64] : memref<1x4x18x18xf32, #tpu.memory_space<vmem>>, vector<1x4x1x16xf32>
    %49 = vector.shape_cast %48 : vector<1x4x1x16xf32> to vector<4x16xf32>
    %c0_65 = arith.constant 0 : index
    %c240 = arith.constant 240 : index
    %50 = vector.load %arg7[%c0_65, %c240] : memref<36x256xf32, #tpu.memory_space<vmem>>, vector<4x16xf32>
    tpu.vector_store %arg7[%c0_65, %c240], %49 {strides = array<i32>} : memref<36x256xf32, #tpu.memory_space<vmem>>, vector<4x16xf32>,
    %c0_66 = arith.constant 0 : index
    %c0_67 = arith.constant 0 : index
    %c0_68 = arith.constant 0 : index
    %c1_69 = arith.constant 1 : index
    %51 = vector.load %arg1[%c0_66, %c0_67, %c0_68, %c1_69] : memref<1x4x18x18xf32, #tpu.memory_space<vmem>>, vector<1x4x1x16xf32>
    %52 = vector.shape_cast %51 : vector<1x4x1x16xf32> to vector<4x16xf32>
    %c4_70 = arith.constant 4 : index
    %c0_71 = arith.constant 0 : index
    %53 = vector.load %arg7[%c4_70, %c0_71] : memref<36x256xf32, #tpu.memory_space<vmem>>, vector<4x16xf32>
    tpu.vector_store %arg7[%c4_70, %c0_71], %52 {strides = array<i32>} : memref<36x256xf32, #tpu.memory_space<vmem>>, vector<4x16xf32>,
    %c0_72 = arith.constant 0 : index
    %c0_73 = arith.constant 0 : index
    %c1_74 = arith.constant 1 : index
    %c1_75 = arith.constant 1 : index
    %54 = vector.load %arg1[%c0_72, %c0_73, %c1_74, %c1_75] : memref<1x4x18x18xf32, #tpu.memory_space<vmem>>, vector<1x4x1x16xf32>
    %55 = vector.shape_cast %54 : vector<1x4x1x16xf32> to vector<4x16xf32>
    %c4_76 = arith.constant 4 : index
    %c16_77 = arith.constant 16 : index
    %56 = vector.load %arg7[%c4_76, %c16_77] : memref<36x256xf32, #tpu.memory_space<vmem>>, vector<4x16xf32>
    tpu.vector_store %arg7[%c4_76, %c16_77], %55 {strides = array<i32>} : memref<36x256xf32, #tpu.memory_space<vmem>>, vector<4x16xf32>,
    %c0_78 = arith.constant 0 : index
    %c0_79 = arith.constant 0 : index
    %c2_80 = arith.constant 2 : index
    %c1_81 = arith.constant 1 : index
    %57 = vector.load %arg1[%c0_78, %c0_79, %c2_80, %c1_81] : memref<1x4x18x18xf32, #tpu.memory_space<vmem>>, vector<1x4x1x16xf32>
    %58 = vector.shape_cast %57 : vector<1x4x1x16xf32> to vector<4x16xf32>
    %c4_82 = arith.constant 4 : index
    %c32_83 = arith.constant 32 : index
    %59 = vector.load %arg7[%c4_82, %c32_83] : memref<36x256xf32, #tpu.memory_space<vmem>>, vector<4x16xf32>
    tpu.vector_store %arg7[%c4_82, %c32_83], %58 {strides = array<i32>} : memref<36x256xf32, #tpu.memory_space<vmem>>, vector<4x16xf32>,
    %c0_84 = arith.constant 0 : index
    %c0_85 = arith.constant 0 : index
    %c3_86 = arith.constant 3 : index
    %c1_87 = arith.constant 1 : index
    %60 = vector.load %arg1[%c0_84, %c0_85, %c3_86, %c1_87] : memref<1x4x18x18xf32, #tpu.memory_space<vmem>>, vector<1x4x1x16xf32>
    %61 = vector.shape_cast %60 : vector<1x4x1x16xf32> to vector<4x16xf32>
    %c4_88 = arith.constant 4 : index
    %c48_89 = arith.constant 48 : index
    %62 = vector.load %arg7[%c4_88, %c48_89] : memref<36x256xf32, #tpu.memory_space<vmem>>, vector<4x16xf32>
    tpu.vector_store %arg7[%c4_88, %c48_89], %61 {strides = array<i32>} : memref<36x256xf32, #tpu.memory_space<vmem>>, vector<4x16xf32>,
    %c0_90 = arith.constant 0 : index
    %c0_91 = arith.constant 0 : index
    %c4_92 = arith.constant 4 : index
    %c1_93 = arith.constant 1 : index
    %63 = vector.load %arg1[%c0_90, %c0_91, %c4_92, %c1_93] : memref<1x4x18x18xf32, #tpu.memory_space<vmem>>, vector<1x4x1x16xf32>
    %64 = vector.shape_cast %63 : vector<1x4x1x16xf32> to vector<4x16xf32>
    %c4_94 = arith.constant 4 : index
    %c64_95 = arith.constant 64 : index
    %65 = vector.load %arg7[%c4_94, %c64_95] : memref<36x256xf32, #tpu.memory_space<vmem>>, vector<4x16xf32>
    tpu.vector_store %arg7[%c4_94, %c64_95], %64 {strides = array<i32>} : memref<36x256xf32, #tpu.memory_space<vmem>>, vector<4x16xf32>,
    %c0_96 = arith.constant 0 : index
    %c0_97 = arith.constant 0 : index
    %c5_98 = arith.constant 5 : index
    %c1_99 = arith.constant 1 : index
    %66 = vector.load %arg1[%c0_96, %c0_97, %c5_98, %c1_99] : memref<1x4x18x18xf32, #tpu.memory_space<vmem>>, vector<1x4x1x16xf32>
    %67 = vector.shape_cast %66 : vector<1x4x1x16xf32> to vector<4x16xf32>
    %c4_100 = arith.constant 4 : index
    %c80_101 = arith.constant 80 : index
    %68 = vector.load %arg7[%c4_100, %c80_101] : memref<36x256xf32, #tpu.memory_space<vmem>>, vector<4x16xf32>
    tpu.vector_store %arg7[%c4_100, %c80_101], %67 {strides = array<i32>} : memref<36x256xf32, #tpu.memory_space<vmem>>, vector<4x16xf32>,
    %c0_102 = arith.constant 0 : index
    %c0_103 = arith.constant 0 : index
    %c6_104 = arith.constant 6 : index
    %c1_105 = arith.constant 1 : index
    %69 = vector.load %arg1[%c0_102, %c0_103, %c6_104, %c1_105] : memref<1x4x18x18xf32, #tpu.memory_space<vmem>>, vector<1x4x1x16xf32>
    %70 = vector.shape_cast %69 : vector<1x4x1x16xf32> to vector<4x16xf32>
    %c4_106 = arith.constant 4 : index
    %c96_107 = arith.constant 96 : index
    %71 = vector.load %arg7[%c4_106, %c96_107] : memref<36x256xf32, #tpu.memory_space<vmem>>, vector<4x16xf32>
    tpu.vector_store %arg7[%c4_106, %c96_107], %70 {strides = array<i32>} : memref<36x256xf32, #tpu.memory_space<vmem>>, vector<4x16xf32>,
    %c0_108 = arith.constant 0 : index
    %c0_109 = arith.constant 0 : index
    %c7_110 = arith.constant 7 : index
    %c1_111 = arith.constant 1 : index
    %72 = vector.load %arg1[%c0_108, %c0_109, %c7_110, %c1_111] : memref<1x4x18x18xf32, #tpu.memory_space<vmem>>, vector<1x4x1x16xf32>
    %73 = vector.shape_cast %72 : vector<1x4x1x16xf32> to vector<4x16xf32>
    %c4_112 = arith.constant 4 : index
    %c112_113 = arith.constant 112 : index
    %74 = vector.load %arg7[%c4_112, %c112_113] : memref<36x256xf32, #tpu.memory_space<vmem>>, vector<4x16xf32>
    tpu.vector_store %arg7[%c4_112, %c112_113], %73 {strides = array<i32>} : memref<36x256xf32, #tpu.memory_space<vmem>>, vector<4x16xf32>,
    %c0_114 = arith.constant 0 : index
    %c0_115 = arith.constant 0 : index
    %c8_116 = arith.constant 8 : index
    %c1_117 = arith.constant 1 : index
    %75 = vector.load %arg1[%c0_114, %c0_115, %c8_116, %c1_117] : memref<1x4x18x18xf32, #tpu.memory_space<vmem>>, vector<1x4x1x16xf32>
    %76 = vector.shape_cast %75 : vector<1x4x1x16xf32> to vector<4x16xf32>
    %c4_118 = arith.constant 4 : index
    %c128_119 = arith.constant 128 : index
    %77 = vector.load %arg7[%c4_118, %c128_119] : memref<36x256xf32, #tpu.memory_space<vmem>>, vector<4x16xf32>
    tpu.vector_store %arg7[%c4_118, %c128_119], %76 {strides = array<i32>} : memref<36x256xf32, #tpu.memory_space<vmem>>, vector<4x16xf32>,
    %c0_120 = arith.constant 0 : index
    %c0_121 = arith.constant 0 : index
    %c9_122 = arith.constant 9 : index
    %c1_123 = arith.constant 1 : index
    %78 = vector.load %arg1[%c0_120, %c0_121, %c9_122, %c1_123] : memref<1x4x18x18xf32, #tpu.memory_space<vmem>>, vector<1x4x1x16xf32>
    %79 = vector.shape_cast %78 : vector<1x4x1x16xf32> to vector<4x16xf32>
    %c4_124 = arith.constant 4 : index
    %c144_125 = arith.constant 144 : index
    %80 = vector.load %arg7[%c4_124, %c144_125] : memref<36x256xf32, #tpu.memory_space<vmem>>, vector<4x16xf32>
    tpu.vector_store %arg7[%c4_124, %c144_125], %79 {strides = array<i32>} : memref<36x256xf32, #tpu.memory_space<vmem>>, vector<4x16xf32>,
    %c0_126 = arith.constant 0 : index
    %c0_127 = arith.constant 0 : index
    %c10_128 = arith.constant 10 : index
    %c1_129 = arith.constant 1 : index
    %81 = vector.load %arg1[%c0_126, %c0_127, %c10_128, %c1_129] : memref<1x4x18x18xf32, #tpu.memory_space<vmem>>, vector<1x4x1x16xf32>
    %82 = vector.shape_cast %81 : vector<1x4x1x16xf32> to vector<4x16xf32>
    %c4_130 = arith.constant 4 : index
    %c160_131 = arith.constant 160 : index
    %83 = vector.load %arg7[%c4_130, %c160_131] : memref<36x256xf32, #tpu.memory_space<vmem>>, vector<4x16xf32>
    tpu.vector_store %arg7[%c4_130, %c160_131], %82 {strides = array<i32>} : memref<36x256xf32, #tpu.memory_space<vmem>>, vector<4x16xf32>,
    %c0_132 = arith.constant 0 : index
    %c0_133 = arith.constant 0 : index
    %c11_134 = arith.constant 11 : index
    %c1_135 = arith.constant 1 : index
    %84 = vector.load %arg1[%c0_132, %c0_133, %c11_134, %c1_135] : memref<1x4x18x18xf32, #tpu.memory_space<vmem>>, vector<1x4x1x16xf32>
    %85 = vector.shape_cast %84 : vector<1x4x1x16xf32> to vector<4x16xf32>
    %c4_136 = arith.constant 4 : index
    %c176_137 = arith.constant 176 : index
    %86 = vector.load %arg7[%c4_136, %c176_137] : memref<36x256xf32, #tpu.memory_space<vmem>>, vector<4x16xf32>
    tpu.vector_store %arg7[%c4_136, %c176_137], %85 {strides = array<i32>} : memref<36x256xf32, #tpu.memory_space<vmem>>, vector<4x16xf32>,
    %c0_138 = arith.constant 0 : index
    %c0_139 = arith.constant 0 : index
    %c12_140 = arith.constant 12 : index
    %c1_141 = arith.constant 1 : index
    %87 = vector.load %arg1[%c0_138, %c0_139, %c12_140, %c1_141] : memref<1x4x18x18xf32, #tpu.memory_space<vmem>>, vector<1x4x1x16xf32>
    %88 = vector.shape_cast %87 : vector<1x4x1x16xf32> to vector<4x16xf32>
    %c4_142 = arith.constant 4 : index
    %c192_143 = arith.constant 192 : index
    %89 = vector.load %arg7[%c4_142, %c192_143] : memref<36x256xf32, #tpu.memory_space<vmem>>, vector<4x16xf32>
    tpu.vector_store %arg7[%c4_142, %c192_143], %88 {strides = array<i32>} : memref<36x256xf32, #tpu.memory_space<vmem>>, vector<4x16xf32>,
    %c0_144 = arith.constant 0 : index
    %c0_145 = arith.constant 0 : index
    %c13_146 = arith.constant 13 : index
    %c1_147 = arith.constant 1 : index
    %90 = vector.load %arg1[%c0_144, %c0_145, %c13_146, %c1_147] : memref<1x4x18x18xf32, #tpu.memory_space<vmem>>, vector<1x4x1x16xf32>
    %91 = vector.shape_cast %90 : vector<1x4x1x16xf32> to vector<4x16xf32>
    %c4_148 = arith.constant 4 : index
    %c208_149 = arith.constant 208 : index
    %92 = vector.load %arg7[%c4_148, %c208_149] : memref<36x256xf32, #tpu.memory_space<vmem>>, vector<4x16xf32>
    tpu.vector_store %arg7[%c4_148, %c208_149], %91 {strides = array<i32>} : memref<36x256xf32, #tpu.memory_space<vmem>>, vector<4x16xf32>,
    %c0_150 = arith.constant 0 : index
    %c0_151 = arith.constant 0 : index
    %c14_152 = arith.constant 14 : index
    %c1_153 = arith.constant 1 : index
    %93 = vector.load %arg1[%c0_150, %c0_151, %c14_152, %c1_153] : memref<1x4x18x18xf32, #tpu.memory_space<vmem>>, vector<1x4x1x16xf32>
    %94 = vector.shape_cast %93 : vector<1x4x1x16xf32> to vector<4x16xf32>
    %c4_154 = arith.constant 4 : index
    %c224_155 = arith.constant 224 : index
    %95 = vector.load %arg7[%c4_154, %c224_155] : memref<36x256xf32, #tpu.memory_space<vmem>>, vector<4x16xf32>
    tpu.vector_store %arg7[%c4_154, %c224_155], %94 {strides = array<i32>} : memref<36x256xf32, #tpu.memory_space<vmem>>, vector<4x16xf32>,
    %c0_156 = arith.constant 0 : index
    %c0_157 = arith.constant 0 : index
    %c15_158 = arith.constant 15 : index
    %c1_159 = arith.constant 1 : index
    %96 = vector.load %arg1[%c0_156, %c0_157, %c15_158, %c1_159] : memref<1x4x18x18xf32, #tpu.memory_space<vmem>>, vector<1x4x1x16xf32>
    %97 = vector.shape_cast %96 : vector<1x4x1x16xf32> to vector<4x16xf32>
    %c4_160 = arith.constant 4 : index
    %c240_161 = arith.constant 240 : index
    %98 = vector.load %arg7[%c4_160, %c240_161] : memref<36x256xf32, #tpu.memory_space<vmem>>, vector<4x16xf32>
    tpu.vector_store %arg7[%c4_160, %c240_161], %97 {strides = array<i32>} : memref<36x256xf32, #tpu.memory_space<vmem>>, vector<4x16xf32>,
    %c0_162 = arith.constant 0 : index
    %c0_163 = arith.constant 0 : index
    %c0_164 = arith.constant 0 : index
    %c2_165 = arith.constant 2 : index
    %99 = vector.load %arg1[%c0_162, %c0_163, %c0_164, %c2_165] : memref<1x4x18x18xf32, #tpu.memory_space<vmem>>, vector<1x4x1x16xf32>
    %100 = vector.shape_cast %99 : vector<1x4x1x16xf32> to vector<4x16xf32>
    %c8_166 = arith.constant 8 : index
    %c0_167 = arith.constant 0 : index
    %101 = vector.load %arg7[%c8_166, %c0_167] : memref<36x256xf32, #tpu.memory_space<vmem>>, vector<4x16xf32>
    tpu.vector_store %arg7[%c8_166, %c0_167], %100 {strides = array<i32>} : memref<36x256xf32, #tpu.memory_space<vmem>>, vector<4x16xf32>,
    %c0_168 = arith.constant 0 : index
    %c0_169 = arith.constant 0 : index
    %c1_170 = arith.constant 1 : index
    %c2_171 = arith.constant 2 : index
    %102 = vector.load %arg1[%c0_168, %c0_169, %c1_170, %c2_171] : memref<1x4x18x18xf32, #tpu.memory_space<vmem>>, vector<1x4x1x16xf32>
    %103 = vector.shape_cast %102 : vector<1x4x1x16xf32> to vector<4x16xf32>
    %c8_172 = arith.constant 8 : index
    %c16_173 = arith.constant 16 : index
    %104 = vector.load %arg7[%c8_172, %c16_173] : memref<36x256xf32, #tpu.memory_space<vmem>>, vector<4x16xf32>
    tpu.vector_store %arg7[%c8_172, %c16_173], %103 {strides = array<i32>} : memref<36x256xf32, #tpu.memory_space<vmem>>, vector<4x16xf32>,
    %c0_174 = arith.constant 0 : index
    %c0_175 = arith.constant 0 : index
    %c2_176 = arith.constant 2 : index
    %c2_177 = arith.constant 2 : index
    %105 = vector.load %arg1[%c0_174, %c0_175, %c2_176, %c2_177] : memref<1x4x18x18xf32, #tpu.memory_space<vmem>>, vector<1x4x1x16xf32>
    %106 = vector.shape_cast %105 : vector<1x4x1x16xf32> to vector<4x16xf32>
    %c8_178 = arith.constant 8 : index
    %c32_179 = arith.constant 32 : index
    %107 = vector.load %arg7[%c8_178, %c32_179] : memref<36x256xf32, #tpu.memory_space<vmem>>, vector<4x16xf32>
    tpu.vector_store %arg7[%c8_178, %c32_179], %106 {strides = array<i32>} : memref<36x256xf32, #tpu.memory_space<vmem>>, vector<4x16xf32>,
    %c0_180 = arith.constant 0 : index
    %c0_181 = arith.constant 0 : index
    %c3_182 = arith.constant 3 : index
    %c2_183 = arith.constant 2 : index
    %108 = vector.load %arg1[%c0_180, %c0_181, %c3_182, %c2_183] : memref<1x4x18x18xf32, #tpu.memory_space<vmem>>, vector<1x4x1x16xf32>
    %109 = vector.shape_cast %108 : vector<1x4x1x16xf32> to vector<4x16xf32>
    %c8_184 = arith.constant 8 : index
    %c48_185 = arith.constant 48 : index
    %110 = vector.load %arg7[%c8_184, %c48_185] : memref<36x256xf32, #tpu.memory_space<vmem>>, vector<4x16xf32>
    tpu.vector_store %arg7[%c8_184, %c48_185], %109 {strides = array<i32>} : memref<36x256xf32, #tpu.memory_space<vmem>>, vector<4x16xf32>,
    %c0_186 = arith.constant 0 : index
    %c0_187 = arith.constant 0 : index
    %c4_188 = arith.constant 4 : index
    %c2_189 = arith.constant 2 : index
    %111 = vector.load %arg1[%c0_186, %c0_187, %c4_188, %c2_189] : memref<1x4x18x18xf32, #tpu.memory_space<vmem>>, vector<1x4x1x16xf32>
    %112 = vector.shape_cast %111 : vector<1x4x1x16xf32> to vector<4x16xf32>
    %c8_190 = arith.constant 8 : index
    %c64_191 = arith.constant 64 : index
    %113 = vector.load %arg7[%c8_190, %c64_191] : memref<36x256xf32, #tpu.memory_space<vmem>>, vector<4x16xf32>
    tpu.vector_store %arg7[%c8_190, %c64_191], %112 {strides = array<i32>} : memref<36x256xf32, #tpu.memory_space<vmem>>, vector<4x16xf32>,
    %c0_192 = arith.constant 0 : index
    %c0_193 = arith.constant 0 : index
    %c5_194 = arith.constant 5 : index
    %c2_195 = arith.constant 2 : index
    %114 = vector.load %arg1[%c0_192, %c0_193, %c5_194, %c2_195] : memref<1x4x18x18xf32, #tpu.memory_space<vmem>>, vector<1x4x1x16xf32>
    %115 = vector.shape_cast %114 : vector<1x4x1x16xf32> to vector<4x16xf32>
    %c8_196 = arith.constant 8 : index
    %c80_197 = arith.constant 80 : index
    %116 = vector.load %arg7[%c8_196, %c80_197] : memref<36x256xf32, #tpu.memory_space<vmem>>, vector<4x16xf32>
    tpu.vector_store %arg7[%c8_196, %c80_197], %115 {strides = array<i32>} : memref<36x256xf32, #tpu.memory_space<vmem>>, vector<4x16xf32>,
    %c0_198 = arith.constant 0 : index
    %c0_199 = arith.constant 0 : index
    %c6_200 = arith.constant 6 : index
    %c2_201 = arith.constant 2 : index
    %117 = vector.load %arg1[%c0_198, %c0_199, %c6_200, %c2_201] : memref<1x4x18x18xf32, #tpu.memory_space<vmem>>, vector<1x4x1x16xf32>
    %118 = vector.shape_cast %117 : vector<1x4x1x16xf32> to vector<4x16xf32>
    %c8_202 = arith.constant 8 : index
    %c96_203 = arith.constant 96 : index
    %119 = vector.load %arg7[%c8_202, %c96_203] : memref<36x256xf32, #tpu.memory_space<vmem>>, vector<4x16xf32>
    tpu.vector_store %arg7[%c8_202, %c96_203], %118 {strides = array<i32>} : memref<36x256xf32, #tpu.memory_space<vmem>>, vector<4x16xf32>,
    %c0_204 = arith.constant 0 : index
    %c0_205 = arith.constant 0 : index
    %c7_206 = arith.constant 7 : index
    %c2_207 = arith.constant 2 : index
    %120 = vector.load %arg1[%c0_204, %c0_205, %c7_206, %c2_207] : memref<1x4x18x18xf32, #tpu.memory_space<vmem>>, vector<1x4x1x16xf32>
    %121 = vector.shape_cast %120 : vector<1x4x1x16xf32> to vector<4x16xf32>
    %c8_208 = arith.constant 8 : index
    %c112_209 = arith.constant 112 : index
    %122 = vector.load %arg7[%c8_208, %c112_209] : memref<36x256xf32, #tpu.memory_space<vmem>>, vector<4x16xf32>
    tpu.vector_store %arg7[%c8_208, %c112_209], %121 {strides = array<i32>} : memref<36x256xf32, #tpu.memory_space<vmem>>, vector<4x16xf32>,
    %c0_210 = arith.constant 0 : index
    %c0_211 = arith.constant 0 : index
    %c8_212 = arith.constant 8 : index
    %c2_213 = arith.constant 2 : index
    %123 = vector.load %arg1[%c0_210, %c0_211, %c8_212, %c2_213] : memref<1x4x18x18xf32, #tpu.memory_space<vmem>>, vector<1x4x1x16xf32>
    %124 = vector.shape_cast %123 : vector<1x4x1x16xf32> to vector<4x16xf32>
    %c8_214 = arith.constant 8 : index
    %c128_215 = arith.constant 128 : index
    %125 = vector.load %arg7[%c8_214, %c128_215] : memref<36x256xf32, #tpu.memory_space<vmem>>, vector<4x16xf32>
    tpu.vector_store %arg7[%c8_214, %c128_215], %124 {strides = array<i32>} : memref<36x256xf32, #tpu.memory_space<vmem>>, vector<4x16xf32>,
    %c0_216 = arith.constant 0 : index
    %c0_217 = arith.constant 0 : index
    %c9_218 = arith.constant 9 : index
    %c2_219 = arith.constant 2 : index
    %126 = vector.load %arg1[%c0_216, %c0_217, %c9_218, %c2_219] : memref<1x4x18x18xf32, #tpu.memory_space<vmem>>, vector<1x4x1x16xf32>
    %127 = vector.shape_cast %126 : vector<1x4x1x16xf32> to vector<4x16xf32>
    %c8_220 = arith.constant 8 : index
    %c144_221 = arith.constant 144 : index
    %128 = vector.load %arg7[%c8_220, %c144_221] : memref<36x256xf32, #tpu.memory_space<vmem>>, vector<4x16xf32>
    tpu.vector_store %arg7[%c8_220, %c144_221], %127 {strides = array<i32>} : memref<36x256xf32, #tpu.memory_space<vmem>>, vector<4x16xf32>,
    %c0_222 = arith.constant 0 : index
    %c0_223 = arith.constant 0 : index
    %c10_224 = arith.constant 10 : index
    %c2_225 = arith.constant 2 : index
    %129 = vector.load %arg1[%c0_222, %c0_223, %c10_224, %c2_225] : memref<1x4x18x18xf32, #tpu.memory_space<vmem>>, vector<1x4x1x16xf32>
    %130 = vector.shape_cast %129 : vector<1x4x1x16xf32> to vector<4x16xf32>
    %c8_226 = arith.constant 8 : index
    %c160_227 = arith.constant 160 : index
    %131 = vector.load %arg7[%c8_226, %c160_227] : memref<36x256xf32, #tpu.memory_space<vmem>>, vector<4x16xf32>
    tpu.vector_store %arg7[%c8_226, %c160_227], %130 {strides = array<i32>} : memref<36x256xf32, #tpu.memory_space<vmem>>, vector<4x16xf32>,
    %c0_228 = arith.constant 0 : index
    %c0_229 = arith.constant 0 : index
    %c11_230 = arith.constant 11 : index
    %c2_231 = arith.constant 2 : index
    %132 = vector.load %arg1[%c0_228, %c0_229, %c11_230, %c2_231] : memref<1x4x18x18xf32, #tpu.memory_space<vmem>>, vector<1x4x1x16xf32>
    %133 = vector.shape_cast %132 : vector<1x4x1x16xf32> to vector<4x16xf32>
    %c8_232 = arith.constant 8 : index
    %c176_233 = arith.constant 176 : index
    %134 = vector.load %arg7[%c8_232, %c176_233] : memref<36x256xf32, #tpu.memory_space<vmem>>, vector<4x16xf32>
    tpu.vector_store %arg7[%c8_232, %c176_233], %133 {strides = array<i32>} : memref<36x256xf32, #tpu.memory_space<vmem>>, vector<4x16xf32>,
    %c0_234 = arith.constant 0 : index
    %c0_235 = arith.constant 0 : index
    %c12_236 = arith.constant 12 : index
    %c2_237 = arith.constant 2 : index
    %135 = vector.load %arg1[%c0_234, %c0_235, %c12_236, %c2_237] : memref<1x4x18x18xf32, #tpu.memory_space<vmem>>, vector<1x4x1x16xf32>
    %136 = vector.shape_cast %135 : vector<1x4x1x16xf32> to vector<4x16xf32>
    %c8_238 = arith.constant 8 : index
    %c192_239 = arith.constant 192 : index
    %137 = vector.load %arg7[%c8_238, %c192_239] : memref<36x256xf32, #tpu.memory_space<vmem>>, vector<4x16xf32>
    tpu.vector_store %arg7[%c8_238, %c192_239], %136 {strides = array<i32>} : memref<36x256xf32, #tpu.memory_space<vmem>>, vector<4x16xf32>,
    %c0_240 = arith.constant 0 : index
    %c0_241 = arith.constant 0 : index
    %c13_242 = arith.constant 13 : index
    %c2_243 = arith.constant 2 : index
    %138 = vector.load %arg1[%c0_240, %c0_241, %c13_242, %c2_243] : memref<1x4x18x18xf32, #tpu.memory_space<vmem>>, vector<1x4x1x16xf32>
    %139 = vector.shape_cast %138 : vector<1x4x1x16xf32> to vector<4x16xf32>
    %c8_244 = arith.constant 8 : index
    %c208_245 = arith.constant 208 : index
    %140 = vector.load %arg7[%c8_244, %c208_245] : memref<36x256xf32, #tpu.memory_space<vmem>>, vector<4x16xf32>
    tpu.vector_store %arg7[%c8_244, %c208_245], %139 {strides = array<i32>} : memref<36x256xf32, #tpu.memory_space<vmem>>, vector<4x16xf32>,
    %c0_246 = arith.constant 0 : index
    %c0_247 = arith.constant 0 : index
    %c14_248 = arith.constant 14 : index
    %c2_249 = arith.constant 2 : index
    %141 = vector.load %arg1[%c0_246, %c0_247, %c14_248, %c2_249] : memref<1x4x18x18xf32, #tpu.memory_space<vmem>>, vector<1x4x1x16xf32>
    %142 = vector.shape_cast %141 : vector<1x4x1x16xf32> to vector<4x16xf32>
    %c8_250 = arith.constant 8 : index
    %c224_251 = arith.constant 224 : index
    %143 = vector.load %arg7[%c8_250, %c224_251] : memref<36x256xf32, #tpu.memory_space<vmem>>, vector<4x16xf32>
    tpu.vector_store %arg7[%c8_250, %c224_251], %142 {strides = array<i32>} : memref<36x256xf32, #tpu.memory_space<vmem>>, vector<4x16xf32>,
    %c0_252 = arith.constant 0 : index
    %c0_253 = arith.constant 0 : index
    %c15_254 = arith.constant 15 : index
    %c2_255 = arith.constant 2 : index
    %144 = vector.load %arg1[%c0_252, %c0_253, %c15_254, %c2_255] : memref<1x4x18x18xf32, #tpu.memory_space<vmem>>, vector<1x4x1x16xf32>
    %145 = vector.shape_cast %144 : vector<1x4x1x16xf32> to vector<4x16xf32>
    %c8_256 = arith.constant 8 : index
    %c240_257 = arith.constant 240 : index
    %146 = vector.load %arg7[%c8_256, %c240_257] : memref<36x256xf32, #tpu.memory_space<vmem>>, vector<4x16xf32>
    tpu.vector_store %arg7[%c8_256, %c240_257], %145 {strides = array<i32>} : memref<36x256xf32, #tpu.memory_space<vmem>>, vector<4x16xf32>,
    %c0_258 = arith.constant 0 : index
    %c0_259 = arith.constant 0 : index
    %c1_260 = arith.constant 1 : index
    %c0_261 = arith.constant 0 : index
    %147 = vector.load %arg1[%c0_258, %c0_259, %c1_260, %c0_261] : memref<1x4x18x18xf32, #tpu.memory_space<vmem>>, vector<1x4x1x16xf32>
    %148 = vector.shape_cast %147 : vector<1x4x1x16xf32> to vector<4x16xf32>
    %c12_262 = arith.constant 12 : index
    %c0_263 = arith.constant 0 : index
    %149 = vector.load %arg7[%c12_262, %c0_263] : memref<36x256xf32, #tpu.memory_space<vmem>>, vector<4x16xf32>
    tpu.vector_store %arg7[%c12_262, %c0_263], %148 {strides = array<i32>} : memref<36x256xf32, #tpu.memory_space<vmem>>, vector<4x16xf32>,
    %c0_264 = arith.constant 0 : index
    %c0_265 = arith.constant 0 : index
    %c2_266 = arith.constant 2 : index
    %c0_267 = arith.constant 0 : index
    %150 = vector.load %arg1[%c0_264, %c0_265, %c2_266, %c0_267] : memref<1x4x18x18xf32, #tpu.memory_space<vmem>>, vector<1x4x1x16xf32>
    %151 = vector.shape_cast %150 : vector<1x4x1x16xf32> to vector<4x16xf32>
    %c12_268 = arith.constant 12 : index
    %c16_269 = arith.constant 16 : index
    %152 = vector.load %arg7[%c12_268, %c16_269] : memref<36x256xf32, #tpu.memory_space<vmem>>, vector<4x16xf32>
    tpu.vector_store %arg7[%c12_268, %c16_269], %151 {strides = array<i32>} : memref<36x256xf32, #tpu.memory_space<vmem>>, vector<4x16xf32>,
    %c0_270 = arith.constant 0 : index
    %c0_271 = arith.constant 0 : index
    %c3_272 = arith.constant 3 : index
    %c0_273 = arith.constant 0 : index
    %153 = vector.load %arg1[%c0_270, %c0_271, %c3_272, %c0_273] : memref<1x4x18x18xf32, #tpu.memory_space<vmem>>, vector<1x4x1x16xf32>
    %154 = vector.shape_cast %153 : vector<1x4x1x16xf32> to vector<4x16xf32>
    %c12_274 = arith.constant 12 : index
    %c32_275 = arith.constant 32 : index
    %155 = vector.load %arg7[%c12_274, %c32_275] : memref<36x256xf32, #tpu.memory_space<vmem>>, vector<4x16xf32>
    tpu.vector_store %arg7[%c12_274, %c32_275], %154 {strides = array<i32>} : memref<36x256xf32, #tpu.memory_space<vmem>>, vector<4x16xf32>,
    %c0_276 = arith.constant 0 : index
    %c0_277 = arith.constant 0 : index
    %c4_278 = arith.constant 4 : index
    %c0_279 = arith.constant 0 : index
    %156 = vector.load %arg1[%c0_276, %c0_277, %c4_278, %c0_279] : memref<1x4x18x18xf32, #tpu.memory_space<vmem>>, vector<1x4x1x16xf32>
    %157 = vector.shape_cast %156 : vector<1x4x1x16xf32> to vector<4x16xf32>
    %c12_280 = arith.constant 12 : index
    %c48_281 = arith.constant 48 : index
    %158 = vector.load %arg7[%c12_280, %c48_281] : memref<36x256xf32, #tpu.memory_space<vmem>>, vector<4x16xf32>
    tpu.vector_store %arg7[%c12_280, %c48_281], %157 {strides = array<i32>} : memref<36x256xf32, #tpu.memory_space<vmem>>, vector<4x16xf32>,
    %c0_282 = arith.constant 0 : index
    %c0_283 = arith.constant 0 : index
    %c5_284 = arith.constant 5 : index
    %c0_285 = arith.constant 0 : index
    %159 = vector.load %arg1[%c0_282, %c0_283, %c5_284, %c0_285] : memref<1x4x18x18xf32, #tpu.memory_space<vmem>>, vector<1x4x1x16xf32>
    %160 = vector.shape_cast %159 : vector<1x4x1x16xf32> to vector<4x16xf32>
    %c12_286 = arith.constant 12 : index
    %c64_287 = arith.constant 64 : index
    %161 = vector.load %arg7[%c12_286, %c64_287] : memref<36x256xf32, #tpu.memory_space<vmem>>, vector<4x16xf32>
    tpu.vector_store %arg7[%c12_286, %c64_287], %160 {strides = array<i32>} : memref<36x256xf32, #tpu.memory_space<vmem>>, vector<4x16xf32>,
    %c0_288 = arith.constant 0 : index
    %c0_289 = arith.constant 0 : index
    %c6_290 = arith.constant 6 : index
    %c0_291 = arith.constant 0 : index
    %162 = vector.load %arg1[%c0_288, %c0_289, %c6_290, %c0_291] : memref<1x4x18x18xf32, #tpu.memory_space<vmem>>, vector<1x4x1x16xf32>
    %163 = vector.shape_cast %162 : vector<1x4x1x16xf32> to vector<4x16xf32>
    %c12_292 = arith.constant 12 : index
    %c80_293 = arith.constant 80 : index
    %164 = vector.load %arg7[%c12_292, %c80_293] : memref<36x256xf32, #tpu.memory_space<vmem>>, vector<4x16xf32>
    tpu.vector_store %arg7[%c12_292, %c80_293], %163 {strides = array<i32>} : memref<36x256xf32, #tpu.memory_space<vmem>>, vector<4x16xf32>,
    %c0_294 = arith.constant 0 : index
    %c0_295 = arith.constant 0 : index
    %c7_296 = arith.constant 7 : index
    %c0_297 = arith.constant 0 : index
    %165 = vector.load %arg1[%c0_294, %c0_295, %c7_296, %c0_297] : memref<1x4x18x18xf32, #tpu.memory_space<vmem>>, vector<1x4x1x16xf32>
    %166 = vector.shape_cast %165 : vector<1x4x1x16xf32> to vector<4x16xf32>
    %c12_298 = arith.constant 12 : index
    %c96_299 = arith.constant 96 : index
    %167 = vector.load %arg7[%c12_298, %c96_299] : memref<36x256xf32, #tpu.memory_space<vmem>>, vector<4x16xf32>
    tpu.vector_store %arg7[%c12_298, %c96_299], %166 {strides = array<i32>} : memref<36x256xf32, #tpu.memory_space<vmem>>, vector<4x16xf32>,
    %c0_300 = arith.constant 0 : index
    %c0_301 = arith.constant 0 : index
    %c8_302 = arith.constant 8 : index
    %c0_303 = arith.constant 0 : index
    %168 = vector.load %arg1[%c0_300, %c0_301, %c8_302, %c0_303] : memref<1x4x18x18xf32, #tpu.memory_space<vmem>>, vector<1x4x1x16xf32>
    %169 = vector.shape_cast %168 : vector<1x4x1x16xf32> to vector<4x16xf32>
    %c12_304 = arith.constant 12 : index
    %c112_305 = arith.constant 112 : index
    %170 = vector.load %arg7[%c12_304, %c112_305] : memref<36x256xf32, #tpu.memory_space<vmem>>, vector<4x16xf32>
    tpu.vector_store %arg7[%c12_304, %c112_305], %169 {strides = array<i32>} : memref<36x256xf32, #tpu.memory_space<vmem>>, vector<4x16xf32>,
    %c0_306 = arith.constant 0 : index
    %c0_307 = arith.constant 0 : index
    %c9_308 = arith.constant 9 : index
    %c0_309 = arith.constant 0 : index
    %171 = vector.load %arg1[%c0_306, %c0_307, %c9_308, %c0_309] : memref<1x4x18x18xf32, #tpu.memory_space<vmem>>, vector<1x4x1x16xf32>
    %172 = vector.shape_cast %171 : vector<1x4x1x16xf32> to vector<4x16xf32>
    %c12_310 = arith.constant 12 : index
    %c128_311 = arith.constant 128 : index
    %173 = vector.load %arg7[%c12_310, %c128_311] : memref<36x256xf32, #tpu.memory_space<vmem>>, vector<4x16xf32>
    tpu.vector_store %arg7[%c12_310, %c128_311], %172 {strides = array<i32>} : memref<36x256xf32, #tpu.memory_space<vmem>>, vector<4x16xf32>,
    %c0_312 = arith.constant 0 : index
    %c0_313 = arith.constant 0 : index
    %c10_314 = arith.constant 10 : index
    %c0_315 = arith.constant 0 : index
    %174 = vector.load %arg1[%c0_312, %c0_313, %c10_314, %c0_315] : memref<1x4x18x18xf32, #tpu.memory_space<vmem>>, vector<1x4x1x16xf32>
    %175 = vector.shape_cast %174 : vector<1x4x1x16xf32> to vector<4x16xf32>
    %c12_316 = arith.constant 12 : index
    %c144_317 = arith.constant 144 : index
    %176 = vector.load %arg7[%c12_316, %c144_317] : memref<36x256xf32, #tpu.memory_space<vmem>>, vector<4x16xf32>
    tpu.vector_store %arg7[%c12_316, %c144_317], %175 {strides = array<i32>} : memref<36x256xf32, #tpu.memory_space<vmem>>, vector<4x16xf32>,
    %c0_318 = arith.constant 0 : index
    %c0_319 = arith.constant 0 : index
    %c11_320 = arith.constant 11 : index
    %c0_321 = arith.constant 0 : index
    %177 = vector.load %arg1[%c0_318, %c0_319, %c11_320, %c0_321] : memref<1x4x18x18xf32, #tpu.memory_space<vmem>>, vector<1x4x1x16xf32>
    %178 = vector.shape_cast %177 : vector<1x4x1x16xf32> to vector<4x16xf32>
    %c12_322 = arith.constant 12 : index
    %c160_323 = arith.constant 160 : index
    %179 = vector.load %arg7[%c12_322, %c160_323] : memref<36x256xf32, #tpu.memory_space<vmem>>, vector<4x16xf32>
    tpu.vector_store %arg7[%c12_322, %c160_323], %178 {strides = array<i32>} : memref<36x256xf32, #tpu.memory_space<vmem>>, vector<4x16xf32>,
    %c0_324 = arith.constant 0 : index
    %c0_325 = arith.constant 0 : index
    %c12_326 = arith.constant 12 : index
    %c0_327 = arith.constant 0 : index
    %180 = vector.load %arg1[%c0_324, %c0_325, %c12_326, %c0_327] : memref<1x4x18x18xf32, #tpu.memory_space<vmem>>, vector<1x4x1x16xf32>
    %181 = vector.shape_cast %180 : vector<1x4x1x16xf32> to vector<4x16xf32>
    %c12_328 = arith.constant 12 : index
    %c176_329 = arith.constant 176 : index
    %182 = vector.load %arg7[%c12_328, %c176_329] : memref<36x256xf32, #tpu.memory_space<vmem>>, vector<4x16xf32>
    tpu.vector_store %arg7[%c12_328, %c176_329], %181 {strides = array<i32>} : memref<36x256xf32, #tpu.memory_space<vmem>>, vector<4x16xf32>,
    %c0_330 = arith.constant 0 : index
    %c0_331 = arith.constant 0 : index
    %c13_332 = arith.constant 13 : index
    %c0_333 = arith.constant 0 : index
    %183 = vector.load %arg1[%c0_330, %c0_331, %c13_332, %c0_333] : memref<1x4x18x18xf32, #tpu.memory_space<vmem>>, vector<1x4x1x16xf32>
    %184 = vector.shape_cast %183 : vector<1x4x1x16xf32> to vector<4x16xf32>
    %c12_334 = arith.constant 12 : index
    %c192_335 = arith.constant 192 : index
    %185 = vector.load %arg7[%c12_334, %c192_335] : memref<36x256xf32, #tpu.memory_space<vmem>>, vector<4x16xf32>
    tpu.vector_store %arg7[%c12_334, %c192_335], %184 {strides = array<i32>} : memref<36x256xf32, #tpu.memory_space<vmem>>, vector<4x16xf32>,
    %c0_336 = arith.constant 0 : index
    %c0_337 = arith.constant 0 : index
    %c14_338 = arith.constant 14 : index
    %c0_339 = arith.constant 0 : index
    %186 = vector.load %arg1[%c0_336, %c0_337, %c14_338, %c0_339] : memref<1x4x18x18xf32, #tpu.memory_space<vmem>>, vector<1x4x1x16xf32>
    %187 = vector.shape_cast %186 : vector<1x4x1x16xf32> to vector<4x16xf32>
    %c12_340 = arith.constant 12 : index
    %c208_341 = arith.constant 208 : index
    %188 = vector.load %arg7[%c12_340, %c208_341] : memref<36x256xf32, #tpu.memory_space<vmem>>, vector<4x16xf32>
    tpu.vector_store %arg7[%c12_340, %c208_341], %187 {strides = array<i32>} : memref<36x256xf32, #tpu.memory_space<vmem>>, vector<4x16xf32>,
    %c0_342 = arith.constant 0 : index
    %c0_343 = arith.constant 0 : index
    %c15_344 = arith.constant 15 : index
    %c0_345 = arith.constant 0 : index
    %189 = vector.load %arg1[%c0_342, %c0_343, %c15_344, %c0_345] : memref<1x4x18x18xf32, #tpu.memory_space<vmem>>, vector<1x4x1x16xf32>
    %190 = vector.shape_cast %189 : vector<1x4x1x16xf32> to vector<4x16xf32>
    %c12_346 = arith.constant 12 : index
    %c224_347 = arith.constant 224 : index
    %191 = vector.load %arg7[%c12_346, %c224_347] : memref<36x256xf32, #tpu.memory_space<vmem>>, vector<4x16xf32>
    tpu.vector_store %arg7[%c12_346, %c224_347], %190 {strides = array<i32>} : memref<36x256xf32, #tpu.memory_space<vmem>>, vector<4x16xf32>,
    %c0_348 = arith.constant 0 : index
    %c0_349 = arith.constant 0 : index
    %c16_350 = arith.constant 16 : index
    %c0_351 = arith.constant 0 : index
    %192 = vector.load %arg1[%c0_348, %c0_349, %c16_350, %c0_351] : memref<1x4x18x18xf32, #tpu.memory_space<vmem>>, vector<1x4x1x16xf32>
    %193 = vector.shape_cast %192 : vector<1x4x1x16xf32> to vector<4x16xf32>
    %c12_352 = arith.constant 12 : index
    %c240_353 = arith.constant 240 : index
    %194 = vector.load %arg7[%c12_352, %c240_353] : memref<36x256xf32, #tpu.memory_space<vmem>>, vector<4x16xf32>
    tpu.vector_store %arg7[%c12_352, %c240_353], %193 {strides = array<i32>} : memref<36x256xf32, #tpu.memory_space<vmem>>, vector<4x16xf32>,
    %c0_354 = arith.constant 0 : index
    %c0_355 = arith.constant 0 : index
    %c1_356 = arith.constant 1 : index
    %c1_357 = arith.constant 1 : index
    %195 = vector.load %arg1[%c0_354, %c0_355, %c1_356, %c1_357] : memref<1x4x18x18xf32, #tpu.memory_space<vmem>>, vector<1x4x1x16xf32>
    %196 = vector.shape_cast %195 : vector<1x4x1x16xf32> to vector<4x16xf32>
    %c16_358 = arith.constant 16 : index
    %c0_359 = arith.constant 0 : index
    %197 = vector.load %arg7[%c16_358, %c0_359] : memref<36x256xf32, #tpu.memory_space<vmem>>, vector<4x16xf32>
    tpu.vector_store %arg7[%c16_358, %c0_359], %196 {strides = array<i32>} : memref<36x256xf32, #tpu.memory_space<vmem>>, vector<4x16xf32>,
    %c0_360 = arith.constant 0 : index
    %c0_361 = arith.constant 0 : index
    %c2_362 = arith.constant 2 : index
    %c1_363 = arith.constant 1 : index
    %198 = vector.load %arg1[%c0_360, %c0_361, %c2_362, %c1_363] : memref<1x4x18x18xf32, #tpu.memory_space<vmem>>, vector<1x4x1x16xf32>
    %199 = vector.shape_cast %198 : vector<1x4x1x16xf32> to vector<4x16xf32>
    %c16_364 = arith.constant 16 : index
    %c16_365 = arith.constant 16 : index
    %200 = vector.load %arg7[%c16_364, %c16_365] : memref<36x256xf32, #tpu.memory_space<vmem>>, vector<4x16xf32>
    tpu.vector_store %arg7[%c16_364, %c16_365], %199 {strides = array<i32>} : memref<36x256xf32, #tpu.memory_space<vmem>>, vector<4x16xf32>,
    %c0_366 = arith.constant 0 : index
    %c0_367 = arith.constant 0 : index
    %c3_368 = arith.constant 3 : index
    %c1_369 = arith.constant 1 : index
    %201 = vector.load %arg1[%c0_366, %c0_367, %c3_368, %c1_369] : memref<1x4x18x18xf32, #tpu.memory_space<vmem>>, vector<1x4x1x16xf32>
    %202 = vector.shape_cast %201 : vector<1x4x1x16xf32> to vector<4x16xf32>
    %c16_370 = arith.constant 16 : index
    %c32_371 = arith.constant 32 : index
    %203 = vector.load %arg7[%c16_370, %c32_371] : memref<36x256xf32, #tpu.memory_space<vmem>>, vector<4x16xf32>
    tpu.vector_store %arg7[%c16_370, %c32_371], %202 {strides = array<i32>} : memref<36x256xf32, #tpu.memory_space<vmem>>, vector<4x16xf32>,
    %c0_372 = arith.constant 0 : index
    %c0_373 = arith.constant 0 : index
    %c4_374 = arith.constant 4 : index
    %c1_375 = arith.constant 1 : index
    %204 = vector.load %arg1[%c0_372, %c0_373, %c4_374, %c1_375] : memref<1x4x18x18xf32, #tpu.memory_space<vmem>>, vector<1x4x1x16xf32>
    %205 = vector.shape_cast %204 : vector<1x4x1x16xf32> to vector<4x16xf32>
    %c16_376 = arith.constant 16 : index
    %c48_377 = arith.constant 48 : index
    %206 = vector.load %arg7[%c16_376, %c48_377] : memref<36x256xf32, #tpu.memory_space<vmem>>, vector<4x16xf32>
    tpu.vector_store %arg7[%c16_376, %c48_377], %205 {strides = array<i32>} : memref<36x256xf32, #tpu.memory_space<vmem>>, vector<4x16xf32>,
    %c0_378 = arith.constant 0 : index
    %c0_379 = arith.constant 0 : index
    %c5_380 = arith.constant 5 : index
    %c1_381 = arith.constant 1 : index
    %207 = vector.load %arg1[%c0_378, %c0_379, %c5_380, %c1_381] : memref<1x4x18x18xf32, #tpu.memory_space<vmem>>, vector<1x4x1x16xf32>
    %208 = vector.shape_cast %207 : vector<1x4x1x16xf32> to vector<4x16xf32>
    %c16_382 = arith.constant 16 : index
    %c64_383 = arith.constant 64 : index
    %209 = vector.load %arg7[%c16_382, %c64_383] : memref<36x256xf32, #tpu.memory_space<vmem>>, vector<4x16xf32>
    tpu.vector_store %arg7[%c16_382, %c64_383], %208 {strides = array<i32>} : memref<36x256xf32, #tpu.memory_space<vmem>>, vector<4x16xf32>,
    %c0_384 = arith.constant 0 : index
    %c0_385 = arith.constant 0 : index
    %c6_386 = arith.constant 6 : index
    %c1_387 = arith.constant 1 : index
    %210 = vector.load %arg1[%c0_384, %c0_385, %c6_386, %c1_387] : memref<1x4x18x18xf32, #tpu.memory_space<vmem>>, vector<1x4x1x16xf32>
    %211 = vector.shape_cast %210 : vector<1x4x1x16xf32> to vector<4x16xf32>
    %c16_388 = arith.constant 16 : index
    %c80_389 = arith.constant 80 : index
    %212 = vector.load %arg7[%c16_388, %c80_389] : memref<36x256xf32, #tpu.memory_space<vmem>>, vector<4x16xf32>
    tpu.vector_store %arg7[%c16_388, %c80_389], %211 {strides = array<i32>} : memref<36x256xf32, #tpu.memory_space<vmem>>, vector<4x16xf32>,
    %c0_390 = arith.constant 0 : index
    %c0_391 = arith.constant 0 : index
    %c7_392 = arith.constant 7 : index
    %c1_393 = arith.constant 1 : index
    %213 = vector.load %arg1[%c0_390, %c0_391, %c7_392, %c1_393] : memref<1x4x18x18xf32, #tpu.memory_space<vmem>>, vector<1x4x1x16xf32>
    %214 = vector.shape_cast %213 : vector<1x4x1x16xf32> to vector<4x16xf32>
    %c16_394 = arith.constant 16 : index
    %c96_395 = arith.constant 96 : index
    %215 = vector.load %arg7[%c16_394, %c96_395] : memref<36x256xf32, #tpu.memory_space<vmem>>, vector<4x16xf32>
    tpu.vector_store %arg7[%c16_394, %c96_395], %214 {strides = array<i32>} : memref<36x256xf32, #tpu.memory_space<vmem>>, vector<4x16xf32>,
    %c0_396 = arith.constant 0 : index
    %c0_397 = arith.constant 0 : index
    %c8_398 = arith.constant 8 : index
    %c1_399 = arith.constant 1 : index
    %216 = vector.load %arg1[%c0_396, %c0_397, %c8_398, %c1_399] : memref<1x4x18x18xf32, #tpu.memory_space<vmem>>, vector<1x4x1x16xf32>
    %217 = vector.shape_cast %216 : vector<1x4x1x16xf32> to vector<4x16xf32>
    %c16_400 = arith.constant 16 : index
    %c112_401 = arith.constant 112 : index
    %218 = vector.load %arg7[%c16_400, %c112_401] : memref<36x256xf32, #tpu.memory_space<vmem>>, vector<4x16xf32>
    tpu.vector_store %arg7[%c16_400, %c112_401], %217 {strides = array<i32>} : memref<36x256xf32, #tpu.memory_space<vmem>>, vector<4x16xf32>,
    %c0_402 = arith.constant 0 : index
    %c0_403 = arith.constant 0 : index
    %c9_404 = arith.constant 9 : index
    %c1_405 = arith.constant 1 : index
    %219 = vector.load %arg1[%c0_402, %c0_403, %c9_404, %c1_405] : memref<1x4x18x18xf32, #tpu.memory_space<vmem>>, vector<1x4x1x16xf32>
    %220 = vector.shape_cast %219 : vector<1x4x1x16xf32> to vector<4x16xf32>
    %c16_406 = arith.constant 16 : index
    %c128_407 = arith.constant 128 : index
    %221 = vector.load %arg7[%c16_406, %c128_407] : memref<36x256xf32, #tpu.memory_space<vmem>>, vector<4x16xf32>
    tpu.vector_store %arg7[%c16_406, %c128_407], %220 {strides = array<i32>} : memref<36x256xf32, #tpu.memory_space<vmem>>, vector<4x16xf32>,
    %c0_408 = arith.constant 0 : index
    %c0_409 = arith.constant 0 : index
    %c10_410 = arith.constant 10 : index
    %c1_411 = arith.constant 1 : index
    %222 = vector.load %arg1[%c0_408, %c0_409, %c10_410, %c1_411] : memref<1x4x18x18xf32, #tpu.memory_space<vmem>>, vector<1x4x1x16xf32>
    %223 = vector.shape_cast %222 : vector<1x4x1x16xf32> to vector<4x16xf32>
    %c16_412 = arith.constant 16 : index
    %c144_413 = arith.constant 144 : index
    %224 = vector.load %arg7[%c16_412, %c144_413] : memref<36x256xf32, #tpu.memory_space<vmem>>, vector<4x16xf32>
    tpu.vector_store %arg7[%c16_412, %c144_413], %223 {strides = array<i32>} : memref<36x256xf32, #tpu.memory_space<vmem>>, vector<4x16xf32>,
    %c0_414 = arith.constant 0 : index
    %c0_415 = arith.constant 0 : index
    %c11_416 = arith.constant 11 : index
    %c1_417 = arith.constant 1 : index
    %225 = vector.load %arg1[%c0_414, %c0_415, %c11_416, %c1_417] : memref<1x4x18x18xf32, #tpu.memory_space<vmem>>, vector<1x4x1x16xf32>
    %226 = vector.shape_cast %225 : vector<1x4x1x16xf32> to vector<4x16xf32>
    %c16_418 = arith.constant 16 : index
    %c160_419 = arith.constant 160 : index
    %227 = vector.load %arg7[%c16_418, %c160_419] : memref<36x256xf32, #tpu.memory_space<vmem>>, vector<4x16xf32>
    tpu.vector_store %arg7[%c16_418, %c160_419], %226 {strides = array<i32>} : memref<36x256xf32, #tpu.memory_space<vmem>>, vector<4x16xf32>,
    %c0_420 = arith.constant 0 : index
    %c0_421 = arith.constant 0 : index
    %c12_422 = arith.constant 12 : index
    %c1_423 = arith.constant 1 : index
    %228 = vector.load %arg1[%c0_420, %c0_421, %c12_422, %c1_423] : memref<1x4x18x18xf32, #tpu.memory_space<vmem>>, vector<1x4x1x16xf32>
    %229 = vector.shape_cast %228 : vector<1x4x1x16xf32> to vector<4x16xf32>
    %c16_424 = arith.constant 16 : index
    %c176_425 = arith.constant 176 : index
    %230 = vector.load %arg7[%c16_424, %c176_425] : memref<36x256xf32, #tpu.memory_space<vmem>>, vector<4x16xf32>
    tpu.vector_store %arg7[%c16_424, %c176_425], %229 {strides = array<i32>} : memref<36x256xf32, #tpu.memory_space<vmem>>, vector<4x16xf32>,
    %c0_426 = arith.constant 0 : index
    %c0_427 = arith.constant 0 : index
    %c13_428 = arith.constant 13 : index
    %c1_429 = arith.constant 1 : index
    %231 = vector.load %arg1[%c0_426, %c0_427, %c13_428, %c1_429] : memref<1x4x18x18xf32, #tpu.memory_space<vmem>>, vector<1x4x1x16xf32>
    %232 = vector.shape_cast %231 : vector<1x4x1x16xf32> to vector<4x16xf32>
    %c16_430 = arith.constant 16 : index
    %c192_431 = arith.constant 192 : index
    %233 = vector.load %arg7[%c16_430, %c192_431] : memref<36x256xf32, #tpu.memory_space<vmem>>, vector<4x16xf32>
    tpu.vector_store %arg7[%c16_430, %c192_431], %232 {strides = array<i32>} : memref<36x256xf32, #tpu.memory_space<vmem>>, vector<4x16xf32>,
    %c0_432 = arith.constant 0 : index
    %c0_433 = arith.constant 0 : index
    %c14_434 = arith.constant 14 : index
    %c1_435 = arith.constant 1 : index
    %234 = vector.load %arg1[%c0_432, %c0_433, %c14_434, %c1_435] : memref<1x4x18x18xf32, #tpu.memory_space<vmem>>, vector<1x4x1x16xf32>
    %235 = vector.shape_cast %234 : vector<1x4x1x16xf32> to vector<4x16xf32>
    %c16_436 = arith.constant 16 : index
    %c208_437 = arith.constant 208 : index
    %236 = vector.load %arg7[%c16_436, %c208_437] : memref<36x256xf32, #tpu.memory_space<vmem>>, vector<4x16xf32>
    tpu.vector_store %arg7[%c16_436, %c208_437], %235 {strides = array<i32>} : memref<36x256xf32, #tpu.memory_space<vmem>>, vector<4x16xf32>,
    %c0_438 = arith.constant 0 : index
    %c0_439 = arith.constant 0 : index
    %c15_440 = arith.constant 15 : index
    %c1_441 = arith.constant 1 : index
    %237 = vector.load %arg1[%c0_438, %c0_439, %c15_440, %c1_441] : memref<1x4x18x18xf32, #tpu.memory_space<vmem>>, vector<1x4x1x16xf32>
    %238 = vector.shape_cast %237 : vector<1x4x1x16xf32> to vector<4x16xf32>
    %c16_442 = arith.constant 16 : index
    %c224_443 = arith.constant 224 : index
    %239 = vector.load %arg7[%c16_442, %c224_443] : memref<36x256xf32, #tpu.memory_space<vmem>>, vector<4x16xf32>
    tpu.vector_store %arg7[%c16_442, %c224_443], %238 {strides = array<i32>} : memref<36x256xf32, #tpu.memory_space<vmem>>, vector<4x16xf32>,
    %c0_444 = arith.constant 0 : index
    %c0_445 = arith.constant 0 : index
    %c16_446 = arith.constant 16 : index
    %c1_447 = arith.constant 1 : index
    %240 = vector.load %arg1[%c0_444, %c0_445, %c16_446, %c1_447] : memref<1x4x18x18xf32, #tpu.memory_space<vmem>>, vector<1x4x1x16xf32>
    %241 = vector.shape_cast %240 : vector<1x4x1x16xf32> to vector<4x16xf32>
    %c16_448 = arith.constant 16 : index
    %c240_449 = arith.constant 240 : index
    %242 = vector.load %arg7[%c16_448, %c240_449] : memref<36x256xf32, #tpu.memory_space<vmem>>, vector<4x16xf32>
    tpu.vector_store %arg7[%c16_448, %c240_449], %241 {strides = array<i32>} : memref<36x256xf32, #tpu.memory_space<vmem>>, vector<4x16xf32>,
    %c0_450 = arith.constant 0 : index
    %c0_451 = arith.constant 0 : index
    %c1_452 = arith.constant 1 : index
    %c2_453 = arith.constant 2 : index
    %243 = vector.load %arg1[%c0_450, %c0_451, %c1_452, %c2_453] : memref<1x4x18x18xf32, #tpu.memory_space<vmem>>, vector<1x4x1x16xf32>
    %244 = vector.shape_cast %243 : vector<1x4x1x16xf32> to vector<4x16xf32>
    %c20 = arith.constant 20 : index
    %c0_454 = arith.constant 0 : index
    %245 = vector.load %arg7[%c20, %c0_454] : memref<36x256xf32, #tpu.memory_space<vmem>>, vector<4x16xf32>
    tpu.vector_store %arg7[%c20, %c0_454], %244 {strides = array<i32>} : memref<36x256xf32, #tpu.memory_space<vmem>>, vector<4x16xf32>,
    %c0_455 = arith.constant 0 : index
    %c0_456 = arith.constant 0 : index
    %c2_457 = arith.constant 2 : index
    %c2_458 = arith.constant 2 : index
    %246 = vector.load %arg1[%c0_455, %c0_456, %c2_457, %c2_458] : memref<1x4x18x18xf32, #tpu.memory_space<vmem>>, vector<1x4x1x16xf32>
    %247 = vector.shape_cast %246 : vector<1x4x1x16xf32> to vector<4x16xf32>
    %c20_459 = arith.constant 20 : index
    %c16_460 = arith.constant 16 : index
    %248 = vector.load %arg7[%c20_459, %c16_460] : memref<36x256xf32, #tpu.memory_space<vmem>>, vector<4x16xf32>
    tpu.vector_store %arg7[%c20_459, %c16_460], %247 {strides = array<i32>} : memref<36x256xf32, #tpu.memory_space<vmem>>, vector<4x16xf32>,
    %c0_461 = arith.constant 0 : index
    %c0_462 = arith.constant 0 : index
    %c3_463 = arith.constant 3 : index
    %c2_464 = arith.constant 2 : index
    %249 = vector.load %arg1[%c0_461, %c0_462, %c3_463, %c2_464] : memref<1x4x18x18xf32, #tpu.memory_space<vmem>>, vector<1x4x1x16xf32>
    %250 = vector.shape_cast %249 : vector<1x4x1x16xf32> to vector<4x16xf32>
    %c20_465 = arith.constant 20 : index
    %c32_466 = arith.constant 32 : index
    %251 = vector.load %arg7[%c20_465, %c32_466] : memref<36x256xf32, #tpu.memory_space<vmem>>, vector<4x16xf32>
    tpu.vector_store %arg7[%c20_465, %c32_466], %250 {strides = array<i32>} : memref<36x256xf32, #tpu.memory_space<vmem>>, vector<4x16xf32>,
    %c0_467 = arith.constant 0 : index
    %c0_468 = arith.constant 0 : index
    %c4_469 = arith.constant 4 : index
    %c2_470 = arith.constant 2 : index
    %252 = vector.load %arg1[%c0_467, %c0_468, %c4_469, %c2_470] : memref<1x4x18x18xf32, #tpu.memory_space<vmem>>, vector<1x4x1x16xf32>
    %253 = vector.shape_cast %252 : vector<1x4x1x16xf32> to vector<4x16xf32>
    %c20_471 = arith.constant 20 : index
    %c48_472 = arith.constant 48 : index
    %254 = vector.load %arg7[%c20_471, %c48_472] : memref<36x256xf32, #tpu.memory_space<vmem>>, vector<4x16xf32>
    tpu.vector_store %arg7[%c20_471, %c48_472], %253 {strides = array<i32>} : memref<36x256xf32, #tpu.memory_space<vmem>>, vector<4x16xf32>,
    %c0_473 = arith.constant 0 : index
    %c0_474 = arith.constant 0 : index
    %c5_475 = arith.constant 5 : index
    %c2_476 = arith.constant 2 : index
    %255 = vector.load %arg1[%c0_473, %c0_474, %c5_475, %c2_476] : memref<1x4x18x18xf32, #tpu.memory_space<vmem>>, vector<1x4x1x16xf32>
    %256 = vector.shape_cast %255 : vector<1x4x1x16xf32> to vector<4x16xf32>
    %c20_477 = arith.constant 20 : index
    %c64_478 = arith.constant 64 : index
    %257 = vector.load %arg7[%c20_477, %c64_478] : memref<36x256xf32, #tpu.memory_space<vmem>>, vector<4x16xf32>
    tpu.vector_store %arg7[%c20_477, %c64_478], %256 {strides = array<i32>} : memref<36x256xf32, #tpu.memory_space<vmem>>, vector<4x16xf32>,
    %c0_479 = arith.constant 0 : index
    %c0_480 = arith.constant 0 : index
    %c6_481 = arith.constant 6 : index
    %c2_482 = arith.constant 2 : index
    %258 = vector.load %arg1[%c0_479, %c0_480, %c6_481, %c2_482] : memref<1x4x18x18xf32, #tpu.memory_space<vmem>>, vector<1x4x1x16xf32>
    %259 = vector.shape_cast %258 : vector<1x4x1x16xf32> to vector<4x16xf32>
    %c20_483 = arith.constant 20 : index
    %c80_484 = arith.constant 80 : index
    %260 = vector.load %arg7[%c20_483, %c80_484] : memref<36x256xf32, #tpu.memory_space<vmem>>, vector<4x16xf32>
    tpu.vector_store %arg7[%c20_483, %c80_484], %259 {strides = array<i32>} : memref<36x256xf32, #tpu.memory_space<vmem>>, vector<4x16xf32>,
    %c0_485 = arith.constant 0 : index
    %c0_486 = arith.constant 0 : index
    %c7_487 = arith.constant 7 : index
    %c2_488 = arith.constant 2 : index
    %261 = vector.load %arg1[%c0_485, %c0_486, %c7_487, %c2_488] : memref<1x4x18x18xf32, #tpu.memory_space<vmem>>, vector<1x4x1x16xf32>
    %262 = vector.shape_cast %261 : vector<1x4x1x16xf32> to vector<4x16xf32>
    %c20_489 = arith.constant 20 : index
    %c96_490 = arith.constant 96 : index
    %263 = vector.load %arg7[%c20_489, %c96_490] : memref<36x256xf32, #tpu.memory_space<vmem>>, vector<4x16xf32>
    tpu.vector_store %arg7[%c20_489, %c96_490], %262 {strides = array<i32>} : memref<36x256xf32, #tpu.memory_space<vmem>>, vector<4x16xf32>,
    %c0_491 = arith.constant 0 : index
    %c0_492 = arith.constant 0 : index
    %c8_493 = arith.constant 8 : index
    %c2_494 = arith.constant 2 : index
    %264 = vector.load %arg1[%c0_491, %c0_492, %c8_493, %c2_494] : memref<1x4x18x18xf32, #tpu.memory_space<vmem>>, vector<1x4x1x16xf32>
    %265 = vector.shape_cast %264 : vector<1x4x1x16xf32> to vector<4x16xf32>
    %c20_495 = arith.constant 20 : index
    %c112_496 = arith.constant 112 : index
    %266 = vector.load %arg7[%c20_495, %c112_496] : memref<36x256xf32, #tpu.memory_space<vmem>>, vector<4x16xf32>
    tpu.vector_store %arg7[%c20_495, %c112_496], %265 {strides = array<i32>} : memref<36x256xf32, #tpu.memory_space<vmem>>, vector<4x16xf32>,
    %c0_497 = arith.constant 0 : index
    %c0_498 = arith.constant 0 : index
    %c9_499 = arith.constant 9 : index
    %c2_500 = arith.constant 2 : index
    %267 = vector.load %arg1[%c0_497, %c0_498, %c9_499, %c2_500] : memref<1x4x18x18xf32, #tpu.memory_space<vmem>>, vector<1x4x1x16xf32>
    %268 = vector.shape_cast %267 : vector<1x4x1x16xf32> to vector<4x16xf32>
    %c20_501 = arith.constant 20 : index
    %c128_502 = arith.constant 128 : index
    %269 = vector.load %arg7[%c20_501, %c128_502] : memref<36x256xf32, #tpu.memory_space<vmem>>, vector<4x16xf32>
    tpu.vector_store %arg7[%c20_501, %c128_502], %268 {strides = array<i32>} : memref<36x256xf32, #tpu.memory_space<vmem>>, vector<4x16xf32>,
    %c0_503 = arith.constant 0 : index
    %c0_504 = arith.constant 0 : index
    %c10_505 = arith.constant 10 : index
    %c2_506 = arith.constant 2 : index
    %270 = vector.load %arg1[%c0_503, %c0_504, %c10_505, %c2_506] : memref<1x4x18x18xf32, #tpu.memory_space<vmem>>, vector<1x4x1x16xf32>
    %271 = vector.shape_cast %270 : vector<1x4x1x16xf32> to vector<4x16xf32>
    %c20_507 = arith.constant 20 : index
    %c144_508 = arith.constant 144 : index
    %272 = vector.load %arg7[%c20_507, %c144_508] : memref<36x256xf32, #tpu.memory_space<vmem>>, vector<4x16xf32>
    tpu.vector_store %arg7[%c20_507, %c144_508], %271 {strides = array<i32>} : memref<36x256xf32, #tpu.memory_space<vmem>>, vector<4x16xf32>,
    %c0_509 = arith.constant 0 : index
    %c0_510 = arith.constant 0 : index
    %c11_511 = arith.constant 11 : index
    %c2_512 = arith.constant 2 : index
    %273 = vector.load %arg1[%c0_509, %c0_510, %c11_511, %c2_512] : memref<1x4x18x18xf32, #tpu.memory_space<vmem>>, vector<1x4x1x16xf32>
    %274 = vector.shape_cast %273 : vector<1x4x1x16xf32> to vector<4x16xf32>
    %c20_513 = arith.constant 20 : index
    %c160_514 = arith.constant 160 : index
    %275 = vector.load %arg7[%c20_513, %c160_514] : memref<36x256xf32, #tpu.memory_space<vmem>>, vector<4x16xf32>
    tpu.vector_store %arg7[%c20_513, %c160_514], %274 {strides = array<i32>} : memref<36x256xf32, #tpu.memory_space<vmem>>, vector<4x16xf32>,
    %c0_515 = arith.constant 0 : index
    %c0_516 = arith.constant 0 : index
    %c12_517 = arith.constant 12 : index
    %c2_518 = arith.constant 2 : index
    %276 = vector.load %arg1[%c0_515, %c0_516, %c12_517, %c2_518] : memref<1x4x18x18xf32, #tpu.memory_space<vmem>>, vector<1x4x1x16xf32>
    %277 = vector.shape_cast %276 : vector<1x4x1x16xf32> to vector<4x16xf32>
    %c20_519 = arith.constant 20 : index
    %c176_520 = arith.constant 176 : index
    %278 = vector.load %arg7[%c20_519, %c176_520] : memref<36x256xf32, #tpu.memory_space<vmem>>, vector<4x16xf32>
    tpu.vector_store %arg7[%c20_519, %c176_520], %277 {strides = array<i32>} : memref<36x256xf32, #tpu.memory_space<vmem>>, vector<4x16xf32>,
    %c0_521 = arith.constant 0 : index
    %c0_522 = arith.constant 0 : index
    %c13_523 = arith.constant 13 : index
    %c2_524 = arith.constant 2 : index
    %279 = vector.load %arg1[%c0_521, %c0_522, %c13_523, %c2_524] : memref<1x4x18x18xf32, #tpu.memory_space<vmem>>, vector<1x4x1x16xf32>
    %280 = vector.shape_cast %279 : vector<1x4x1x16xf32> to vector<4x16xf32>
    %c20_525 = arith.constant 20 : index
    %c192_526 = arith.constant 192 : index
    %281 = vector.load %arg7[%c20_525, %c192_526] : memref<36x256xf32, #tpu.memory_space<vmem>>, vector<4x16xf32>
    tpu.vector_store %arg7[%c20_525, %c192_526], %280 {strides = array<i32>} : memref<36x256xf32, #tpu.memory_space<vmem>>, vector<4x16xf32>,
    %c0_527 = arith.constant 0 : index
    %c0_528 = arith.constant 0 : index
    %c14_529 = arith.constant 14 : index
    %c2_530 = arith.constant 2 : index
    %282 = vector.load %arg1[%c0_527, %c0_528, %c14_529, %c2_530] : memref<1x4x18x18xf32, #tpu.memory_space<vmem>>, vector<1x4x1x16xf32>
    %283 = vector.shape_cast %282 : vector<1x4x1x16xf32> to vector<4x16xf32>
    %c20_531 = arith.constant 20 : index
    %c208_532 = arith.constant 208 : index
    %284 = vector.load %arg7[%c20_531, %c208_532] : memref<36x256xf32, #tpu.memory_space<vmem>>, vector<4x16xf32>
    tpu.vector_store %arg7[%c20_531, %c208_532], %283 {strides = array<i32>} : memref<36x256xf32, #tpu.memory_space<vmem>>, vector<4x16xf32>,
    %c0_533 = arith.constant 0 : index
    %c0_534 = arith.constant 0 : index
    %c15_535 = arith.constant 15 : index
    %c2_536 = arith.constant 2 : index
    %285 = vector.load %arg1[%c0_533, %c0_534, %c15_535, %c2_536] : memref<1x4x18x18xf32, #tpu.memory_space<vmem>>, vector<1x4x1x16xf32>
    %286 = vector.shape_cast %285 : vector<1x4x1x16xf32> to vector<4x16xf32>
    %c20_537 = arith.constant 20 : index
    %c224_538 = arith.constant 224 : index
    %287 = vector.load %arg7[%c20_537, %c224_538] : memref<36x256xf32, #tpu.memory_space<vmem>>, vector<4x16xf32>
    tpu.vector_store %arg7[%c20_537, %c224_538], %286 {strides = array<i32>} : memref<36x256xf32, #tpu.memory_space<vmem>>, vector<4x16xf32>,
    %c0_539 = arith.constant 0 : index
    %c0_540 = arith.constant 0 : index
    %c16_541 = arith.constant 16 : index
    %c2_542 = arith.constant 2 : index
    %288 = vector.load %arg1[%c0_539, %c0_540, %c16_541, %c2_542] : memref<1x4x18x18xf32, #tpu.memory_space<vmem>>, vector<1x4x1x16xf32>
    %289 = vector.shape_cast %288 : vector<1x4x1x16xf32> to vector<4x16xf32>
    %c20_543 = arith.constant 20 : index
    %c240_544 = arith.constant 240 : index
    %290 = vector.load %arg7[%c20_543, %c240_544] : memref<36x256xf32, #tpu.memory_space<vmem>>, vector<4x16xf32>
    tpu.vector_store %arg7[%c20_543, %c240_544], %289 {strides = array<i32>} : memref<36x256xf32, #tpu.memory_space<vmem>>, vector<4x16xf32>,
    %c0_545 = arith.constant 0 : index
    %c0_546 = arith.constant 0 : index
    %c2_547 = arith.constant 2 : index
    %c0_548 = arith.constant 0 : index
    %291 = vector.load %arg1[%c0_545, %c0_546, %c2_547, %c0_548] : memref<1x4x18x18xf32, #tpu.memory_space<vmem>>, vector<1x4x1x16xf32>
    %292 = vector.shape_cast %291 : vector<1x4x1x16xf32> to vector<4x16xf32>
    %c24 = arith.constant 24 : index
    %c0_549 = arith.constant 0 : index
    %293 = vector.load %arg7[%c24, %c0_549] : memref<36x256xf32, #tpu.memory_space<vmem>>, vector<4x16xf32>
    tpu.vector_store %arg7[%c24, %c0_549], %292 {strides = array<i32>} : memref<36x256xf32, #tpu.memory_space<vmem>>, vector<4x16xf32>,
    %c0_550 = arith.constant 0 : index
    %c0_551 = arith.constant 0 : index
    %c3_552 = arith.constant 3 : index
    %c0_553 = arith.constant 0 : index
    %294 = vector.load %arg1[%c0_550, %c0_551, %c3_552, %c0_553] : memref<1x4x18x18xf32, #tpu.memory_space<vmem>>, vector<1x4x1x16xf32>
    %295 = vector.shape_cast %294 : vector<1x4x1x16xf32> to vector<4x16xf32>
    %c24_554 = arith.constant 24 : index
    %c16_555 = arith.constant 16 : index
    %296 = vector.load %arg7[%c24_554, %c16_555] : memref<36x256xf32, #tpu.memory_space<vmem>>, vector<4x16xf32>
    tpu.vector_store %arg7[%c24_554, %c16_555], %295 {strides = array<i32>} : memref<36x256xf32, #tpu.memory_space<vmem>>, vector<4x16xf32>,
    %c0_556 = arith.constant 0 : index
    %c0_557 = arith.constant 0 : index
    %c4_558 = arith.constant 4 : index
    %c0_559 = arith.constant 0 : index
    %297 = vector.load %arg1[%c0_556, %c0_557, %c4_558, %c0_559] : memref<1x4x18x18xf32, #tpu.memory_space<vmem>>, vector<1x4x1x16xf32>
    %298 = vector.shape_cast %297 : vector<1x4x1x16xf32> to vector<4x16xf32>
    %c24_560 = arith.constant 24 : index
    %c32_561 = arith.constant 32 : index
    %299 = vector.load %arg7[%c24_560, %c32_561] : memref<36x256xf32, #tpu.memory_space<vmem>>, vector<4x16xf32>
    tpu.vector_store %arg7[%c24_560, %c32_561], %298 {strides = array<i32>} : memref<36x256xf32, #tpu.memory_space<vmem>>, vector<4x16xf32>,
    %c0_562 = arith.constant 0 : index
    %c0_563 = arith.constant 0 : index
    %c5_564 = arith.constant 5 : index
    %c0_565 = arith.constant 0 : index
    %300 = vector.load %arg1[%c0_562, %c0_563, %c5_564, %c0_565] : memref<1x4x18x18xf32, #tpu.memory_space<vmem>>, vector<1x4x1x16xf32>
    %301 = vector.shape_cast %300 : vector<1x4x1x16xf32> to vector<4x16xf32>
    %c24_566 = arith.constant 24 : index
    %c48_567 = arith.constant 48 : index
    %302 = vector.load %arg7[%c24_566, %c48_567] : memref<36x256xf32, #tpu.memory_space<vmem>>, vector<4x16xf32>
    tpu.vector_store %arg7[%c24_566, %c48_567], %301 {strides = array<i32>} : memref<36x256xf32, #tpu.memory_space<vmem>>, vector<4x16xf32>,
    %c0_568 = arith.constant 0 : index
    %c0_569 = arith.constant 0 : index
    %c6_570 = arith.constant 6 : index
    %c0_571 = arith.constant 0 : index
    %303 = vector.load %arg1[%c0_568, %c0_569, %c6_570, %c0_571] : memref<1x4x18x18xf32, #tpu.memory_space<vmem>>, vector<1x4x1x16xf32>
    %304 = vector.shape_cast %303 : vector<1x4x1x16xf32> to vector<4x16xf32>
    %c24_572 = arith.constant 24 : index
    %c64_573 = arith.constant 64 : index
    %305 = vector.load %arg7[%c24_572, %c64_573] : memref<36x256xf32, #tpu.memory_space<vmem>>, vector<4x16xf32>
    tpu.vector_store %arg7[%c24_572, %c64_573], %304 {strides = array<i32>} : memref<36x256xf32, #tpu.memory_space<vmem>>, vector<4x16xf32>,
    %c0_574 = arith.constant 0 : index
    %c0_575 = arith.constant 0 : index
    %c7_576 = arith.constant 7 : index
    %c0_577 = arith.constant 0 : index
    %306 = vector.load %arg1[%c0_574, %c0_575, %c7_576, %c0_577] : memref<1x4x18x18xf32, #tpu.memory_space<vmem>>, vector<1x4x1x16xf32>
    %307 = vector.shape_cast %306 : vector<1x4x1x16xf32> to vector<4x16xf32>
    %c24_578 = arith.constant 24 : index
    %c80_579 = arith.constant 80 : index
    %308 = vector.load %arg7[%c24_578, %c80_579] : memref<36x256xf32, #tpu.memory_space<vmem>>, vector<4x16xf32>
    tpu.vector_store %arg7[%c24_578, %c80_579], %307 {strides = array<i32>} : memref<36x256xf32, #tpu.memory_space<vmem>>, vector<4x16xf32>,
    %c0_580 = arith.constant 0 : index
    %c0_581 = arith.constant 0 : index
    %c8_582 = arith.constant 8 : index
    %c0_583 = arith.constant 0 : index
    %309 = vector.load %arg1[%c0_580, %c0_581, %c8_582, %c0_583] : memref<1x4x18x18xf32, #tpu.memory_space<vmem>>, vector<1x4x1x16xf32>
    %310 = vector.shape_cast %309 : vector<1x4x1x16xf32> to vector<4x16xf32>
    %c24_584 = arith.constant 24 : index
    %c96_585 = arith.constant 96 : index
    %311 = vector.load %arg7[%c24_584, %c96_585] : memref<36x256xf32, #tpu.memory_space<vmem>>, vector<4x16xf32>
    tpu.vector_store %arg7[%c24_584, %c96_585], %310 {strides = array<i32>} : memref<36x256xf32, #tpu.memory_space<vmem>>, vector<4x16xf32>,
    %c0_586 = arith.constant 0 : index
    %c0_587 = arith.constant 0 : index
    %c9_588 = arith.constant 9 : index
    %c0_589 = arith.constant 0 : index
    %312 = vector.load %arg1[%c0_586, %c0_587, %c9_588, %c0_589] : memref<1x4x18x18xf32, #tpu.memory_space<vmem>>, vector<1x4x1x16xf32>
    %313 = vector.shape_cast %312 : vector<1x4x1x16xf32> to vector<4x16xf32>
    %c24_590 = arith.constant 24 : index
    %c112_591 = arith.constant 112 : index
    %314 = vector.load %arg7[%c24_590, %c112_591] : memref<36x256xf32, #tpu.memory_space<vmem>>, vector<4x16xf32>
    tpu.vector_store %arg7[%c24_590, %c112_591], %313 {strides = array<i32>} : memref<36x256xf32, #tpu.memory_space<vmem>>, vector<4x16xf32>,
    %c0_592 = arith.constant 0 : index
    %c0_593 = arith.constant 0 : index
    %c10_594 = arith.constant 10 : index
    %c0_595 = arith.constant 0 : index
    %315 = vector.load %arg1[%c0_592, %c0_593, %c10_594, %c0_595] : memref<1x4x18x18xf32, #tpu.memory_space<vmem>>, vector<1x4x1x16xf32>
    %316 = vector.shape_cast %315 : vector<1x4x1x16xf32> to vector<4x16xf32>
    %c24_596 = arith.constant 24 : index
    %c128_597 = arith.constant 128 : index
    %317 = vector.load %arg7[%c24_596, %c128_597] : memref<36x256xf32, #tpu.memory_space<vmem>>, vector<4x16xf32>
    tpu.vector_store %arg7[%c24_596, %c128_597], %316 {strides = array<i32>} : memref<36x256xf32, #tpu.memory_space<vmem>>, vector<4x16xf32>,
    %c0_598 = arith.constant 0 : index
    %c0_599 = arith.constant 0 : index
    %c11_600 = arith.constant 11 : index
    %c0_601 = arith.constant 0 : index
    %318 = vector.load %arg1[%c0_598, %c0_599, %c11_600, %c0_601] : memref<1x4x18x18xf32, #tpu.memory_space<vmem>>, vector<1x4x1x16xf32>
    %319 = vector.shape_cast %318 : vector<1x4x1x16xf32> to vector<4x16xf32>
    %c24_602 = arith.constant 24 : index
    %c144_603 = arith.constant 144 : index
    %320 = vector.load %arg7[%c24_602, %c144_603] : memref<36x256xf32, #tpu.memory_space<vmem>>, vector<4x16xf32>
    tpu.vector_store %arg7[%c24_602, %c144_603], %319 {strides = array<i32>} : memref<36x256xf32, #tpu.memory_space<vmem>>, vector<4x16xf32>,
    %c0_604 = arith.constant 0 : index
    %c0_605 = arith.constant 0 : index
    %c12_606 = arith.constant 12 : index
    %c0_607 = arith.constant 0 : index
    %321 = vector.load %arg1[%c0_604, %c0_605, %c12_606, %c0_607] : memref<1x4x18x18xf32, #tpu.memory_space<vmem>>, vector<1x4x1x16xf32>
    %322 = vector.shape_cast %321 : vector<1x4x1x16xf32> to vector<4x16xf32>
    %c24_608 = arith.constant 24 : index
    %c160_609 = arith.constant 160 : index
    %323 = vector.load %arg7[%c24_608, %c160_609] : memref<36x256xf32, #tpu.memory_space<vmem>>, vector<4x16xf32>
    tpu.vector_store %arg7[%c24_608, %c160_609], %322 {strides = array<i32>} : memref<36x256xf32, #tpu.memory_space<vmem>>, vector<4x16xf32>,
    %c0_610 = arith.constant 0 : index
    %c0_611 = arith.constant 0 : index
    %c13_612 = arith.constant 13 : index
    %c0_613 = arith.constant 0 : index
    %324 = vector.load %arg1[%c0_610, %c0_611, %c13_612, %c0_613] : memref<1x4x18x18xf32, #tpu.memory_space<vmem>>, vector<1x4x1x16xf32>
    %325 = vector.shape_cast %324 : vector<1x4x1x16xf32> to vector<4x16xf32>
    %c24_614 = arith.constant 24 : index
    %c176_615 = arith.constant 176 : index
    %326 = vector.load %arg7[%c24_614, %c176_615] : memref<36x256xf32, #tpu.memory_space<vmem>>, vector<4x16xf32>
    tpu.vector_store %arg7[%c24_614, %c176_615], %325 {strides = array<i32>} : memref<36x256xf32, #tpu.memory_space<vmem>>, vector<4x16xf32>,
    %c0_616 = arith.constant 0 : index
    %c0_617 = arith.constant 0 : index
    %c14_618 = arith.constant 14 : index
    %c0_619 = arith.constant 0 : index
    %327 = vector.load %arg1[%c0_616, %c0_617, %c14_618, %c0_619] : memref<1x4x18x18xf32, #tpu.memory_space<vmem>>, vector<1x4x1x16xf32>
    %328 = vector.shape_cast %327 : vector<1x4x1x16xf32> to vector<4x16xf32>
    %c24_620 = arith.constant 24 : index
    %c192_621 = arith.constant 192 : index
    %329 = vector.load %arg7[%c24_620, %c192_621] : memref<36x256xf32, #tpu.memory_space<vmem>>, vector<4x16xf32>
    tpu.vector_store %arg7[%c24_620, %c192_621], %328 {strides = array<i32>} : memref<36x256xf32, #tpu.memory_space<vmem>>, vector<4x16xf32>,
    %c0_622 = arith.constant 0 : index
    %c0_623 = arith.constant 0 : index
    %c15_624 = arith.constant 15 : index
    %c0_625 = arith.constant 0 : index
    %330 = vector.load %arg1[%c0_622, %c0_623, %c15_624, %c0_625] : memref<1x4x18x18xf32, #tpu.memory_space<vmem>>, vector<1x4x1x16xf32>
    %331 = vector.shape_cast %330 : vector<1x4x1x16xf32> to vector<4x16xf32>
    %c24_626 = arith.constant 24 : index
    %c208_627 = arith.constant 208 : index
    %332 = vector.load %arg7[%c24_626, %c208_627] : memref<36x256xf32, #tpu.memory_space<vmem>>, vector<4x16xf32>
    tpu.vector_store %arg7[%c24_626, %c208_627], %331 {strides = array<i32>} : memref<36x256xf32, #tpu.memory_space<vmem>>, vector<4x16xf32>,
    %c0_628 = arith.constant 0 : index
    %c0_629 = arith.constant 0 : index
    %c16_630 = arith.constant 16 : index
    %c0_631 = arith.constant 0 : index
    %333 = vector.load %arg1[%c0_628, %c0_629, %c16_630, %c0_631] : memref<1x4x18x18xf32, #tpu.memory_space<vmem>>, vector<1x4x1x16xf32>
    %334 = vector.shape_cast %333 : vector<1x4x1x16xf32> to vector<4x16xf32>
    %c24_632 = arith.constant 24 : index
    %c224_633 = arith.constant 224 : index
    %335 = vector.load %arg7[%c24_632, %c224_633] : memref<36x256xf32, #tpu.memory_space<vmem>>, vector<4x16xf32>
    tpu.vector_store %arg7[%c24_632, %c224_633], %334 {strides = array<i32>} : memref<36x256xf32, #tpu.memory_space<vmem>>, vector<4x16xf32>,
    %c0_634 = arith.constant 0 : index
    %c0_635 = arith.constant 0 : index
    %c17 = arith.constant 17 : index
    %c0_636 = arith.constant 0 : index
    %336 = vector.load %arg1[%c0_634, %c0_635, %c17, %c0_636] : memref<1x4x18x18xf32, #tpu.memory_space<vmem>>, vector<1x4x1x16xf32>
    %337 = vector.shape_cast %336 : vector<1x4x1x16xf32> to vector<4x16xf32>
    %c24_637 = arith.constant 24 : index
    %c240_638 = arith.constant 240 : index
    %338 = vector.load %arg7[%c24_637, %c240_638] : memref<36x256xf32, #tpu.memory_space<vmem>>, vector<4x16xf32>
    tpu.vector_store %arg7[%c24_637, %c240_638], %337 {strides = array<i32>} : memref<36x256xf32, #tpu.memory_space<vmem>>, vector<4x16xf32>,
    %c0_639 = arith.constant 0 : index
    %c0_640 = arith.constant 0 : index
    %c2_641 = arith.constant 2 : index
    %c1_642 = arith.constant 1 : index
    %339 = vector.load %arg1[%c0_639, %c0_640, %c2_641, %c1_642] : memref<1x4x18x18xf32, #tpu.memory_space<vmem>>, vector<1x4x1x16xf32>
    %340 = vector.shape_cast %339 : vector<1x4x1x16xf32> to vector<4x16xf32>
    %c28 = arith.constant 28 : index
    %c0_643 = arith.constant 0 : index
    %341 = vector.load %arg7[%c28, %c0_643] : memref<36x256xf32, #tpu.memory_space<vmem>>, vector<4x16xf32>
    tpu.vector_store %arg7[%c28, %c0_643], %340 {strides = array<i32>} : memref<36x256xf32, #tpu.memory_space<vmem>>, vector<4x16xf32>,
    %c0_644 = arith.constant 0 : index
    %c0_645 = arith.constant 0 : index
    %c3_646 = arith.constant 3 : index
    %c1_647 = arith.constant 1 : index
    %342 = vector.load %arg1[%c0_644, %c0_645, %c3_646, %c1_647] : memref<1x4x18x18xf32, #tpu.memory_space<vmem>>, vector<1x4x1x16xf32>
    %343 = vector.shape_cast %342 : vector<1x4x1x16xf32> to vector<4x16xf32>
    %c28_648 = arith.constant 28 : index
    %c16_649 = arith.constant 16 : index
    %344 = vector.load %arg7[%c28_648, %c16_649] : memref<36x256xf32, #tpu.memory_space<vmem>>, vector<4x16xf32>
    tpu.vector_store %arg7[%c28_648, %c16_649], %343 {strides = array<i32>} : memref<36x256xf32, #tpu.memory_space<vmem>>, vector<4x16xf32>,
    %c0_650 = arith.constant 0 : index
    %c0_651 = arith.constant 0 : index
    %c4_652 = arith.constant 4 : index
    %c1_653 = arith.constant 1 : index
    %345 = vector.load %arg1[%c0_650, %c0_651, %c4_652, %c1_653] : memref<1x4x18x18xf32, #tpu.memory_space<vmem>>, vector<1x4x1x16xf32>
    %346 = vector.shape_cast %345 : vector<1x4x1x16xf32> to vector<4x16xf32>
    %c28_654 = arith.constant 28 : index
    %c32_655 = arith.constant 32 : index
    %347 = vector.load %arg7[%c28_654, %c32_655] : memref<36x256xf32, #tpu.memory_space<vmem>>, vector<4x16xf32>
    tpu.vector_store %arg7[%c28_654, %c32_655], %346 {strides = array<i32>} : memref<36x256xf32, #tpu.memory_space<vmem>>, vector<4x16xf32>,
    %c0_656 = arith.constant 0 : index
    %c0_657 = arith.constant 0 : index
    %c5_658 = arith.constant 5 : index
    %c1_659 = arith.constant 1 : index
    %348 = vector.load %arg1[%c0_656, %c0_657, %c5_658, %c1_659] : memref<1x4x18x18xf32, #tpu.memory_space<vmem>>, vector<1x4x1x16xf32>
    %349 = vector.shape_cast %348 : vector<1x4x1x16xf32> to vector<4x16xf32>
    %c28_660 = arith.constant 28 : index
    %c48_661 = arith.constant 48 : index
    %350 = vector.load %arg7[%c28_660, %c48_661] : memref<36x256xf32, #tpu.memory_space<vmem>>, vector<4x16xf32>
    tpu.vector_store %arg7[%c28_660, %c48_661], %349 {strides = array<i32>} : memref<36x256xf32, #tpu.memory_space<vmem>>, vector<4x16xf32>,
    %c0_662 = arith.constant 0 : index
    %c0_663 = arith.constant 0 : index
    %c6_664 = arith.constant 6 : index
    %c1_665 = arith.constant 1 : index
    %351 = vector.load %arg1[%c0_662, %c0_663, %c6_664, %c1_665] : memref<1x4x18x18xf32, #tpu.memory_space<vmem>>, vector<1x4x1x16xf32>
    %352 = vector.shape_cast %351 : vector<1x4x1x16xf32> to vector<4x16xf32>
    %c28_666 = arith.constant 28 : index
    %c64_667 = arith.constant 64 : index
    %353 = vector.load %arg7[%c28_666, %c64_667] : memref<36x256xf32, #tpu.memory_space<vmem>>, vector<4x16xf32>
    tpu.vector_store %arg7[%c28_666, %c64_667], %352 {strides = array<i32>} : memref<36x256xf32, #tpu.memory_space<vmem>>, vector<4x16xf32>,
    %c0_668 = arith.constant 0 : index
    %c0_669 = arith.constant 0 : index
    %c7_670 = arith.constant 7 : index
    %c1_671 = arith.constant 1 : index
    %354 = vector.load %arg1[%c0_668, %c0_669, %c7_670, %c1_671] : memref<1x4x18x18xf32, #tpu.memory_space<vmem>>, vector<1x4x1x16xf32>
    %355 = vector.shape_cast %354 : vector<1x4x1x16xf32> to vector<4x16xf32>
    %c28_672 = arith.constant 28 : index
    %c80_673 = arith.constant 80 : index
    %356 = vector.load %arg7[%c28_672, %c80_673] : memref<36x256xf32, #tpu.memory_space<vmem>>, vector<4x16xf32>
    tpu.vector_store %arg7[%c28_672, %c80_673], %355 {strides = array<i32>} : memref<36x256xf32, #tpu.memory_space<vmem>>, vector<4x16xf32>,
    %c0_674 = arith.constant 0 : index
    %c0_675 = arith.constant 0 : index
    %c8_676 = arith.constant 8 : index
    %c1_677 = arith.constant 1 : index
    %357 = vector.load %arg1[%c0_674, %c0_675, %c8_676, %c1_677] : memref<1x4x18x18xf32, #tpu.memory_space<vmem>>, vector<1x4x1x16xf32>
    %358 = vector.shape_cast %357 : vector<1x4x1x16xf32> to vector<4x16xf32>
    %c28_678 = arith.constant 28 : index
    %c96_679 = arith.constant 96 : index
    %359 = vector.load %arg7[%c28_678, %c96_679] : memref<36x256xf32, #tpu.memory_space<vmem>>, vector<4x16xf32>
    tpu.vector_store %arg7[%c28_678, %c96_679], %358 {strides = array<i32>} : memref<36x256xf32, #tpu.memory_space<vmem>>, vector<4x16xf32>,
    %c0_680 = arith.constant 0 : index
    %c0_681 = arith.constant 0 : index
    %c9_682 = arith.constant 9 : index
    %c1_683 = arith.constant 1 : index
    %360 = vector.load %arg1[%c0_680, %c0_681, %c9_682, %c1_683] : memref<1x4x18x18xf32, #tpu.memory_space<vmem>>, vector<1x4x1x16xf32>
    %361 = vector.shape_cast %360 : vector<1x4x1x16xf32> to vector<4x16xf32>
    %c28_684 = arith.constant 28 : index
    %c112_685 = arith.constant 112 : index
    %362 = vector.load %arg7[%c28_684, %c112_685] : memref<36x256xf32, #tpu.memory_space<vmem>>, vector<4x16xf32>
    tpu.vector_store %arg7[%c28_684, %c112_685], %361 {strides = array<i32>} : memref<36x256xf32, #tpu.memory_space<vmem>>, vector<4x16xf32>,
    %c0_686 = arith.constant 0 : index
    %c0_687 = arith.constant 0 : index
    %c10_688 = arith.constant 10 : index
    %c1_689 = arith.constant 1 : index
    %363 = vector.load %arg1[%c0_686, %c0_687, %c10_688, %c1_689] : memref<1x4x18x18xf32, #tpu.memory_space<vmem>>, vector<1x4x1x16xf32>
    %364 = vector.shape_cast %363 : vector<1x4x1x16xf32> to vector<4x16xf32>
    %c28_690 = arith.constant 28 : index
    %c128_691 = arith.constant 128 : index
    %365 = vector.load %arg7[%c28_690, %c128_691] : memref<36x256xf32, #tpu.memory_space<vmem>>, vector<4x16xf32>
    tpu.vector_store %arg7[%c28_690, %c128_691], %364 {strides = array<i32>} : memref<36x256xf32, #tpu.memory_space<vmem>>, vector<4x16xf32>,
    %c0_692 = arith.constant 0 : index
    %c0_693 = arith.constant 0 : index
    %c11_694 = arith.constant 11 : index
    %c1_695 = arith.constant 1 : index
    %366 = vector.load %arg1[%c0_692, %c0_693, %c11_694, %c1_695] : memref<1x4x18x18xf32, #tpu.memory_space<vmem>>, vector<1x4x1x16xf32>
    %367 = vector.shape_cast %366 : vector<1x4x1x16xf32> to vector<4x16xf32>
    %c28_696 = arith.constant 28 : index
    %c144_697 = arith.constant 144 : index
    %368 = vector.load %arg7[%c28_696, %c144_697] : memref<36x256xf32, #tpu.memory_space<vmem>>, vector<4x16xf32>
    tpu.vector_store %arg7[%c28_696, %c144_697], %367 {strides = array<i32>} : memref<36x256xf32, #tpu.memory_space<vmem>>, vector<4x16xf32>,
    %c0_698 = arith.constant 0 : index
    %c0_699 = arith.constant 0 : index
    %c12_700 = arith.constant 12 : index
    %c1_701 = arith.constant 1 : index
    %369 = vector.load %arg1[%c0_698, %c0_699, %c12_700, %c1_701] : memref<1x4x18x18xf32, #tpu.memory_space<vmem>>, vector<1x4x1x16xf32>
    %370 = vector.shape_cast %369 : vector<1x4x1x16xf32> to vector<4x16xf32>
    %c28_702 = arith.constant 28 : index
    %c160_703 = arith.constant 160 : index
    %371 = vector.load %arg7[%c28_702, %c160_703] : memref<36x256xf32, #tpu.memory_space<vmem>>, vector<4x16xf32>
    tpu.vector_store %arg7[%c28_702, %c160_703], %370 {strides = array<i32>} : memref<36x256xf32, #tpu.memory_space<vmem>>, vector<4x16xf32>,
    %c0_704 = arith.constant 0 : index
    %c0_705 = arith.constant 0 : index
    %c13_706 = arith.constant 13 : index
    %c1_707 = arith.constant 1 : index
    %372 = vector.load %arg1[%c0_704, %c0_705, %c13_706, %c1_707] : memref<1x4x18x18xf32, #tpu.memory_space<vmem>>, vector<1x4x1x16xf32>
    %373 = vector.shape_cast %372 : vector<1x4x1x16xf32> to vector<4x16xf32>
    %c28_708 = arith.constant 28 : index
    %c176_709 = arith.constant 176 : index
    %374 = vector.load %arg7[%c28_708, %c176_709] : memref<36x256xf32, #tpu.memory_space<vmem>>, vector<4x16xf32>
    tpu.vector_store %arg7[%c28_708, %c176_709], %373 {strides = array<i32>} : memref<36x256xf32, #tpu.memory_space<vmem>>, vector<4x16xf32>,
    %c0_710 = arith.constant 0 : index
    %c0_711 = arith.constant 0 : index
    %c14_712 = arith.constant 14 : index
    %c1_713 = arith.constant 1 : index
    %375 = vector.load %arg1[%c0_710, %c0_711, %c14_712, %c1_713] : memref<1x4x18x18xf32, #tpu.memory_space<vmem>>, vector<1x4x1x16xf32>
    %376 = vector.shape_cast %375 : vector<1x4x1x16xf32> to vector<4x16xf32>
    %c28_714 = arith.constant 28 : index
    %c192_715 = arith.constant 192 : index
    %377 = vector.load %arg7[%c28_714, %c192_715] : memref<36x256xf32, #tpu.memory_space<vmem>>, vector<4x16xf32>
    tpu.vector_store %arg7[%c28_714, %c192_715], %376 {strides = array<i32>} : memref<36x256xf32, #tpu.memory_space<vmem>>, vector<4x16xf32>,
    %c0_716 = arith.constant 0 : index
    %c0_717 = arith.constant 0 : index
    %c15_718 = arith.constant 15 : index
    %c1_719 = arith.constant 1 : index
    %378 = vector.load %arg1[%c0_716, %c0_717, %c15_718, %c1_719] : memref<1x4x18x18xf32, #tpu.memory_space<vmem>>, vector<1x4x1x16xf32>
    %379 = vector.shape_cast %378 : vector<1x4x1x16xf32> to vector<4x16xf32>
    %c28_720 = arith.constant 28 : index
    %c208_721 = arith.constant 208 : index
    %380 = vector.load %arg7[%c28_720, %c208_721] : memref<36x256xf32, #tpu.memory_space<vmem>>, vector<4x16xf32>
    tpu.vector_store %arg7[%c28_720, %c208_721], %379 {strides = array<i32>} : memref<36x256xf32, #tpu.memory_space<vmem>>, vector<4x16xf32>,
    %c0_722 = arith.constant 0 : index
    %c0_723 = arith.constant 0 : index
    %c16_724 = arith.constant 16 : index
    %c1_725 = arith.constant 1 : index
    %381 = vector.load %arg1[%c0_722, %c0_723, %c16_724, %c1_725] : memref<1x4x18x18xf32, #tpu.memory_space<vmem>>, vector<1x4x1x16xf32>
    %382 = vector.shape_cast %381 : vector<1x4x1x16xf32> to vector<4x16xf32>
    %c28_726 = arith.constant 28 : index
    %c224_727 = arith.constant 224 : index
    %383 = vector.load %arg7[%c28_726, %c224_727] : memref<36x256xf32, #tpu.memory_space<vmem>>, vector<4x16xf32>
    tpu.vector_store %arg7[%c28_726, %c224_727], %382 {strides = array<i32>} : memref<36x256xf32, #tpu.memory_space<vmem>>, vector<4x16xf32>,
    %c0_728 = arith.constant 0 : index
    %c0_729 = arith.constant 0 : index
    %c17_730 = arith.constant 17 : index
    %c1_731 = arith.constant 1 : index
    %384 = vector.load %arg1[%c0_728, %c0_729, %c17_730, %c1_731] : memref<1x4x18x18xf32, #tpu.memory_space<vmem>>, vector<1x4x1x16xf32>
    %385 = vector.shape_cast %384 : vector<1x4x1x16xf32> to vector<4x16xf32>
    %c28_732 = arith.constant 28 : index
    %c240_733 = arith.constant 240 : index
    %386 = vector.load %arg7[%c28_732, %c240_733] : memref<36x256xf32, #tpu.memory_space<vmem>>, vector<4x16xf32>
    tpu.vector_store %arg7[%c28_732, %c240_733], %385 {strides = array<i32>} : memref<36x256xf32, #tpu.memory_space<vmem>>, vector<4x16xf32>,
    %c0_734 = arith.constant 0 : index
    %c0_735 = arith.constant 0 : index
    %c2_736 = arith.constant 2 : index
    %c2_737 = arith.constant 2 : index
    %387 = vector.load %arg1[%c0_734, %c0_735, %c2_736, %c2_737] : memref<1x4x18x18xf32, #tpu.memory_space<vmem>>, vector<1x4x1x16xf32>
    %388 = vector.shape_cast %387 : vector<1x4x1x16xf32> to vector<4x16xf32>
    %c32_738 = arith.constant 32 : index
    %c0_739 = arith.constant 0 : index
    %389 = vector.load %arg7[%c32_738, %c0_739] : memref<36x256xf32, #tpu.memory_space<vmem>>, vector<4x16xf32>
    tpu.vector_store %arg7[%c32_738, %c0_739], %388 {strides = array<i32>} : memref<36x256xf32, #tpu.memory_space<vmem>>, vector<4x16xf32>,
    %c0_740 = arith.constant 0 : index
    %c0_741 = arith.constant 0 : index
    %c3_742 = arith.constant 3 : index
    %c2_743 = arith.constant 2 : index
    %390 = vector.load %arg1[%c0_740, %c0_741, %c3_742, %c2_743] : memref<1x4x18x18xf32, #tpu.memory_space<vmem>>, vector<1x4x1x16xf32>
    %391 = vector.shape_cast %390 : vector<1x4x1x16xf32> to vector<4x16xf32>
    %c32_744 = arith.constant 32 : index
    %c16_745 = arith.constant 16 : index
    %392 = vector.load %arg7[%c32_744, %c16_745] : memref<36x256xf32, #tpu.memory_space<vmem>>, vector<4x16xf32>
    tpu.vector_store %arg7[%c32_744, %c16_745], %391 {strides = array<i32>} : memref<36x256xf32, #tpu.memory_space<vmem>>, vector<4x16xf32>,
    %c0_746 = arith.constant 0 : index
    %c0_747 = arith.constant 0 : index
    %c4_748 = arith.constant 4 : index
    %c2_749 = arith.constant 2 : index
    %393 = vector.load %arg1[%c0_746, %c0_747, %c4_748, %c2_749] : memref<1x4x18x18xf32, #tpu.memory_space<vmem>>, vector<1x4x1x16xf32>
    %394 = vector.shape_cast %393 : vector<1x4x1x16xf32> to vector<4x16xf32>
    %c32_750 = arith.constant 32 : index
    %c32_751 = arith.constant 32 : index
    %395 = vector.load %arg7[%c32_750, %c32_751] : memref<36x256xf32, #tpu.memory_space<vmem>>, vector<4x16xf32>
    tpu.vector_store %arg7[%c32_750, %c32_751], %394 {strides = array<i32>} : memref<36x256xf32, #tpu.memory_space<vmem>>, vector<4x16xf32>,
    %c0_752 = arith.constant 0 : index
    %c0_753 = arith.constant 0 : index
    %c5_754 = arith.constant 5 : index
    %c2_755 = arith.constant 2 : index
    %396 = vector.load %arg1[%c0_752, %c0_753, %c5_754, %c2_755] : memref<1x4x18x18xf32, #tpu.memory_space<vmem>>, vector<1x4x1x16xf32>
    %397 = vector.shape_cast %396 : vector<1x4x1x16xf32> to vector<4x16xf32>
    %c32_756 = arith.constant 32 : index
    %c48_757 = arith.constant 48 : index
    %398 = vector.load %arg7[%c32_756, %c48_757] : memref<36x256xf32, #tpu.memory_space<vmem>>, vector<4x16xf32>
    tpu.vector_store %arg7[%c32_756, %c48_757], %397 {strides = array<i32>} : memref<36x256xf32, #tpu.memory_space<vmem>>, vector<4x16xf32>,
    %c0_758 = arith.constant 0 : index
    %c0_759 = arith.constant 0 : index
    %c6_760 = arith.constant 6 : index
    %c2_761 = arith.constant 2 : index
    %399 = vector.load %arg1[%c0_758, %c0_759, %c6_760, %c2_761] : memref<1x4x18x18xf32, #tpu.memory_space<vmem>>, vector<1x4x1x16xf32>
    %400 = vector.shape_cast %399 : vector<1x4x1x16xf32> to vector<4x16xf32>
    %c32_762 = arith.constant 32 : index
    %c64_763 = arith.constant 64 : index
    %401 = vector.load %arg7[%c32_762, %c64_763] : memref<36x256xf32, #tpu.memory_space<vmem>>, vector<4x16xf32>
    tpu.vector_store %arg7[%c32_762, %c64_763], %400 {strides = array<i32>} : memref<36x256xf32, #tpu.memory_space<vmem>>, vector<4x16xf32>,
    %c0_764 = arith.constant 0 : index
    %c0_765 = arith.constant 0 : index
    %c7_766 = arith.constant 7 : index
    %c2_767 = arith.constant 2 : index
    %402 = vector.load %arg1[%c0_764, %c0_765, %c7_766, %c2_767] : memref<1x4x18x18xf32, #tpu.memory_space<vmem>>, vector<1x4x1x16xf32>
    %403 = vector.shape_cast %402 : vector<1x4x1x16xf32> to vector<4x16xf32>
    %c32_768 = arith.constant 32 : index
    %c80_769 = arith.constant 80 : index
    %404 = vector.load %arg7[%c32_768, %c80_769] : memref<36x256xf32, #tpu.memory_space<vmem>>, vector<4x16xf32>
    tpu.vector_store %arg7[%c32_768, %c80_769], %403 {strides = array<i32>} : memref<36x256xf32, #tpu.memory_space<vmem>>, vector<4x16xf32>,
    %c0_770 = arith.constant 0 : index
    %c0_771 = arith.constant 0 : index
    %c8_772 = arith.constant 8 : index
    %c2_773 = arith.constant 2 : index
    %405 = vector.load %arg1[%c0_770, %c0_771, %c8_772, %c2_773] : memref<1x4x18x18xf32, #tpu.memory_space<vmem>>, vector<1x4x1x16xf32>
    %406 = vector.shape_cast %405 : vector<1x4x1x16xf32> to vector<4x16xf32>
    %c32_774 = arith.constant 32 : index
    %c96_775 = arith.constant 96 : index
    %407 = vector.load %arg7[%c32_774, %c96_775] : memref<36x256xf32, #tpu.memory_space<vmem>>, vector<4x16xf32>
    tpu.vector_store %arg7[%c32_774, %c96_775], %406 {strides = array<i32>} : memref<36x256xf32, #tpu.memory_space<vmem>>, vector<4x16xf32>,
    %c0_776 = arith.constant 0 : index
    %c0_777 = arith.constant 0 : index
    %c9_778 = arith.constant 9 : index
    %c2_779 = arith.constant 2 : index
    %408 = vector.load %arg1[%c0_776, %c0_777, %c9_778, %c2_779] : memref<1x4x18x18xf32, #tpu.memory_space<vmem>>, vector<1x4x1x16xf32>
    %409 = vector.shape_cast %408 : vector<1x4x1x16xf32> to vector<4x16xf32>
    %c32_780 = arith.constant 32 : index
    %c112_781 = arith.constant 112 : index
    %410 = vector.load %arg7[%c32_780, %c112_781] : memref<36x256xf32, #tpu.memory_space<vmem>>, vector<4x16xf32>
    tpu.vector_store %arg7[%c32_780, %c112_781], %409 {strides = array<i32>} : memref<36x256xf32, #tpu.memory_space<vmem>>, vector<4x16xf32>,
    %c0_782 = arith.constant 0 : index
    %c0_783 = arith.constant 0 : index
    %c10_784 = arith.constant 10 : index
    %c2_785 = arith.constant 2 : index
    %411 = vector.load %arg1[%c0_782, %c0_783, %c10_784, %c2_785] : memref<1x4x18x18xf32, #tpu.memory_space<vmem>>, vector<1x4x1x16xf32>
    %412 = vector.shape_cast %411 : vector<1x4x1x16xf32> to vector<4x16xf32>
    %c32_786 = arith.constant 32 : index
    %c128_787 = arith.constant 128 : index
    %413 = vector.load %arg7[%c32_786, %c128_787] : memref<36x256xf32, #tpu.memory_space<vmem>>, vector<4x16xf32>
    tpu.vector_store %arg7[%c32_786, %c128_787], %412 {strides = array<i32>} : memref<36x256xf32, #tpu.memory_space<vmem>>, vector<4x16xf32>,
    %c0_788 = arith.constant 0 : index
    %c0_789 = arith.constant 0 : index
    %c11_790 = arith.constant 11 : index
    %c2_791 = arith.constant 2 : index
    %414 = vector.load %arg1[%c0_788, %c0_789, %c11_790, %c2_791] : memref<1x4x18x18xf32, #tpu.memory_space<vmem>>, vector<1x4x1x16xf32>
    %415 = vector.shape_cast %414 : vector<1x4x1x16xf32> to vector<4x16xf32>
    %c32_792 = arith.constant 32 : index
    %c144_793 = arith.constant 144 : index
    %416 = vector.load %arg7[%c32_792, %c144_793] : memref<36x256xf32, #tpu.memory_space<vmem>>, vector<4x16xf32>
    tpu.vector_store %arg7[%c32_792, %c144_793], %415 {strides = array<i32>} : memref<36x256xf32, #tpu.memory_space<vmem>>, vector<4x16xf32>,
    %c0_794 = arith.constant 0 : index
    %c0_795 = arith.constant 0 : index
    %c12_796 = arith.constant 12 : index
    %c2_797 = arith.constant 2 : index
    %417 = vector.load %arg1[%c0_794, %c0_795, %c12_796, %c2_797] : memref<1x4x18x18xf32, #tpu.memory_space<vmem>>, vector<1x4x1x16xf32>
    %418 = vector.shape_cast %417 : vector<1x4x1x16xf32> to vector<4x16xf32>
    %c32_798 = arith.constant 32 : index
    %c160_799 = arith.constant 160 : index
    %419 = vector.load %arg7[%c32_798, %c160_799] : memref<36x256xf32, #tpu.memory_space<vmem>>, vector<4x16xf32>
    tpu.vector_store %arg7[%c32_798, %c160_799], %418 {strides = array<i32>} : memref<36x256xf32, #tpu.memory_space<vmem>>, vector<4x16xf32>,
    %c0_800 = arith.constant 0 : index
    %c0_801 = arith.constant 0 : index
    %c13_802 = arith.constant 13 : index
    %c2_803 = arith.constant 2 : index
    %420 = vector.load %arg1[%c0_800, %c0_801, %c13_802, %c2_803] : memref<1x4x18x18xf32, #tpu.memory_space<vmem>>, vector<1x4x1x16xf32>
    %421 = vector.shape_cast %420 : vector<1x4x1x16xf32> to vector<4x16xf32>
    %c32_804 = arith.constant 32 : index
    %c176_805 = arith.constant 176 : index
    %422 = vector.load %arg7[%c32_804, %c176_805] : memref<36x256xf32, #tpu.memory_space<vmem>>, vector<4x16xf32>
    tpu.vector_store %arg7[%c32_804, %c176_805], %421 {strides = array<i32>} : memref<36x256xf32, #tpu.memory_space<vmem>>, vector<4x16xf32>,
    %c0_806 = arith.constant 0 : index
    %c0_807 = arith.constant 0 : index
    %c14_808 = arith.constant 14 : index
    %c2_809 = arith.constant 2 : index
    %423 = vector.load %arg1[%c0_806, %c0_807, %c14_808, %c2_809] : memref<1x4x18x18xf32, #tpu.memory_space<vmem>>, vector<1x4x1x16xf32>
    %424 = vector.shape_cast %423 : vector<1x4x1x16xf32> to vector<4x16xf32>
    %c32_810 = arith.constant 32 : index
    %c192_811 = arith.constant 192 : index
    %425 = vector.load %arg7[%c32_810, %c192_811] : memref<36x256xf32, #tpu.memory_space<vmem>>, vector<4x16xf32>
    tpu.vector_store %arg7[%c32_810, %c192_811], %424 {strides = array<i32>} : memref<36x256xf32, #tpu.memory_space<vmem>>, vector<4x16xf32>,
    %c0_812 = arith.constant 0 : index
    %c0_813 = arith.constant 0 : index
    %c15_814 = arith.constant 15 : index
    %c2_815 = arith.constant 2 : index
    %426 = vector.load %arg1[%c0_812, %c0_813, %c15_814, %c2_815] : memref<1x4x18x18xf32, #tpu.memory_space<vmem>>, vector<1x4x1x16xf32>
    %427 = vector.shape_cast %426 : vector<1x4x1x16xf32> to vector<4x16xf32>
    %c32_816 = arith.constant 32 : index
    %c208_817 = arith.constant 208 : index
    %428 = vector.load %arg7[%c32_816, %c208_817] : memref<36x256xf32, #tpu.memory_space<vmem>>, vector<4x16xf32>
    tpu.vector_store %arg7[%c32_816, %c208_817], %427 {strides = array<i32>} : memref<36x256xf32, #tpu.memory_space<vmem>>, vector<4x16xf32>,
    %c0_818 = arith.constant 0 : index
    %c0_819 = arith.constant 0 : index
    %c16_820 = arith.constant 16 : index
    %c2_821 = arith.constant 2 : index
    %429 = vector.load %arg1[%c0_818, %c0_819, %c16_820, %c2_821] : memref<1x4x18x18xf32, #tpu.memory_space<vmem>>, vector<1x4x1x16xf32>
    %430 = vector.shape_cast %429 : vector<1x4x1x16xf32> to vector<4x16xf32>
    %c32_822 = arith.constant 32 : index
    %c224_823 = arith.constant 224 : index
    %431 = vector.load %arg7[%c32_822, %c224_823] : memref<36x256xf32, #tpu.memory_space<vmem>>, vector<4x16xf32>
    tpu.vector_store %arg7[%c32_822, %c224_823], %430 {strides = array<i32>} : memref<36x256xf32, #tpu.memory_space<vmem>>, vector<4x16xf32>,
    %c0_824 = arith.constant 0 : index
    %c0_825 = arith.constant 0 : index
    %c17_826 = arith.constant 17 : index
    %c2_827 = arith.constant 2 : index
    %432 = vector.load %arg1[%c0_824, %c0_825, %c17_826, %c2_827] : memref<1x4x18x18xf32, #tpu.memory_space<vmem>>, vector<1x4x1x16xf32>
    %433 = vector.shape_cast %432 : vector<1x4x1x16xf32> to vector<4x16xf32>
    %c32_828 = arith.constant 32 : index
    %c240_829 = arith.constant 240 : index
    %434 = vector.load %arg7[%c32_828, %c240_829] : memref<36x256xf32, #tpu.memory_space<vmem>>, vector<4x16xf32>
    tpu.vector_store %arg7[%c32_828, %c240_829], %433 {strides = array<i32>} : memref<36x256xf32, #tpu.memory_space<vmem>>, vector<4x16xf32>,
    %c0_830 = arith.constant 0 : index
    %c0_831 = arith.constant 0 : index
    %435 = vector.load %arg2[%c0_830, %c0_831] : memref<2x36xf32, #tpu.memory_space<vmem>>, vector<2x36xf32>
    %c0_832 = arith.constant 0 : index
    %c0_833 = arith.constant 0 : index
    %436 = vector.load %arg7[%c0_832, %c0_833] : memref<36x256xf32, #tpu.memory_space<vmem>>, vector<36x256xf32>
    %cst = arith.constant dense<0.000000e+00> : vector<2x256xf32>
    %437 = tpu.matmul %435, %436, %cst {dimension_numbers = #tpu.dot_dimension_numbers<[1], [0], [0], [1], [0, 0, 1, 1], [], []>} : vector<2x36xf32>, vector<36x256xf32>, vector<2x256xf32> -> vector<2x256xf32>
    %c0_834 = arith.constant 0 : index
    %c0_835 = arith.constant 0 : index
    %438 = vector.load %arg8[%c0_834, %c0_835] : memref<2x1xf32, #tpu.memory_space<vmem>>, vector<2x1xf32>
    %cst_836 = arith.constant dense<0.000000e+00> : vector<2xf32>
    %439 = vector.multi_reduction <add>, %437, %cst_836 [1] : vector<2x256xf32> to vector<2xf32>
    %440 = vector.shape_cast %439 : vector<2xf32> to vector<2x1xf32>
    %441 = arith.addf %438, %440 : vector<2x1xf32>
    %c0_837 = arith.constant 0 : index
    %c0_838 = arith.constant 0 : index
    %442 = vector.load %arg8[%c0_837, %c0_838] : memref<2x1xf32, #tpu.memory_space<vmem>>, vector<2x1xf32>
    tpu.vector_store %arg8[%c0_837, %c0_838], %441 {strides = array<i32>} : memref<2x1xf32, #tpu.memory_space<vmem>>, vector<2x1xf32>,
    %c0_839 = arith.constant 0 : index
    %c0_840 = arith.constant 0 : index
    %443 = vector.load %arg9[%c0_839, %c0_840] : memref<2x1xf32, #tpu.memory_space<vmem>>, vector<2x1xf32>
    %444 = arith.mulf %437, %437 : vector<2x256xf32>
    %cst_841 = arith.constant dense<0.000000e+00> : vector<2xf32>
    %445 = vector.multi_reduction <add>, %444, %cst_841 [1] : vector<2x256xf32> to vector<2xf32>
    %446 = vector.shape_cast %445 : vector<2xf32> to vector<2x1xf32>
    %447 = arith.addf %443, %446 : vector<2x1xf32>
    %c0_842 = arith.constant 0 : index
    %c0_843 = arith.constant 0 : index
    %448 = vector.load %arg9[%c0_842, %c0_843] : memref<2x1xf32, #tpu.memory_space<vmem>>, vector<2x1xf32>
    tpu.vector_store %arg9[%c0_842, %c0_843], %447 {strides = array<i32>} : memref<2x1xf32, #tpu.memory_space<vmem>>, vector<2x1xf32>,
    %c1_i32 = arith.constant 1 : i32
    %449 = arith.cmpi eq, %arg0, %c1_i32 : i32
    %450 = arith.extui %449 : i1 to i32
    %c0_i32_844 = arith.constant 0 : i32
    %451 = arith.cmpi ne, %450, %c0_i32_844 : i32
    scf.if %451 {
      %c0_845 = arith.constant 0 : index
      %c0_846 = arith.constant 0 : index
      %452 = vector.load %arg8[%c0_845, %c0_846] : memref<2x1xf32, #tpu.memory_space<vmem>>, vector<2x1xf32>
      %cst_847 = arith.constant 0.001953125 : f32
      %453 = vector.broadcast %cst_847 : f32 to vector<2x1xf32>
      %454 = arith.mulf %452, %453 : vector<2x1xf32>
      %c0_848 = arith.constant 0 : index
      %c0_849 = arith.constant 0 : index
      %455 = vector.load %arg9[%c0_848, %c0_849] : memref<2x1xf32, #tpu.memory_space<vmem>>, vector<2x1xf32>
      %cst_850 = arith.constant 0.001953125 : f32
      %456 = vector.broadcast %cst_850 : f32 to vector<2x1xf32>
      %457 = arith.mulf %455, %456 : vector<2x1xf32>
      %458 = arith.mulf %454, %454 : vector<2x1xf32>
      %459 = arith.subf %457, %458 : vector<2x1xf32>
      %cst_851 = arith.constant 9.99999974E-6 : f32
      %460 = vector.broadcast %cst_851 : f32 to vector<2x1xf32>
      %461 = arith.addf %459, %460 : vector<2x1xf32>
      %462 = math.rsqrt %461 : vector<2x1xf32>
      %c0_852 = arith.constant 0 : index
      %c0_853 = arith.constant 0 : index
      %463 = vector.load %arg3[%c0_852, %c0_853] : memref<2x4xf32, #tpu.memory_space<vmem>>, vector<2x4xf32>
      %464 = vector.broadcast %462 : vector<2x1xf32> to vector<2x4xf32>
      %465 = arith.mulf %463, %464 : vector<2x4xf32>
      %c0_854 = arith.constant 0 : index
      %c0_855 = arith.constant 0 : index
      %466 = vector.load %arg4[%c0_854, %c0_855] : memref<2x4xf32, #tpu.memory_space<vmem>>, vector<2x4xf32>
      %467 = vector.broadcast %454 : vector<2x1xf32> to vector<2x4xf32>
      %468 = arith.mulf %467, %465 : vector<2x4xf32>
      %469 = arith.subf %466, %468 : vector<2x4xf32>
      %c0_856 = arith.constant 0 : index
      %c0_857 = arith.constant 0 : index
      %470 = vector.load %arg5[%c0_856, %c0_857] : memref<2x4xf32, #tpu.memory_space<vmem>>, vector<2x4xf32>
      tpu.vector_store %arg5[%c0_856, %c0_857], %465 {strides = array<i32>} : memref<2x4xf32, #tpu.memory_space<vmem>>, vector<2x4xf32>,
      %c0_858 = arith.constant 0 : index
      %c0_859 = arith.constant 0 : index
      %471 = vector.load %arg6[%c0_858, %c0_859] : memref<2x4xf32, #tpu.memory_space<vmem>>, vector<2x4xf32>
      tpu.vector_store %arg6[%c0_858, %c0_859], %469 {strides = array<i32>} : memref<2x4xf32, #tpu.memory_space<vmem>>, vector<2x4xf32>,
    } else {
    }
    return
  }
  func.func @transform_0(%arg0: i32) -> (i32, i32, i32, i32) {
    %c0_i32 = arith.constant 0 : i32
    %c0_i32_0 = arith.constant 0 : i32
    %c0_i32_1 = arith.constant 0 : i32
    %c0_i32_2 = arith.constant 0 : i32
    return %arg0, %c0_i32, %c0_i32_0, %c0_i32_1 : i32, i32, i32, i32
  }
  func.func @transform_1(%arg0: i32) -> (i32, i32) {
    %c0_i32 = arith.constant 0 : i32
    %c0_i32_0 = arith.constant 0 : i32
    %c0_i32_1 = arith.constant 0 : i32
    return %c0_i32, %c0_i32_0 : i32, i32
  }
  func.func @transform_2(%arg0: i32) -> (i32, i32) {
    %c0_i32 = arith.constant 0 : i32
    %c0_i32_0 = arith.constant 0 : i32
    %c0_i32_1 = arith.constant 0 : i32
    return %c0_i32, %c0_i32_0 : i32, i32
  }
  func.func @transform_3(%arg0: i32) -> (i32, i32) {
    %c0_i32 = arith.constant 0 : i32
    %c0_i32_0 = arith.constant 0 : i32
    %c0_i32_1 = arith.constant 0 : i32
    return %c0_i32, %c0_i32_0 : i32, i32
  }
  func.func @transform_4(%arg0: i32) -> (i32, i32) {
    %c0_i32 = arith.constant 0 : i32
    %c0_i32_0 = arith.constant 0 : i32
    %c0_i32_1 = arith.constant 0 : i32
    return %c0_i32, %c0_i32_0 : i32, i32
  }
  func.func @transform_5(%arg0: i32) -> (i32, i32) {
    %c0_i32 = arith.constant 0 : i32
    %c0_i32_0 = arith.constant 0 : i32
    %c0_i32_1 = arith.constant 0 : i32
    return %c0_i32, %c0_i32_0 : i32, i32
  }
}

</mosaic_0001>

<bundles_post_ra>
// kernel: tpu_custom_call.1
= control target key start
LH: loop header
LB: loop body
LE: loop exit
PB: predicated region body
PF: predicated region fallthrough
CT: control target
= control target key end

     0   :  { %11 = vsyncpa [#allocation6], 0  ;;  %s4708_s0 = inlined_call_operand.vmem [shape: f32[2,4,18,18], index: 0, kind: input, shape index: {}]   ;;  %s4709_s1 = inlined_call_operand.vmem [shape: f32[2,36], index: 1, kind: input, shape index: {}]   ;;  %s4710_s2 = inlined_call_operand.vmem [shape: f32[2,4], index: 2, kind: input, shape index: {}]   ;;  %s4711_s3 = inlined_call_operand.vmem [shape: f32[2,4], index: 3, kind: input, shape index: {}]   ;;  %s4712_s4 = inlined_call_operand.hbm [shape: f32[2,4], index: 4, kind: output, shape index: {0}]   ;;  %s4713_s5 = inlined_call_operand.hbm [shape: f32[2,4], index: 5, kind: output, shape index: {1}]  }
   0x1   :  { %12 = vsyncpa [#allocation8], 0  ;;  %s3273_s18 = smov 0  }
   0x2 LB: > { %s3279_s19 = sadd.s32 4294967295, %s3214_s18   ;;  %p3079_p0 = scmp.ge.s32.totalorder %s3214_s18, 1  ;;  %s3214_s18 = sphi %s3273_s18, %s18_s18  }
   0x3   : > { %p182_p1 = scmp.lt.s32.totalorder %s3214_s18, 3 }
   0x5   : > { %p183_p2 = pnand %p3079_p0, %p182_p1 }
   0x6   : > { %p205_p3 = scmp.lt.s32.totalorder (!%p183_p2), %s3279_s19, 1  ;;  %p3081_p4 = scmp.ne.s32.totalorder (!%p183_p2), %s3279_s19, 0 }
   0x7   : > { %186 = sbr.rel (%p183_p2) target bundleno = 937 (0x3a9), region = 36 }
   0xc   : > { %s206_s20 = scalar_select %p205_p3, %s3279_s19, 1 }
   0xd   : > { %213 = sbr.rel (%p3081_p4) target bundleno = 21 (0x15), region = 40 }
   0xe   : > { %s3093_s21 = smul.u32 96, %s206_s20 }
  0x10   : > { %s3288_s24 = scalar_lea.vmem %s4708_s0, %s3093_s21 }
  0x12   : > { %vm214_vm0 = vcmask 1024   ;;  %v3216_v0 = vmov 0.0  }
  0x13   : > { %215 = vst.msk [vmem:[#allocation3] sm:$0x3] %vm214_vm0, %v3216_v0 }
  0x14   : > { %216 = vst.msk [vmem:[#allocation4] sm:$0x3] %vm214_vm0, %v3216_v0 }
  0x15 PF: > { %vm226_vm1 = vcmask 1041409   ;;  %vm229_vm2 = vcmask 1042434   ;;  %vm232_vm3 = vcmask 1043459   ;;  %v275_v1 = vld [vmem:[%s3288_s24 + $0x3] sm:$0x1]  ;;  %s3217_s25 = smov 48  }
  0x16   : > { %v276_v2 = vld [vmem:[%s3288_s24 + $0x1b] sm:$0x1]  ;;  %v277_v3 = vld [vmem:[%s3288_s24 + $0x33] sm:$0x1]  ;;  %v278_v4 = vld [vmem:[%s3288_s24 + $0x4b] sm:$0x1] }
  0x17   : > { %v283_v5 = vrot.slane %v276_v2, 7  ;;  %v285_v6 = vrot.slane %v277_v3, 6  ;;  %v287_v7 = vrot.slane %v278_v4, 5  ;;  %v237_v8 = vld [vmem:[%s3288_s24 + $0x1] sm:$0x1]  ;;  %s3218_s26 = smov 16  }
  0x18   : > { %v238_v9 = vld [vmem:[%s3288_s24 + $0x19] sm:$0x1]  ;;  %v239_v10 = vld [vmem:[%s3288_s24 + $0x31] sm:$0x1]  ;;  %v240_v11 = vld [vmem:[%s3288_s24 + $0x49] sm:$0x1] }
  0x19   : > { %v284_v12 = vsel %vm226_vm1, %v283_v5, %v275_v1  ;;  %v245_v13 = vrot.slane %v238_v9, 7  ;;  %v247_v14 = vrot.slane %v239_v10, 6  ;;  %v249_v15 = vrot.slane %v240_v11, 5  ;;  %v294_v16 = vld [vmem:[%s3288_s24 + $0x4] sm:$0x1]  ;;  %s3219_s27 = smov 64  }
  0x1a   : > { %v286_v17 = vsel %vm229_vm2, %v285_v6, %v284_v12  ;;  %v295_v18 = vld [vmem:[%s3288_s24 + $0x1c] sm:$0x1]  ;;  %v296_v19 = vld [vmem:[%s3288_s24 + $0x34] sm:$0x1]  ;;  %v297_v20 = vld [vmem:[%s3288_s24 + $0x4c] sm:$0x1] }
  0x1b   : > { %v288_v21 = vsel %vm232_vm3, %v287_v7, %v286_v17  ;;  %v246_v22 = vsel %vm226_vm1, %v245_v13, %v237_v8  ;;  %v302_v23 = vrot.slane %v295_v18, 7  ;;  %v304_v24 = vrot.slane %v296_v19, 6  ;;  %v256_v25 = vld [vmem:[%s3288_s24 + $0x2] sm:$0x1]  ;;  %v257_v26 = vld [vmem:[%s3288_s24 + $0x1a] sm:$0x1] }
  0x1c   : > { %289 = vrot.lane.b32.xlu1 %v288_v21, %s3217_s25  ;;  %v248_v27 = vsel %vm229_vm2, %v247_v14, %v246_v22  ;;  %v258_v28 = vld [vmem:[%s3288_s24 + $0x32] sm:$0x1]  ;;  %v259_v29 = vld [vmem:[%s3288_s24 + $0x4a] sm:$0x1]  ;;  %v264_v30 = vrot.slane %v257_v26, 7  ;;  %v306_v33 = vrot.slane %v297_v20, 5 }
  0x1d   : > { %v250_v31 = vsel %vm232_vm3, %v249_v15, %v248_v27  ;;  %v303_v32 = vsel %vm226_vm1, %v302_v23, %v294_v16  ;;  %v266_v34 = vrot.slane %v258_v28, 6  ;;  %v386_v37 = vld [vmem:[%s3288_s24 + $0x9] sm:$0x1]  ;;  %v387_v38 = vld [vmem:[%s3288_s24 + $0x21] sm:$0x1]  ;;  %v268_v39 = vrot.slane %v259_v29, 5 }
  0x1e   : > { %251 = vrot.lane.b32.xlu0 %v250_v31, %s3218_s26  ;;  %v305_v35 = vsel %vm229_vm2, %v304_v24, %v303_v32  ;;  %v265_v36 = vsel %vm226_vm1, %v264_v30, %v256_v25  ;;  %v388_v40 = vld [vmem:[%s3288_s24 + $0x39] sm:$0x1]  ;;  %v394_v41 = vrot.slane %v387_v38, 7  ;;  %v352_v42 = vld [vmem:[%s3288_s24 + $0x1f] sm:$0x1]  ;;  %s3220_s28 = smov 32  }
  0x1f   : > { %v267_v43 = vsel %vm229_vm2, %v266_v34, %v265_v36  ;;  %v389_v44 = vld [vmem:[%s3288_s24 + $0x51] sm:$0x1]  ;;  %v351_v45 = vld [vmem:[%s3288_s24 + $0x7] sm:$0x1]  ;;  %v353_v46 = vld [vmem:[%s3288_s24 + $0x37] sm:$0x1]  ;;  %v307_v47 = vsel %vm232_vm3, %v306_v33, %v305_v35 }
  0x20   : > { %v359_v48 = vrot.slane %v352_v42, 7  ;;  %v313_v49 = vld [vmem:[%s3288_s24 + $0x5] sm:$0x1]  ;;  %v314_v50 = vld [vmem:[%s3288_s24 + $0x1d] sm:$0x1]  ;;  %v396_v51 = vrot.slane %v388_v40, 6  ;;  %v269_v55 = vsel %vm232_vm3, %v268_v39, %v267_v43  ;;  %v395_v56 = vsel %vm226_vm1, %v394_v41, %v386_v37 }
  0x21   : > { %v315_v52 = vld [vmem:[%s3288_s24 + $0x35] sm:$0x1]  ;;  %v316_v53 = vld [vmem:[%s3288_s24 + $0x4d] sm:$0x1]  ;;  %v321_v54 = vrot.slane %v314_v50, 7  ;;  %v361_v60 = vrot.slane %v353_v46, 6 }
  0x22   : > { %v323_v57 = vrot.slane %v315_v52, 6  ;;  %v325_v58 = vrot.slane %v316_v53, 5  ;;  %v354_v59 = vld [vmem:[%s3288_s24 + $0x4f] sm:$0x1]  ;;  %v441_v62 = vld [vmem:[%s3288_s24 + $0x24] sm:$0x1]  ;;  %v360_v0 = vsel %vm226_vm1, %v359_v48, %v351_v45  ;;  %v397_v2 = vsel %vm229_vm2, %v396_v51, %v395_v56 }
  0x23   : > { %v322_v61 = vsel %vm226_vm1, %v321_v54, %v313_v49  ;;  %v398_v63 = vrot.slane %v389_v44, 5  ;;  %v440_v4 = vld [vmem:[%s3288_s24 + $0xc] sm:$0x1]  ;;  %v442_v5 = vld [vmem:[%s3288_s24 + $0x3c] sm:$0x1]  ;;  %v363_v7 = vrot.slane %v354_v59, 5  ;;  %v362_v12 = vsel %vm229_vm2, %v361_v60, %v360_v0 }
  0x24   : > { %308 = vrot.lane.b32.xlu1 %v307_v47, %s3219_s27  ;;  %v324_v1 = vsel %vm229_vm2, %v323_v57, %v322_v61  ;;  %v423_v6 = vld [vmem:[%s3288_s24 + $0x23] sm:$0x1]  ;;  %s3221_s29 = smov 80   ;;  %v443_v8 = vld [vmem:[%s3288_s24 + $0x54] sm:$0x1]  ;;  %v448_v9 = vrot.slane %v441_v62, 7 }
  0x25   : > { %v326_v3 = vsel %vm232_vm3, %v325_v58, %v324_v1  ;;  %v332_v10 = vld [vmem:[%s3288_s24 + $0x6] sm:$0x1]  ;;  %v333_v11 = vld [vmem:[%s3288_s24 + $0x1e] sm:$0x1]  ;;  %v334_v13 = vld [vmem:[%s3288_s24 + $0x36] sm:$0x1]  ;;  %v399_v16 = vsel %vm232_vm3, %v398_v63, %v397_v2  ;;  %v364_v24 = vsel %vm232_vm3, %v363_v7, %v362_v12 }
  0x26   : > { %270 = vrot.lane.b32.xlu0 %v269_v55, %s3220_s28  ;;  %327 = vrot.lane.b32.xlu2 %v326_v3, %s3221_s29  ;;  %v335_v14 = vld [vmem:[%s3288_s24 + $0x4e] sm:$0x1]  ;;  %v340_v15 = vrot.slane %v333_v11, 7  ;;  %v424_v17 = vld [vmem:[%s3288_s24 + $0x3b] sm:$0x1]  ;;  %v430_v18 = vrot.slane %v423_v6, 7  ;;  %v449_v25 = vsel %vm226_vm1, %v448_v9, %v440_v4 }
  0x27   : > { %v342_v19 = vrot.slane %v334_v13, 6  ;;  %v344_v20 = vrot.slane %v335_v14, 5  ;;  %v450_v21 = vrot.slane %v442_v5, 6  ;;  %v422_v22 = vld [vmem:[%s3288_s24 + $0xb] sm:$0x1]  ;;  %v452_v27 = vrot.slane %v443_v8, 5 }
  0x28   : > { %v341_v23 = vsel %vm226_vm1, %v340_v15, %v332_v10  ;;  %v425_v28 = vld [vmem:[%s3288_s24 + $0x53] sm:$0x1]  ;;  %v432_v29 = vrot.slane %v424_v17, 6  ;;  %v495_v31 = vld [vmem:[%s3288_s24 + $0x27] sm:$0x1]  ;;  %v431_v32 = vsel %vm226_vm1, %v430_v18, %v422_v22  ;;  %s3222_s30 = smov 112  }
  0x29   : > { %v343_v26 = vsel %vm229_vm2, %v342_v19, %v341_v23  ;;  %v477_v33 = vld [vmem:[%s3288_s24 + $0x26] sm:$0x1]  ;;  %v404_v34 = vld [vmem:[%s3288_s24 + $0xa] sm:$0x1]  ;;  %v405_v35 = vld [vmem:[%s3288_s24 + $0x22] sm:$0x1]  ;;  %v451_v36 = vsel %vm229_vm2, %v450_v21, %v449_v25 }
  0x2a   : > { %v345_v30 = vsel %vm232_vm3, %v344_v20, %v343_v26  ;;  %v406_v37 = vld [vmem:[%s3288_s24 + $0x3a] sm:$0x1]  ;;  %v407_v38 = vld [vmem:[%s3288_s24 + $0x52] sm:$0x1]  ;;  %v412_v39 = vrot.slane %v405_v35, 7  ;;  %v434_v40 = vrot.slane %v425_v28, 5  ;;  %v433_v44 = vsel %vm229_vm2, %v432_v29, %v431_v32 }
  0x2b   : > { %s3223_s6 = smov 96   ;;  %v496_v41 = vld [vmem:[%s3288_s24 + $0x3f] sm:$0x1]  ;;  %v502_v42 = vrot.slane %v495_v31, 7  ;;  %v414_v43 = vrot.slane %v406_v37, 6  ;;  %v416_v47 = vrot.slane %v407_v38, 5  ;;  %v453_v48 = vsel %vm232_vm3, %v452_v27, %v451_v36 }
  0x2c   : > { %400 = vrot.lane.b32.xlu1 %v399_v16, %s3218_s26  ;;  %v494_v45 = vld [vmem:[%s3288_s24 + $0xf] sm:$0x1]  ;;  %v413_v46 = vsel %vm226_vm1, %v412_v39, %v404_v34  ;;  %v497_v49 = vld [vmem:[%s3288_s24 + $0x57] sm:$0x1]  ;;  %v478_v50 = vld [vmem:[%s3288_s24 + $0x3e] sm:$0x1]  ;;  %v435_v56 = vsel %vm232_vm3, %v434_v40, %v433_v44 }
  0x2d   : > { %v484_v51 = vrot.slane %v477_v33, 7  ;;  %v415_v52 = vsel %vm229_vm2, %v414_v43, %v413_v46  ;;  %v504_v53 = vrot.slane %v496_v41, 6  ;;  %v476_v54 = vld [vmem:[%s3288_s24 + $0xe] sm:$0x1]  ;;  %v555_v55 = vld [vmem:[%s3288_s24 + $0x2] sm:$0x1]  ;;  %v503_v57 = vsel %vm226_vm1, %v502_v42, %v494_v45 }
  0x2e   : > { %365 = vrot.lane.b32.xlu0 %v364_v24, %s3222_s30  ;;  %346 = vrot.lane.b32.xlu2 %v345_v30, %s3223_s6  ;;  %v556_v58 = vld [vmem:[%s3288_s24 + $0x1a] sm:$0x1]  ;;  %v458_v59 = vld [vmem:[%s3288_s24 + $0xd] sm:$0x1]  ;;  %v486_v62 = vrot.slane %v478_v50, 6  ;;  %v417_v63 = vsel %vm232_vm3, %v416_v47, %v415_v52  ;;  %v506_v2 = vrot.slane %v497_v49, 5 }
  0x2f   : > { %v459_v60 = vld [vmem:[%s3288_s24 + $0x25] sm:$0x1]  ;;  %v479_v61 = vld [vmem:[%s3288_s24 + $0x56] sm:$0x1]  ;;  %v460_v0 = vld [vmem:[%s3288_s24 + $0x3d] sm:$0x1]  ;;  %v485_v3 = vsel %vm226_vm1, %v484_v51, %v476_v54  ;;  %v505_v7 = vsel %vm229_vm2, %v504_v53, %v503_v57 }
  0x30   : > { %v466_v1 = vrot.slane %v459_v60, 7  ;;  %v557_v4 = vld [vmem:[%s3288_s24 + $0x32] sm:$0x1]  ;;  %v461_v5 = vld [vmem:[%s3288_s24 + $0x55] sm:$0x1]  ;;  %v468_v6 = vrot.slane %v460_v0, 6  ;;  %v487_v14 = vsel %vm229_vm2, %v486_v62, %v485_v3  ;;  %v507_v18 = vsel %vm232_vm3, %v506_v2, %v505_v7 }
  0x31   : > { %v563_v8 = vrot.slane %v555_v55, 4  ;;  %v564_v9 = vrot.slane %v556_v58, 3  ;;  %v535_v10 = vld [vmem:[%s3288_s24 + $0x1] sm:$0x1]  ;;  %v536_v11 = vld [vmem:[%s3288_s24 + $0x19] sm:$0x1] }
  0x32   : > { %v467_v12 = vsel %vm226_vm1, %v466_v1, %v458_v59  ;;  %v488_v13 = vrot.slane %v479_v61, 5  ;;  %vm522_vm4 = vcmask 1045509   ;;  %v558_v15 = vld [vmem:[%s3288_s24 + $0x4a] sm:$0x1]  ;;  %v566_v16 = vrot.slane %v557_v4, 2  ;;  %s3224_s7 = smov 31  }
  0x33   : > { %v470_v17 = vrot.slane %v461_v5, 5  ;;  %v537_v19 = vld [vmem:[%s3288_s24 + $0x31] sm:$0x1]  ;;  %v543_v20 = vrot.slane %v535_v10, 4  ;;  %v544_v21 = vrot.slane %v536_v11, 3  ;;  %v469_v22 = vsel %vm229_vm2, %v468_v6, %v467_v12  ;;  %s3225_s8 = smov 15  }
  0x34   : > { %454 = vrot.lane.b32.xlu1 %v453_v48, %s3219_s27  ;;  %v512_v23 = vld [vmem:[%s3288_s24] sm:$0x1]  ;;  %vm525_vm5 = vcmask 1046534   ;;  %v565_v24 = vsel %vm522_vm4, %v564_v9, %v563_v8  ;;  %v513_v25 = vld [vmem:[%s3288_s24 + $0x18] sm:$0x1]  ;;  %v489_v27 = vsel %vm232_vm3, %v488_v13, %v487_v14  ;;  %v568_v32 = vrot.slane %v558_v15, 1 }
  0x35   : > { %v514_v26 = vld [vmem:[%s3288_s24 + $0x30] sm:$0x1]  ;;  %v615_v28 = vld [vmem:[%s3288_s24 + $0x5] sm:$0x1]  ;;  %v616_v29 = vld [vmem:[%s3288_s24 + $0x1d] sm:$0x1]  ;;  %v471_v35 = vsel %vm232_vm3, %v470_v17, %v469_v22  ;;  %v567_v36 = vsel %vm525_vm5, %v566_v16, %v565_v24  ;;  %v545_v37 = vsel %vm522_vm4, %v544_v21, %v543_v20 }
  0x36   : > { %436 = vrot.lane.b32.xlu0 %v435_v56, %s3217_s25  ;;  %418 = vrot.lane.b32.xlu2 %v417_v63, %s3220_s28  ;;  %v520_v30 = vrot.slane %v512_v23, 4  ;;  %v521_v31 = vrot.slane %v513_v25, 3  ;;  %v538_v33 = vld [vmem:[%s3288_s24 + $0x49] sm:$0x1]  ;;  %v546_v34 = vrot.slane %v537_v19, 2  ;;  %vm528_vm6 = vcmask 1047559  }
  0x37   : > { %v617_v38 = vld [vmem:[%s3288_s24 + $0x35] sm:$0x1]  ;;  %v515_v39 = vld [vmem:[%s3288_s24 + $0x48] sm:$0x1]  ;;  %v524_v40 = vrot.slane %v514_v26, 2  ;;  %v623_v41 = vrot.slane %v615_v28, 4  ;;  %v569_v48 = vsel %vm528_vm6, %v568_v32, %v567_v36 }
  0x38   : > { %v624_v42 = vrot.slane %v616_v29, 3  ;;  %v595_v43 = vld [vmem:[%s3288_s24 + $0x4] sm:$0x1]  ;;  %v596_v44 = vld [vmem:[%s3288_s24 + $0x1c] sm:$0x1]  ;;  %v523_v45 = vsel %vm522_vm4, %v521_v31, %v520_v30  ;;  %v548_v46 = vrot.slane %v538_v33, 1  ;;  %v547_v49 = vsel %vm525_vm5, %v546_v34, %v545_v37 }
  0x39   : > { %v575_v47 = vld [vmem:[%s3288_s24 + $0x3] sm:$0x1]  ;;  %v618_v50 = vld [vmem:[%s3288_s24 + $0x4d] sm:$0x1]  ;;  %v527_v51 = vrot.slane %v515_v39, 1  ;;  %v626_v53 = vrot.slane %v617_v38, 2  ;;  %v526_v57 = vsel %vm525_vm5, %v524_v40, %v523_v45 }
  0x3a   : > { %v576_v52 = vld [vmem:[%s3288_s24 + $0x1b] sm:$0x1]  ;;  %v597_v54 = vld [vmem:[%s3288_s24 + $0x34] sm:$0x1]  ;;  %v603_v55 = vrot.slane %v595_v43, 4  ;;  %v604_v56 = vrot.slane %v596_v44, 3  ;;  %v625_v58 = vsel %vm522_vm4, %v624_v42, %v623_v41  ;;  %v549_v62 = vsel %vm528_vm6, %v548_v46, %v547_v49 }
  0x3b   : > { %v577_v59 = vld [vmem:[%s3288_s24 + $0x33] sm:$0x1]  ;;  %v583_v60 = vrot.slane %v575_v47, 4  ;;  %v584_v61 = vrot.slane %v576_v52, 3  ;;  %v675_v63 = vld [vmem:[%s3288_s24 + $0x8] sm:$0x1]  ;;  %v529_v4 = vsel %vm528_vm6, %v527_v51, %v526_v57  ;;  %v627_v5 = vsel %vm525_vm5, %v626_v53, %v625_v58 }
  0x3c   : > { %508 = vrot.lane.b32.xlu1 %v507_v18, %s3222_s30  ;;  %v676_v0 = vld [vmem:[%s3288_s24 + $0x20] sm:$0x1]  ;;  %v628_v1 = vrot.slane %v618_v50, 1  ;;  %v598_v2 = vld [vmem:[%s3288_s24 + $0x4c] sm:$0x1]  ;;  %v606_v3 = vrot.slane %v597_v54, 2  ;;  %v605_v6 = vsel %vm522_vm4, %v604_v56, %v603_v55 }
  0x3d   : > { %v677_v7 = vld [vmem:[%s3288_s24 + $0x38] sm:$0x1]  ;;  %v578_v8 = vld [vmem:[%s3288_s24 + $0x4b] sm:$0x1]  ;;  %v586_v9 = vrot.slane %v577_v59, 2  ;;  %v683_v10 = vrot.slane %v675_v63, 4  ;;  %v585_v14 = vsel %vm522_vm4, %v584_v61, %v583_v60 }
  0x3e   : > { %490 = vrot.lane.b32.xlu0 %v489_v27, %s3223_s6  ;;  %472 = vrot.lane.b32.xlu2 %v471_v35, %s3221_s29  ;;  %v684_v11 = vrot.slane %v676_v0, 3  ;;  %v655_v12 = vld [vmem:[%s3288_s24 + $0x7] sm:$0x1]  ;;  %v656_v13 = vld [vmem:[%s3288_s24 + $0x1f] sm:$0x1]  ;;  %v608_v15 = vrot.slane %v598_v2, 1  ;;  %v629_v18 = vsel %vm528_vm6, %v628_v1, %v627_v5  ;;  %v607_v19 = vsel %vm525_vm5, %v606_v3, %v605_v6 }
  0x3f   : > { %s3226_s9 = smov 127   ;;  %v635_v16 = vld [vmem:[%s3288_s24 + $0x6] sm:$0x1]  ;;  %v636_v17 = vld [vmem:[%s3288_s24 + $0x1e] sm:$0x1]  ;;  %v588_v21 = vrot.slane %v578_v8, 1  ;;  %v587_v26 = vsel %vm525_vm5, %v586_v9, %v585_v14 }
  0x40   : > { %v678_v20 = vld [vmem:[%s3288_s24 + $0x50] sm:$0x1]  ;;  %v686_v22 = vrot.slane %v677_v7, 2  ;;  %v657_v23 = vld [vmem:[%s3288_s24 + $0x37] sm:$0x1]  ;;  %v663_v24 = vrot.slane %v655_v12, 4  ;;  %v685_v27 = vsel %vm522_vm4, %v684_v11, %v683_v10  ;;  %v609_v32 = vsel %vm528_vm6, %v608_v15, %v607_v19 }
  0x41   : > { %v664_v25 = vrot.slane %v656_v13, 3  ;;  %v658_v28 = vld [vmem:[%s3288_s24 + $0x4f] sm:$0x1]  ;;  %v637_v29 = vld [vmem:[%s3288_s24 + $0x36] sm:$0x1]  ;;  %v643_v30 = vrot.slane %v635_v16, 4  ;;  %v589_v35 = vsel %vm528_vm6, %v588_v21, %v587_v26 }
  0x42   : > { %v644_v31 = vrot.slane %v636_v17, 3  ;;  %v688_v33 = vrot.slane %v678_v20, 1  ;;  %s3227_s10 = smov 79   ;;  %v666_v34 = vrot.slane %v657_v23, 2  ;;  %v732_v36 = vld [vmem:[%s3288_s24 + $0xb] sm:$0x1]  ;;  %v687_v38 = vsel %vm525_vm5, %v686_v22, %v685_v27 }
  0x43   : > { %v733_v37 = vld [vmem:[%s3288_s24 + $0x23] sm:$0x1]  ;;  %v665_v39 = vsel %vm522_vm4, %v664_v25, %v663_v24  ;;  %v668_v40 = vrot.slane %v658_v28, 1  ;;  %v638_v41 = vld [vmem:[%s3288_s24 + $0x4e] sm:$0x1]  ;;  %v646_v42 = vrot.slane %v637_v29, 2 }
  0x44   : > { %570 = vrot.lane.b32.xlu1 %v569_v48, %s3224_s7  ;;  %s3228_s11 = smov 63   ;;  %v734_v43 = vld [vmem:[%s3288_s24 + $0x3b] sm:$0x1]  ;;  %v713_v44 = vld [vmem:[%s3288_s24 + $0xa] sm:$0x1]  ;;  %v645_v46 = vsel %vm522_vm4, %v644_v31, %v643_v30  ;;  %s3229_s12 = smov 47   ;;  %v689_v51 = vsel %vm528_vm6, %v688_v33, %v687_v38  ;;  %v667_v52 = vsel %vm525_vm5, %v666_v34, %v665_v39 }
  0x45   : > { %v714_v45 = vld [vmem:[%s3288_s24 + $0x22] sm:$0x1]  ;;  %v740_v47 = vrot.slane %v732_v36, 4  ;;  %v741_v48 = vrot.slane %v733_v37, 3  ;;  %v694_v49 = vld [vmem:[%s3288_s24 + $0x9] sm:$0x1]  ;;  %v647_v59 = vsel %vm525_vm5, %v646_v42, %v645_v46  ;;  %v669_v0 = vsel %vm528_vm6, %v668_v40, %v667_v52 }
  0x46   : > { %550 = vrot.lane.b32.xlu0 %v549_v62, %s3225_s8  ;;  %530 = vrot.lane.b32.xlu2 %v529_v4, %s3226_s9  ;;  %v695_v50 = vld [vmem:[%s3288_s24 + $0x21] sm:$0x1]  ;;  %v735_v53 = vld [vmem:[%s3288_s24 + $0x53] sm:$0x1]  ;;  %v648_v54 = vrot.slane %v638_v41, 1  ;;  %v743_v55 = vrot.slane %v734_v43, 2 }
  0x47   : > { %v715_v56 = vld [vmem:[%s3288_s24 + $0x3a] sm:$0x1]  ;;  %v721_v57 = vrot.slane %v713_v44, 4  ;;  %v722_v58 = vrot.slane %v714_v45, 3  ;;  %v716_v60 = vld [vmem:[%s3288_s24 + $0x52] sm:$0x1]  ;;  %v742_v1 = vsel %vm522_vm4, %v741_v48, %v740_v47 }
  0x48   : > { %v696_v61 = vld [vmem:[%s3288_s24 + $0x39] sm:$0x1]  ;;  %v702_v62 = vrot.slane %v694_v49, 4  ;;  %v703_v63 = vrot.slane %v695_v50, 3  ;;  %v724_v2 = vrot.slane %v715_v56, 2  ;;  %v649_v3 = vsel %vm528_vm6, %v648_v54, %v647_v59  ;;  %s4714_s13 = smov 111  }
  0x49   : > { %v789_v4 = vld [vmem:[%s3288_s24 + $0xe] sm:$0x1]  ;;  %v790_v5 = vld [vmem:[%s3288_s24 + $0x26] sm:$0x1]  ;;  %v745_v6 = vrot.slane %v735_v53, 1  ;;  %v723_v7 = vsel %vm522_vm4, %v722_v58, %v721_v57  ;;  %v726_v8 = vrot.slane %v716_v60, 1  ;;  %v744_v11 = vsel %vm525_vm5, %v743_v55, %v742_v1 }
  0x4a   : > { %v697_v9 = vld [vmem:[%s3288_s24 + $0x51] sm:$0x1]  ;;  %v705_v10 = vrot.slane %v696_v61, 2  ;;  %v791_v12 = vld [vmem:[%s3288_s24 + $0x3e] sm:$0x1]  ;;  %v704_v15 = vsel %vm522_vm4, %v703_v63, %v702_v62  ;;  %s3231_s14 = smov 95   ;;  %v725_v20 = vsel %vm525_vm5, %v724_v2, %v723_v7 }
  0x4b   : > { %v770_v13 = vld [vmem:[%s3288_s24 + $0xd] sm:$0x1]  ;;  %v771_v14 = vld [vmem:[%s3288_s24 + $0x25] sm:$0x1]  ;;  %v797_v16 = vrot.slane %v789_v4, 4  ;;  %v798_v17 = vrot.slane %v790_v5, 3  ;;  %v746_v22 = vsel %vm528_vm6, %v745_v6, %v744_v11 }
  0x4c   : > { %630 = vrot.lane.b32.xlu1 %v629_v18, %s3227_s10  ;;  %v751_v18 = vld [vmem:[%s3288_s24 + $0xc] sm:$0x1]  ;;  %v752_v19 = vld [vmem:[%s3288_s24 + $0x24] sm:$0x1]  ;;  %v707_v21 = vrot.slane %v697_v9, 1  ;;  %v778_v25 = vrot.slane %v770_v13, 4  ;;  %v706_v27 = vsel %vm525_vm5, %v705_v10, %v704_v15 }
  0x4d   : > { %v792_v23 = vld [vmem:[%s3288_s24 + $0x56] sm:$0x1]  ;;  %v772_v24 = vld [vmem:[%s3288_s24 + $0x3d] sm:$0x1]  ;;  %v779_v26 = vrot.slane %v771_v14, 3  ;;  %v800_v28 = vrot.slane %v791_v12, 2  ;;  %v799_v33 = vsel %vm522_vm4, %v798_v17, %v797_v16 }
  0x4e   : > { %610 = vrot.lane.b32.xlu0 %v609_v32, %s3228_s11  ;;  %590 = vrot.lane.b32.xlu2 %v589_v35, %s3229_s12  ;;  %v753_v29 = vld [vmem:[%s3288_s24 + $0x3c] sm:$0x1]  ;;  %v759_v30 = vrot.slane %v751_v18, 4  ;;  %v760_v31 = vrot.slane %v752_v19, 3  ;;  %v727_v32 = vsel %vm528_vm6, %v726_v8, %v725_v20  ;;  %v773_v34 = vld [vmem:[%s3288_s24 + $0x55] sm:$0x1]  ;;  %v708_v36 = vsel %vm528_vm6, %v707_v21, %v706_v27 }
  0x4f   : > { %v781_v35 = vrot.slane %v772_v24, 2  ;;  %v846_v37 = vld [vmem:[%s3288_s24 + $0x19] sm:$0x1]  ;;  %v802_v38 = vrot.slane %v792_v23, 1  ;;  %v780_v39 = vsel %vm522_vm4, %v779_v26, %v778_v25  ;;  %v754_v40 = vld [vmem:[%s3288_s24 + $0x54] sm:$0x1]  ;;  %v801_v42 = vsel %vm525_vm5, %v800_v28, %v799_v33 }
  0x50   : > { %v762_v41 = vrot.slane %v753_v29, 2  ;;  %v847_v43 = vld [vmem:[%s3288_s24 + $0x31] sm:$0x1]  ;;  %v828_v44 = vld [vmem:[%s3288_s24 + $0x18] sm:$0x1]  ;;  %v761_v45 = vsel %vm522_vm4, %v760_v31, %v759_v30  ;;  %v783_v46 = vrot.slane %v773_v34, 1 }
  0x51   : > { %v853_v47 = vrot.slane %v846_v37, 7  ;;  %v808_v48 = vld [vmem:[%s3288_s24 + $0xf] sm:$0x1]  ;;  %v809_v49 = vld [vmem:[%s3288_s24 + $0x27] sm:$0x1]  ;;  %v782_v50 = vsel %vm525_vm5, %v781_v35, %v780_v39  ;;  %v764_v52 = vrot.slane %v754_v40, 1  ;;  %v803_v53 = vsel %vm528_vm6, %v802_v38, %v801_v42 }
  0x52   : > { %v848_v54 = vld [vmem:[%s3288_s24 + $0x49] sm:$0x1]  ;;  %v855_v55 = vrot.slane %v847_v43, 6  ;;  %v829_v56 = vld [vmem:[%s3288_s24 + $0x30] sm:$0x1]  ;;  %v835_v57 = vrot.slane %v828_v44, 7  ;;  %v763_v58 = vsel %vm525_vm5, %v762_v41, %v761_v45  ;;  %v784_v63 = vsel %vm528_vm6, %v783_v46, %v782_v50 }
  0x53   : > { %v827_v59 = vld [vmem:[%s3288_s24] sm:$0x1]  ;;  %v810_v60 = vld [vmem:[%s3288_s24 + $0x3f] sm:$0x1]  ;;  %v816_v61 = vrot.slane %v808_v48, 4  ;;  %v817_v62 = vrot.slane %v809_v49, 3 }
  0x54   : > { %690 = vrot.lane.b32.xlu1 %v689_v51, %s3226_s9  ;;  %v845_v51 = vld [vmem:[%s3288_s24 + $0x1] sm:$0x1]  ;;  %v830_v1 = vld [vmem:[%s3288_s24 + $0x48] sm:$0x1]  ;;  %v837_v2 = vrot.slane %v829_v56, 6  ;;  %v857_v5 = vrot.slane %v848_v54, 5  ;;  %v836_v6 = vsel %vm226_vm1, %v835_v57, %v827_v59 }
  0x55   : > { %v900_v4 = vld [vmem:[%s3288_s24 + $0x1c] sm:$0x1]  ;;  %v811_v7 = vld [vmem:[%s3288_s24 + $0x57] sm:$0x1]  ;;  %v819_v8 = vrot.slane %v810_v60, 2  ;;  %v818_v12 = vsel %vm522_vm4, %v817_v62, %v816_v61  ;;  %v839_v13 = vrot.slane %v830_v1, 5 }
  0x56   : > { %670 = vrot.lane.b32.xlu0 %v669_v0, %s4714_s13  ;;  %650 = vrot.lane.b32.xlu2 %v649_v3, %s3231_s14  ;;  %v854_v0 = vsel %vm226_vm1, %v853_v47, %v845_v51  ;;  %v765_v3 = vsel %vm528_vm6, %v764_v52, %v763_v58  ;;  %v901_v10 = vld [vmem:[%s3288_s24 + $0x34] sm:$0x1]  ;;  %v882_v11 = vld [vmem:[%s3288_s24 + $0x1b] sm:$0x1]  ;;  %v907_v15 = vrot.slane %v900_v4, 7  ;;  %v838_v17 = vsel %vm229_vm2, %v837_v2, %v836_v6  ;;  %s3232_s15 = smov 14  }
  0x57   : > { %v856_v9 = vsel %vm229_vm2, %v855_v55, %v854_v0  ;;  %v902_v14 = vld [vmem:[%s3288_s24 + $0x4c] sm:$0x1]  ;;  %v864_v16 = vld [vmem:[%s3288_s24 + $0x1a] sm:$0x1]  ;;  %v899_v18 = vld [vmem:[%s3288_s24 + $0x4] sm:$0x1]  ;;  %v820_v25 = vsel %vm525_vm5, %v819_v8, %v818_v12  ;;  %v840_v30 = vsel %vm232_vm3, %v839_v13, %v838_v17 }
  0x58   : > { %v821_v19 = vrot.slane %v811_v7, 1  ;;  %v858_v20 = vsel %vm232_vm3, %v857_v5, %v856_v9  ;;  %v909_v21 = vrot.slane %v901_v10, 6  ;;  %v883_v23 = vld [vmem:[%s3288_s24 + $0x33] sm:$0x1]  ;;  %v889_v24 = vrot.slane %v882_v11, 7  ;;  %s3233_s16 = smov 126  }
  0x59   : > { %v911_v26 = vrot.slane %v902_v14, 5  ;;  %v884_v27 = vld [vmem:[%s3288_s24 + $0x4b] sm:$0x1]  ;;  %v865_v28 = vld [vmem:[%s3288_s24 + $0x32] sm:$0x1]  ;;  %v871_v29 = vrot.slane %v864_v16, 7  ;;  %v908_v31 = vsel %vm226_vm1, %v907_v15, %v899_v18 }
  0x5a   : > { %v863_v33 = vld [vmem:[%s3288_s24 + $0x2] sm:$0x1]  ;;  %v218_v34 = vld [vmem:[%s3288_s24 + $0x18] sm:$0x1]  ;;  %v891_v35 = vrot.slane %v883_v23, 6  ;;  %v873_v42 = vrot.slane %v865_v28, 6  ;;  %v910_v45 = vsel %vm229_vm2, %v909_v21, %v908_v31 }
  0x5b   : > { %v217_v37 = vld [vmem:[%s3288_s24] sm:$0x1]  ;;  %v219_v38 = vld [vmem:[%s3288_s24 + $0x30] sm:$0x1]  ;;  %v225_v39 = vrot.slane %v218_v34, 7  ;;  %v893_v46 = vrot.slane %v884_v27, 5  ;;  %v872_v49 = vsel %vm226_vm1, %v871_v29, %v863_v33  ;;  %v912_v59 = vsel %vm232_vm3, %v911_v26, %v910_v45 }
  0x5c   : > { %747 = vrot.lane.b32.xlu1 %v746_v22, %s3229_s12  ;;  %v881_v22 = vld [vmem:[%s3288_s24 + $0x3] sm:$0x1]  ;;  %v866_v41 = vld [vmem:[%s3288_s24 + $0x4a] sm:$0x1]  ;;  %v220_v43 = vld [vmem:[%s3288_s24 + $0x48] sm:$0x1] }
  0x5d   : > { %v890_v40 = vsel %vm226_vm1, %v889_v24, %v881_v22  ;;  %v228_v44 = vrot.slane %v219_v38, 6  ;;  %v955_v47 = vld [vmem:[%s3288_s24 + $0x37] sm:$0x1]  ;;  %v936_v48 = vld [vmem:[%s3288_s24 + $0x1e] sm:$0x1]  ;;  %v227_v50 = vsel %vm226_vm1, %v225_v39, %v217_v37  ;;  %vm4723_vm7 = vcmask 125952  }
  0x5e   : > { %728 = vrot.lane.b32.xlu0 %v727_v32, %s3224_s7  ;;  %709 = vrot.lane.b32.xlu2 %v708_v36, %s3225_s8  ;;  %v954_v32 = vld [vmem:[%s3288_s24 + $0x1f] sm:$0x1]  ;;  %v822_v36 = vsel %vm528_vm6, %v821_v19, %v820_v25  ;;  %v918_v52 = vld [vmem:[%s3288_s24 + $0x1d] sm:$0x1]  ;;  %v231_v54 = vrot.slane %v220_v43, 5  ;;  %v892_v55 = vsel %vm229_vm2, %v891_v35, %v890_v40  ;;  %v875_v58 = vrot.slane %v866_v41, 5 }
  0x5f   : > { %v961_v51 = vrot.slane %v954_v32, 7  ;;  %v953_v56 = vld [vmem:[%s3288_s24 + $0x7] sm:$0x1]  ;;  %v956_v57 = vld [vmem:[%s3288_s24 + $0x4f] sm:$0x1]  ;;  %v943_v62 = vrot.slane %v936_v48, 7  ;;  %v894_v4 = vsel %vm232_vm3, %v893_v46, %v892_v55 }
  0x60   : > { %v935_v60 = vld [vmem:[%s3288_s24 + $0x6] sm:$0x1]  ;;  %v937_v61 = vld [vmem:[%s3288_s24 + $0x36] sm:$0x1]  ;;  %v963_v1 = vrot.slane %v955_v47, 6  ;;  %s3234_s17 = smov 62  }
  0x61   : > { %v919_v2 = vld [vmem:[%s3288_s24 + $0x35] sm:$0x1]  ;;  %v962_v5 = vsel %vm226_vm1, %v961_v51, %v953_v56  ;;  %v917_v6 = vld [vmem:[%s3288_s24 + $0x5] sm:$0x1]  ;;  %v938_v7 = vld [vmem:[%s3288_s24 + $0x4e] sm:$0x1]  ;;  %v944_v12 = vsel %vm226_vm1, %v943_v62, %v935_v60 }
  0x62   : > { %v945_v8 = vrot.slane %v937_v61, 6  ;;  %v1008_v10 = vld [vmem:[%s3288_s24 + $0x22] sm:$0x1]  ;;  %v965_v11 = vrot.slane %v956_v57, 5  ;;  %v920_v13 = vld [vmem:[%s3288_s24 + $0x4d] sm:$0x1]  ;;  %v964_v15 = vsel %vm229_vm2, %v963_v1, %v962_v5 }
  0x63   : > { %v927_v14 = vrot.slane %v919_v2, 6  ;;  %s3235_s20 = smov 46   ;;  %v990_v16 = vld [vmem:[%s3288_s24 + $0x21] sm:$0x1]  ;;  %v947_v18 = vrot.slane %v938_v7, 5  ;;  %s3236_s21 = smov 30  }
  0x64   : > { %804 = vrot.lane.b32.xlu1 %v803_v53, %s3231_s14  ;;  %v230_v53 = vsel %vm229_vm2, %v228_v44, %v227_v50  ;;  %v1009_v19 = vld [vmem:[%s3288_s24 + $0x3a] sm:$0x1]  ;;  %v972_v21 = vld [vmem:[%s3288_s24 + $0x20] sm:$0x1]  ;;  %v946_v22 = vsel %vm229_vm2, %v945_v8, %v944_v12  ;;  %v1007_v23 = vld [vmem:[%s3288_s24 + $0xa] sm:$0x1]  ;;  %v966_v26 = vsel %vm232_vm3, %v965_v11, %v964_v15 }
  0x65   : > { %v233_v0 = vsel %vm232_vm3, %v231_v54, %v230_v53  ;;  %v1010_v24 = vld [vmem:[%s3288_s24 + $0x52] sm:$0x1]  ;;  %v929_v25 = vrot.slane %v920_v13, 5  ;;  %v989_v27 = vld [vmem:[%s3288_s24 + $0x9] sm:$0x1]  ;;  %v997_v29 = vrot.slane %v990_v16, 7  ;;  %v948_v35 = vsel %vm232_vm3, %v947_v18, %v946_v22 }
  0x66   : > { %785 = vrot.lane.b32.xlu0 %v784_v63, %s3227_s10  ;;  %766 = vrot.lane.b32.xlu2 %v765_v3, %s3228_s11  ;;  %v874_v63 = vsel %vm229_vm2, %v873_v42, %v872_v49  ;;  %v925_v3 = vrot.slane %v918_v52, 7  ;;  %236 = vst.msk [vmem:[#allocation2] sm:$0xf] %vm4723_vm7, %v233_v0  ;;  %v991_v28 = vld [vmem:[%s3288_s24 + $0x39] sm:$0x1]  ;;  %v1017_v31 = vrot.slane %v1009_v19, 6 }
  0x67   : > { %v876_v9 = vsel %vm232_vm3, %v875_v58, %v874_v63  ;;  %v992_v32 = vld [vmem:[%s3288_s24 + $0x51] sm:$0x1]  ;;  %v973_v33 = vld [vmem:[%s3288_s24 + $0x38] sm:$0x1]  ;;  %v979_v34 = vrot.slane %v972_v21, 7  ;;  %s3237_s22 = smov 110   ;;  %v998_v42 = vsel %vm226_vm1, %v997_v29, %v989_v27 }
  0x68   : > { %v926_v17 = vsel %vm226_vm1, %v925_v3, %v917_v6  ;;  %v971_v37 = vld [vmem:[%s3288_s24 + $0x8] sm:$0x1]  ;;  %v1019_v38 = vrot.slane %v1010_v24, 5  ;;  %v999_v39 = vrot.slane %v991_v28, 6  ;;  %v1062_v41 = vld [vmem:[%s3288_s24 + $0x25] sm:$0x1] }
  0x69   : > { %v1001_v43 = vrot.slane %v992_v32, 5  ;;  %v1063_v44 = vld [vmem:[%s3288_s24 + $0x3d] sm:$0x1]  ;;  %v1044_v45 = vld [vmem:[%s3288_s24 + $0x24] sm:$0x1]  ;;  %v981_v47 = vrot.slane %v973_v33, 6  ;;  %v980_v50 = vsel %vm226_vm1, %v979_v34, %v971_v37 }
  0x6a   : > { %v974_v46 = vld [vmem:[%s3288_s24 + $0x50] sm:$0x1]  ;;  %s3238_s23 = smov 94   ;;  %v1061_v49 = vld [vmem:[%s3288_s24 + $0xd] sm:$0x1]  ;;  %v1069_v54 = vrot.slane %v1062_v41, 7  ;;  %v1000_v58 = vsel %vm229_vm2, %v999_v39, %v998_v42 }
  0x6b   : > { %v1026_v51 = vld [vmem:[%s3288_s24 + $0x23] sm:$0x1]  ;;  %v370_v52 = vld [vmem:[%s3288_s24 + $0x8] sm:$0x1]  ;;  %v371_v53 = vld [vmem:[%s3288_s24 + $0x20] sm:$0x1]  ;;  %v982_v3 = vsel %vm229_vm2, %v981_v47, %v980_v50 }
  0x6c   : > { %859 = vrot.lane.b32.xlu1 %v858_v20, %s3232_s15  ;;  %v1015_v20 = vrot.slane %v1008_v10, 7  ;;  %v372_v55 = vld [vmem:[%s3288_s24 + $0x38] sm:$0x1]  ;;  %v373_v56 = vld [vmem:[%s3288_s24 + $0x50] sm:$0x1]  ;;  %v378_v57 = vrot.slane %v371_v53, 7  ;;  %v1002_v10 = vsel %vm232_vm3, %v1001_v43, %v1000_v58  ;;  %v1070_v11 = vsel %vm226_vm1, %v1069_v54, %v1061_v49 }
  0x6d   : > { %v983_v60 = vrot.slane %v974_v46, 5  ;;  %v380_v61 = vrot.slane %v372_v55, 6  ;;  %v382_v62 = vrot.slane %v373_v56, 5  ;;  %v1064_v0 = vld [vmem:[%s3288_s24 + $0x55] sm:$0x1]  ;;  %v1051_v1 = vrot.slane %v1044_v45, 7 }
  0x6e   : > { %841 = vrot.lane.b32.xlu0 %v840_v30, %s3233_s16  ;;  %823 = vrot.lane.b32.xlu2 %v822_v36, %s4714_s13  ;;  %v928_v30 = vsel %vm229_vm2, %v927_v14, %v926_v17  ;;  %v1016_v36 = vsel %vm226_vm1, %v1015_v20, %v1007_v23  ;;  %s3239_s13 = smov 78   ;;  %v1071_v5 = vrot.slane %v1063_v44, 6  ;;  %v1043_v6 = vld [vmem:[%s3288_s24 + $0xc] sm:$0x1]  ;;  %v1027_v7 = vld [vmem:[%s3288_s24 + $0x3b] sm:$0x1] }
  0x6f   : > { %v930_v40 = vsel %vm232_vm3, %v929_v25, %v928_v30  ;;  %v1018_v48 = vsel %vm229_vm2, %v1017_v31, %v1016_v36  ;;  %v1033_v8 = vrot.slane %v1026_v51, 7  ;;  %v1046_v12 = vld [vmem:[%s3288_s24 + $0x54] sm:$0x1]  ;;  %v1025_v14 = vld [vmem:[%s3288_s24 + $0xb] sm:$0x1]  ;;  %v984_v16 = vsel %vm232_vm3, %v983_v60, %v982_v3  ;;  %p3086_p5 = scmp.ne.s32.totalorder %s3279_s19, 1 }
  0x70   : > { %v1020_v63 = vsel %vm232_vm3, %v1019_v38, %v1018_v48  ;;  %v1132_v17 = vld [vmem:[%s3288_s24 + $0x2] sm:$0x1]  ;;  %v1133_v18 = vld [vmem:[%s3288_s24 + $0x1a] sm:$0x1]  ;;  %v1073_v19 = vrot.slane %v1064_v0, 5  ;;  %v1052_v20 = vsel %vm226_vm1, %v1051_v1, %v1043_v6  ;;  %v1035_v22 = vrot.slane %v1027_v7, 6 }
  0x71   : > { %v1028_v21 = vld [vmem:[%s3288_s24 + $0x53] sm:$0x1]  ;;  %v1072_v23 = vsel %vm229_vm2, %v1071_v5, %v1070_v11  ;;  %v1055_v24 = vrot.slane %v1046_v12, 5  ;;  %v1098_v25 = vld [vmem:[%s3288_s24 + $0x27] sm:$0x1]  ;;  %v1140_v28 = vrot.slane %v1132_v17, 4 }
  0x72   : > { %v1134_v27 = vld [vmem:[%s3288_s24 + $0x32] sm:$0x1]  ;;  %v1141_v29 = vrot.slane %v1133_v18, 3  ;;  %v1080_v30 = vld [vmem:[%s3288_s24 + $0x26] sm:$0x1]  ;;  %v1037_v33 = vrot.slane %v1028_v21, 5  ;;  %v1074_v34 = vsel %vm232_vm3, %v1073_v19, %v1072_v23 }
  0x73   : > { %v1135_v32 = vld [vmem:[%s3288_s24 + $0x4a] sm:$0x1]  ;;  %v1099_v36 = vld [vmem:[%s3288_s24 + $0x3f] sm:$0x1]  ;;  %v1105_v37 = vrot.slane %v1098_v25, 7  ;;  %v1087_v43 = vrot.slane %v1080_v30, 7 }
  0x74   : > { %913 = vrot.lane.b32.xlu1 %v912_v59, %s3234_s17  ;;  %v1045_v59 = vld [vmem:[%s3288_s24 + $0x3c] sm:$0x1]  ;;  %v1100_v41 = vld [vmem:[%s3288_s24 + $0x57] sm:$0x1]  ;;  %v1081_v42 = vld [vmem:[%s3288_s24 + $0x3e] sm:$0x1]  ;;  %v1142_v45 = vsel %vm522_vm4, %v1141_v29, %v1140_v28 }
  0x75   : > { %v1053_v13 = vrot.slane %v1045_v59, 6  ;;  %v1189_v46 = vld [vmem:[%s3288_s24 + $0x5] sm:$0x1]  ;;  %v1190_v47 = vld [vmem:[%s3288_s24 + $0x1d] sm:$0x1]  ;;  %vm254_vm8 = vcmask 257152  }
  0x76   : > { %895 = vrot.lane.b32.xlu0 %v894_v4, %s3235_s20  ;;  %877 = vrot.lane.b32.xlu2 %v876_v9, %s3236_s21  ;;  %v379_v4 = vsel %vm226_vm1, %v378_v57, %v370_v52  ;;  %v1079_v48 = vld [vmem:[%s3288_s24 + $0xe] sm:$0x1]  ;;  %v1107_v49 = vrot.slane %v1099_v36, 6  ;;  %v1145_v51 = vrot.slane %v1135_v32, 1  ;;  %v1109_v53 = vrot.slane %v1100_v41, 5 }
  0x77   : > { %v381_v9 = vsel %vm229_vm2, %v380_v61, %v379_v4  ;;  %v1054_v31 = vsel %vm229_vm2, %v1053_v13, %v1052_v20  ;;  %v1082_v54 = vld [vmem:[%s3288_s24 + $0x56] sm:$0x1]  ;;  %v1089_v55 = vrot.slane %v1081_v42, 6  ;;  %vm4721_vm9 = vcmask 388352   ;;  %v1170_v60 = vld [vmem:[%s3288_s24 + $0x4] sm:$0x1] }
  0x78   : > { %v383_v15 = vsel %vm232_vm3, %v382_v62, %v381_v9  ;;  %v1056_v44 = vsel %vm232_vm3, %v1055_v24, %v1054_v31  ;;  %v1197_v58 = vrot.slane %v1189_v46, 4  ;;  %v1198_v59 = vrot.slane %v1190_v47, 3  ;;  %v1171_v61 = vld [vmem:[%s3288_s24 + $0x1c] sm:$0x1]  ;;  %v1151_v0 = vld [vmem:[%s3288_s24 + $0x3] sm:$0x1] }
  0x79   : > { %385 = vst.msk [vmem:[#allocation2 + $0x8] sm:$0xf] %vm4723_vm7, %v383_v15  ;;  %v1088_v62 = vsel %vm226_vm1, %v1087_v43, %v1079_v48  ;;  %v1152_v1 = vld [vmem:[%s3288_s24 + $0x1b] sm:$0x1]  ;;  %vm4720_vm10 = vcmask 519552   ;;  %v1091_v7 = vrot.slane %v1082_v54, 5 }
  0x7a   : > { %v1192_v5 = vld [vmem:[%s3288_s24 + $0x4d] sm:$0x1]  ;;  %v1172_v6 = vld [vmem:[%s3288_s24 + $0x34] sm:$0x1]  ;;  %v1173_v9 = vld [vmem:[%s3288_s24 + $0x4c] sm:$0x1]  ;;  %v1090_v13 = vsel %vm229_vm2, %v1089_v55, %v1088_v62  ;;  %v1199_v19 = vsel %vm522_vm4, %v1198_v59, %v1197_v58 }
  0x7b   : > { %v1179_v11 = vrot.slane %v1171_v61, 3  ;;  %vm4719_vm11 = vcmask 650752   ;;  %v1153_v15 = vld [vmem:[%s3288_s24 + $0x33] sm:$0x1]  ;;  %v1160_v17 = vrot.slane %v1152_v1, 3  ;;  %v1202_v20 = vrot.slane %v1192_v5, 1 }
  0x7c   : > { %967 = vrot.lane.b32.xlu1 %v966_v26, %s3237_s22  ;;  %v1034_v26 = vsel %vm226_vm1, %v1033_v8, %v1025_v14  ;;  %vm4718_vm12 = vcmask 781952   ;;  %v1181_v21 = vrot.slane %v1172_v6, 2  ;;  %v1092_v23 = vsel %vm232_vm3, %v1091_v7, %v1090_v13  ;;  %v1246_v24 = vld [vmem:[%s3288_s24 + $0x8] sm:$0x1]  ;;  %v1247_v25 = vld [vmem:[%s3288_s24 + $0x20] sm:$0x1] }
  0x7d   : > { %v1036_v39 = vsel %vm229_vm2, %v1035_v22, %v1034_v26  ;;  %v1183_v22 = vrot.slane %v1173_v9, 1  ;;  %vm4717_vm13 = vcmask 913152   ;;  %v1154_v28 = vld [vmem:[%s3288_s24 + $0x4b] sm:$0x1]  ;;  %v1162_v29 = vrot.slane %v1153_v15, 2 }
  0x7e   : > { %949 = vrot.lane.b32.xlu0 %v948_v35, %s3238_s23  ;;  %931 = vrot.lane.b32.xlu2 %v930_v40, %s3239_s13  ;;  %v1097_v35 = vld [vmem:[%s3288_s24 + $0xf] sm:$0x1]  ;;  %v1143_v40 = vrot.slane %v1134_v27, 2  ;;  %v1038_v50 = vsel %vm232_vm3, %v1037_v33, %v1036_v39  ;;  %v1248_v27 = vld [vmem:[%s3288_s24 + $0x38] sm:$0x1]  ;;  %v1254_v36 = vrot.slane %v1246_v24, 4 }
  0x7f   : > { %v1106_v52 = vsel %vm226_vm1, %v1105_v37, %v1097_v35  ;;  %v3710_v32 = vld [vmem:[%s3288_s24 + $0x50] sm:$0x1]  ;;  %v1227_v33 = vld [vmem:[%s3288_s24 + $0x7] sm:$0x1]  ;;  %v1255_v37 = vrot.slane %v1247_v25, 3  ;;  %v1257_v43 = vrot.slane %v1248_v27, 2 }
  0x80   : > { %v3632_v2 = vpop.permute.xlu2 %327  ;;  %v1144_v57 = vsel %vm525_vm5, %v1143_v40, %v1142_v45  ;;  %v1108_v4 = vsel %vm229_vm2, %v1107_v49, %v1106_v52  ;;  %v1208_v39 = vld [vmem:[%s3288_s24 + $0x6] sm:$0x1]  ;;  %v1209_v40 = vld [vmem:[%s3288_s24 + $0x1e] sm:$0x1]  ;;  %v1230_v45 = vld [vmem:[%s3288_s24 + $0x4f] sm:$0x1] }
  0x81   : > { %v1146_v8 = vsel %vm528_vm6, %v1145_v51, %v1144_v57  ;;  %v1110_v18 = vsel %vm232_vm3, %v1109_v53, %v1108_v4  ;;  %v1164_v46 = vrot.slane %v1154_v28, 1  ;;  %v1235_v48 = vrot.slane %v1227_v33, 4  ;;  %v1320_v52 = vld [vmem:[%s3288_s24 + $0xc] sm:$0x1]  ;;  %v1210_v53 = vld [vmem:[%s3288_s24 + $0x36] sm:$0x1] }
  0x82   : > { %v1216_v54 = vrot.slane %v1208_v39, 4  ;;  %v1217_v55 = vrot.slane %v1209_v40, 3  ;;  %vm4716_vm14 = vcmask 1044352   ;;  %v1256_v58 = vsel %vm522_vm4, %v1255_v37, %v1254_v36  ;;  %v1301_v7 = vld [vmem:[%s3288_s24 + $0xb] sm:$0x1] }
  0x83   : > { %v1259_v59 = vrot.slane %v3710_v32, 1  ;;  %v1240_v61 = vrot.slane %v1230_v45, 1  ;;  %v1328_v1 = vrot.slane %v1320_v52, 4  ;;  %v1219_v4 = vrot.slane %v1210_v53, 2  ;;  %v1304_v27 = vld [vmem:[%s3288_s24 + $0x53] sm:$0x1] }
  0x84   : > { %1021 = vrot.lane.b32.xlu1 %v1020_v63, %s3236_s21  ;;  %v1191_v63 = vld [vmem:[%s3288_s24 + $0x35] sm:$0x1]  ;;  %vm533_vm15 = vcmask 130052   ;;  %v1218_v9 = vsel %vm522_vm4, %v1217_v55, %v1216_v54  ;;  %v1314_v40 = vrot.slane %v1304_v27, 1  ;;  %v1360_v55 = vld [vmem:[%s3288_s24 + $0x3e] sm:$0x1] }
  0x85   : > { %v1200_v14 = vrot.slane %v1191_v63, 2  ;;  %v1322_v63 = vld [vmem:[%s3288_s24 + $0x3c] sm:$0x1]  ;;  %vm553_vm0 = vcmask 261252  }
  0x86   : > { %1003 = vrot.lane.b32.xlu0 %v1002_v10, %s3232_s15  ;;  %985 = vrot.lane.b32.xlu2 %v984_v16, %s3233_s16  ;;  %v1178_v10 = vrot.slane %v1170_v60, 4  ;;  %v1159_v16 = vrot.slane %v1151_v0, 4  ;;  %v1321_v60 = vld [vmem:[%s3288_s24 + $0x24] sm:$0x1]  ;;  %v1331_v15 = vrot.slane %v1322_v63, 2 }
  0x87   : > { %v1201_v31 = vsel %vm525_vm5, %v1200_v14, %v1199_v19  ;;  %v1329_v6 = vrot.slane %v1321_v60, 3  ;;  %v1323_v14 = vld [vmem:[%s3288_s24 + $0x54] sm:$0x1]  ;;  %v1309_v19 = vrot.slane %v1301_v7, 4 }
  0x88   : > { %v3663_v38 = vpop.permute.xlu2 %346  ;;  %v1180_v26 = vsel %vm522_vm4, %v1179_v11, %v1178_v10  ;;  %v1161_v35 = vsel %vm522_vm4, %v1160_v17, %v1159_v16  ;;  %v1203_v47 = vsel %vm528_vm6, %v1202_v20, %v1201_v31  ;;  %v1283_v10 = vld [vmem:[%s3288_s24 + $0x22] sm:$0x1]  ;;  %v1378_v31 = vld [vmem:[%s3288_s24 + $0x27] sm:$0x1]  ;;  %v1333_v32 = vrot.slane %v1323_v14, 1 }
  0x89   : > { %v1182_v42 = vsel %vm525_vm5, %v1181_v21, %v1180_v26  ;;  %v1163_v51 = vsel %vm525_vm5, %v1162_v29, %v1161_v35  ;;  %v1291_v24 = vrot.slane %v1283_v10, 3  ;;  %v1330_v26 = vsel %vm522_vm4, %v1329_v6, %v1328_v1  ;;  %v1285_v35 = vld [vmem:[%s3288_s24 + $0x52] sm:$0x1]  ;;  %v1361_v1 = vld [vmem:[%s3288_s24 + $0x56] sm:$0x1] }
  0x8a   : > { %v1184_v57 = vsel %vm528_vm6, %v1183_v22, %v1182_v42  ;;  %v1165_v62 = vsel %vm528_vm6, %v1164_v46, %v1163_v51  ;;  %v1284_v22 = vld [vmem:[%s3288_s24 + $0x3a] sm:$0x1]  ;;  %v1332_v39 = vsel %vm525_vm5, %v1331_v15, %v1330_v26  ;;  %v1359_v42 = vld [vmem:[%s3288_s24 + $0x26] sm:$0x1]  ;;  %v1386_v45 = vrot.slane %v1378_v31, 3 }
  0x8b   : > { %v1293_v36 = vrot.slane %v1284_v22, 2  ;;  %v1339_v46 = vld [vmem:[%s3288_s24 + $0xd] sm:$0x1]  ;;  %v1380_v51 = vld [vmem:[%s3288_s24 + $0x57] sm:$0x1]  ;;  %v1295_v53 = vrot.slane %v1285_v35, 1  ;;  %v1334_v54 = vsel %vm528_vm6, %v1333_v32, %v1332_v39 }
  0x8c   : > { %1075 = vrot.lane.b32.xlu1 %v1074_v34, %s3239_s13  ;;  %v1228_v34 = vld [vmem:[%s3288_s24 + $0x1f] sm:$0x1]  ;;  %v1435_v10 = vld [vmem:[%s3288_s24 + $0x32] sm:$0x1]  ;;  %v1433_v15 = vld [vmem:[%s3288_s24 + $0x2] sm:$0x1] }
  0x8d   : > { %v1236_v49 = vrot.slane %v1228_v34, 3  ;;  %v1379_v34 = vld [vmem:[%s3288_s24 + $0x3f] sm:$0x1] }
  0x8e   : > { %1057 = vrot.lane.b32.xlu0 %v1056_v44, %s3234_s17  ;;  %v3678_v56 = vpop.permute.xlu1 %289  ;;  %1039 = vrot.lane.b32.xlu2 %v1038_v50, %s3235_s20  ;;  %v1229_v44 = vld [vmem:[%s3288_s24 + $0x37] sm:$0x1]  ;;  %v1388_v52 = vrot.slane %v1379_v34, 2 }
  0x8f   : > { %v1237_v0 = vsel %vm522_vm4, %v1236_v49, %v1235_v48 }
  0x90   : > { %v252_v3 = vpop.permute.xlu0 %251  ;;  %v3694_v12 = vpop.permute.xlu2 %418 }
  0x91   : > { %255 = vst.msk [vmem:[#allocation2] sm:$0xf] %vm254_vm8, %v252_v3  ;;  %v1211_v3 = vld [vmem:[%s3288_s24 + $0x4e] sm:$0x1] }
  0x92   : > { %v1221_v16 = vrot.slane %v1211_v3, 1  ;;  %v1434_v3 = vld [vmem:[%s3288_s24 + $0x1a] sm:$0x1] }
  0x94   : > { %1147 = vrot.lane.b32.xlu1 %v1146_v8, %s3218_s26  ;;  %v1302_v8 = vld [vmem:[%s3288_s24 + $0x23] sm:$0x1] }
  0x95   : > { %v1310_v20 = vrot.slane %v1302_v8, 3 }
  0x96   : > { %1111 = vrot.lane.b32.xlu0 %v1110_v18, %s3237_s22  ;;  %v309_v30 = vpop.permute.xlu1 %308  ;;  %1093 = vrot.lane.b32.xlu2 %v1092_v23, %s3238_s23  ;;  %v1303_v18 = vld [vmem:[%s3288_s24 + $0x3b] sm:$0x1] }
  0x97   : > { %v1312_v28 = vrot.slane %v1303_v18, 2  ;;  %v1311_v33 = vsel %vm522_vm4, %v1310_v20, %v1309_v19  ;;  %v1436_v20 = vld [vmem:[%s3288_s24 + $0x4a] sm:$0x1] }
  0x98   : > { %v271_v41 = vpop.permute.xlu0 %270  ;;  %v3723_v50 = vpop.permute.xlu2 %472 }
  0x99   : > { %274 = vst.msk [vmem:[#allocation2] sm:$0xf] %vm4721_vm9, %v271_v41  ;;  %v1358_v41 = vld [vmem:[%s3288_s24 + $0xe] sm:$0x1]  ;;  %v1313_v49 = vsel %vm525_vm5, %v1312_v28, %v1311_v33  ;;  %v1398_v28 = vld [vmem:[%s3288_s24 + $0x40] sm:$0x1] }
  0x9a   : > { %293 = vst.msk [vmem:[#allocation2] sm:$0xf] %vm4720_vm10, %v3678_v56  ;;  %v1238_v56 = vrot.slane %v1229_v44, 2  ;;  %v1315_v63 = vsel %vm528_vm6, %v1314_v40, %v1313_v49  ;;  %v1418_v33 = vld [vmem:[%s3288_s24 + $0x49] sm:$0x1] }
  0x9b   : > { %312 = vst.msk [vmem:[#allocation2] sm:$0xf] %vm4719_vm11, %v309_v30  ;;  %v1377_v30 = vld [vmem:[%s3288_s24 + $0xf] sm:$0x1]  ;;  %v1399_v40 = vld [vmem:[%s3288_s24 + $0x58] sm:$0x1] }
  0x9c   : > { %1204 = vrot.lane.b32.xlu1 %v1203_v47, %s3219_s27  ;;  %331 = vst.msk [vmem:[#allocation2] sm:$0xf] %vm4718_vm12, %v3632_v2  ;;  %v1258_v2 = vsel %vm525_vm5, %v1257_v43, %v1256_v58  ;;  %v1239_v13 = vsel %vm525_vm5, %v1238_v56, %v1237_v0  ;;  %v1385_v44 = vrot.slane %v1377_v30, 4  ;;  %v1340_v47 = vld [vmem:[%s3288_s24 + $0x25] sm:$0x1]  ;;  %v1367_v58 = vrot.slane %v1359_v42, 3 }
  0x9d   : > { %350 = vst.msk [vmem:[#allocation2] sm:$0xf] %vm4717_vm13, %v3663_v38  ;;  %v1282_v38 = vld [vmem:[%s3288_s24 + $0xa] sm:$0x1]  ;;  %v1260_v17 = vsel %vm528_vm6, %v1259_v59, %v1258_v2  ;;  %v1241_v25 = vsel %vm528_vm6, %v1240_v61, %v1239_v13  ;;  %v1341_v56 = vld [vmem:[%s3288_s24 + $0x3d] sm:$0x1] }
  0x9e   : > { %1185 = vrot.lane.b32.xlu0 %v1184_v57, %s3217_s25  ;;  %v401_v5 = vpop.permute.xlu1 %400  ;;  %1166 = vrot.lane.b32.xlu2 %v1165_v62, %s3220_s28  ;;  %v1290_v23 = vrot.slane %v1282_v38, 4  ;;  %v1366_v57 = vrot.slane %v1358_v41, 4  ;;  %v1347_v61 = vrot.slane %v1339_v46, 4  ;;  %v1348_v62 = vrot.slane %v1340_v47, 3  ;;  %v1416_v13 = vld [vmem:[%s3288_s24 + $0x19] sm:$0x1] }
  0x9f   : > { %403 = vst.msk [vmem:[#allocation2 + $0x8] sm:$0xf] %vm254_vm8, %v401_v5  ;;  %v1387_v0 = vsel %vm522_vm4, %v1386_v45, %v1385_v44  ;;  %v1390_v2 = vrot.slane %v1380_v51, 1  ;;  %v1350_v7 = vrot.slane %v1341_v56, 2  ;;  %v1371_v38 = vrot.slane %v1361_v1, 1 }
  0xa0   : > { %421 = vst.msk [vmem:[#allocation2 + $0x8] sm:$0xf] %vm4721_vm9, %v3694_v12  ;;  %v366_v11 = vpop.permute.xlu0 %365  ;;  %v531_v21 = vpop.permute.xlu2 %530  ;;  %v1220_v12 = vsel %vm525_vm5, %v1219_v4, %v1218_v9  ;;  %v1292_v43 = vsel %vm522_vm4, %v1291_v24, %v1290_v23  ;;  %v1369_v4 = vrot.slane %v1360_v55, 2  ;;  %v1368_v6 = vsel %vm522_vm4, %v1367_v58, %v1366_v57  ;;  %v1417_v24 = vld [vmem:[%s3288_s24 + $0x31] sm:$0x1] }
  0xa1   : > { %369 = vst.msk [vmem:[#allocation2] sm:$0xf] %vm4716_vm14, %v366_v11  ;;  %v1222_v29 = vsel %vm528_vm6, %v1221_v16, %v1220_v12  ;;  %v1294_v60 = vsel %vm525_vm5, %v1293_v36, %v1292_v43  ;;  %v1389_v9 = vsel %vm525_vm5, %v1388_v52, %v1387_v0  ;;  %v1441_v11 = vrot.slane %v1434_v3, 7  ;;  %v1396_v16 = vld [vmem:[%s3288_s24 + $0x10] sm:$0x1] }
  0xa2   : > { %534 = vst.msk [vmem:[#allocation2] sm:$0xf0] %vm533_vm15, %v531_v21  ;;  %v1296_v5 = vsel %vm528_vm6, %v1295_v53, %v1294_v60  ;;  %v1349_v14 = vsel %vm522_vm4, %v1348_v62, %v1347_v61  ;;  %v1370_v19 = vsel %vm525_vm5, %v1369_v4, %v1368_v6  ;;  %v1415_v21 = vld [vmem:[%s3288_s24 + $0x1] sm:$0x1]  ;;  %v1391_v22 = vsel %vm528_vm6, %v1390_v2, %v1389_v9  ;;  %v1488_v36 = vld [vmem:[%s3288_s24 + $0x1d] sm:$0x1] }
  0xa3   : > { %v1443_v23 = vrot.slane %v1435_v10, 6  ;;  %v1351_v27 = vsel %vm525_vm5, %v1350_v7, %v1349_v14  ;;  %v1372_v31 = vsel %vm528_vm6, %v1371_v38, %v1370_v19  ;;  %v1442_v32 = vsel %vm226_vm1, %v1441_v11, %v1433_v15  ;;  %v1487_v44 = vld [vmem:[%s3288_s24 + $0x5] sm:$0x1]  ;;  %v1470_v45 = vld [vmem:[%s3288_s24 + $0x1c] sm:$0x1] }
  0xa4   : > { %1261 = vrot.lane.b32.xlu1 %v1260_v17, %s3222_s30  ;;  %v1397_v17 = vld [vmem:[%s3288_s24 + $0x28] sm:$0x1]  ;;  %v1425_v34 = vrot.slane %v1417_v24, 6  ;;  %v1407_v41 = vrot.slane %v1398_v28, 2  ;;  %v1427_v47 = vrot.slane %v1418_v33, 5  ;;  %v1495_v49 = vrot.slane %v1488_v36, 7 }
  0xa5   : > { %v1405_v30 = vrot.slane %v1397_v17, 3  ;;  %v1444_v43 = vsel %vm229_vm2, %v1443_v23, %v1442_v32  ;;  %v1452_v51 = vld [vmem:[%s3288_s24 + $0x1b] sm:$0x1]  ;;  %v1469_v55 = vld [vmem:[%s3288_s24 + $0x4] sm:$0x1]  ;;  %v1409_v57 = vrot.slane %v1399_v40, 1 }
  0xa6   : > { %1242 = vrot.lane.b32.xlu0 %v1241_v25, %s3223_s6  ;;  %v455_v37 = vpop.permute.xlu1 %454  ;;  %1223 = vrot.lane.b32.xlu2 %v1222_v29, %s3221_s29  ;;  %v1423_v25 = vrot.slane %v1416_v13, 7  ;;  %v1404_v29 = vrot.slane %v1396_v16, 4  ;;  %v1471_v60 = vld [vmem:[%s3288_s24 + $0x34] sm:$0x1]  ;;  %v1477_v56 = vrot.slane %v1470_v45, 7  ;;  %v1459_v1 = vrot.slane %v1452_v51, 7 }
  0xa7   : > { %v1453_v0 = vld [vmem:[%s3288_s24 + $0x33] sm:$0x1]  ;;  %v1496_v4 = vsel %vm226_vm1, %v1495_v49, %v1487_v44  ;;  %v1472_v2 = vld [vmem:[%s3288_s24 + $0x4c] sm:$0x1]  ;;  %v1479_v6 = vrot.slane %v1471_v60, 6  ;;  %vm4722_vm9 = vcmask 1048452  }
  0xa8   : > { %v437_v48 = vpop.permute.xlu0 %436  ;;  %v3786_v59 = vpop.permute.xlu2 %590  ;;  %v1424_v39 = vsel %vm226_vm1, %v1423_v25, %v1415_v21  ;;  %v1406_v46 = vsel %vm522_vm4, %v1405_v30, %v1404_v29  ;;  %v2614_v7 = vld [vmem:[%s3288_s24 + $0x1b] sm:$0x1]  ;;  %v1478_v9 = vsel %vm226_vm1, %v1477_v56, %v1469_v55  ;;  %v1454_v38 = vld [vmem:[%s3288_s24 + $0x4b] sm:$0x1]  ;;  %v1461_v10 = vrot.slane %v1453_v0, 6 }
  0xa9   : > { %439 = vst.msk [vmem:[#allocation2 + $0x8] sm:$0xf] %vm4720_vm10, %v437_v48  ;;  %v1489_v48 = vld [vmem:[%s3288_s24 + $0x35] sm:$0x1]  ;;  %v1426_v53 = vsel %vm229_vm2, %v1425_v34, %v1424_v39  ;;  %v1408_v62 = vsel %vm525_vm5, %v1407_v41, %v1406_v46  ;;  %v2613_v13 = vld [vmem:[%s3288_s24 + $0x3] sm:$0x1]  ;;  %v1480_v21 = vsel %vm229_vm2, %v1479_v6, %v1478_v9 }
  0xaa   : > { %457 = vst.msk [vmem:[#allocation2 + $0x8] sm:$0xf] %vm4719_vm11, %v455_v37  ;;  %v1445_v37 = vrot.slane %v1436_v20, 5  ;;  %v1428_v3 = vsel %vm232_vm3, %v1427_v47, %v1426_v53  ;;  %vm633_vm11 = vcmask 786052   ;;  %v2740_v14 = vld [vmem:[%s3288_s24 + $0x22] sm:$0x1] }
  0xab   : > { %475 = vst.msk [vmem:[#allocation2 + $0x8] sm:$0xf] %vm4718_vm12, %v3723_v50  ;;  %v1342_v50 = vld [vmem:[%s3288_s24 + $0x55] sm:$0x1]  ;;  %vm613_vm12 = vcmask 654852   ;;  %v1481_v16 = vrot.slane %v1472_v2, 5 }
  0xac   : > { %1335 = vrot.lane.b32.xlu1 %v1334_v54, %s3217_s25  ;;  %v1352_v12 = vrot.slane %v1342_v50, 1  ;;  %v1490_v54 = vld [vmem:[%s3288_s24 + $0x4d] sm:$0x1]  ;;  %v1446_v58 = vsel %vm232_vm3, %v1445_v37, %v1444_v43  ;;  %v1410_v50 = vsel %vm528_vm6, %v1409_v57, %v1408_v62  ;;  %v2615_v17 = vld [vmem:[%s3288_s24 + $0x33] sm:$0x1]  ;;  %vm4724_vm10 = vcmask 917252  }
  0xad   : > { %v2596_v19 = vld [vmem:[%s3288_s24 + $0x1a] sm:$0x1]  ;;  %v1463_v24 = vrot.slane %v1454_v38, 5  ;;  %v2747_v28 = vrot.slane %v2740_v14, 7  ;;  %v2597_v32 = vld [vmem:[%s3288_s24 + $0x32] sm:$0x1]  ;;  %v1482_v34 = vsel %vm232_vm3, %v1481_v16, %v1480_v21 }
  0xae   : > { %1316 = vrot.lane.b32.xlu0 %v1315_v63, %s3220_s28  ;;  %v509_v8 = vpop.permute.xlu1 %508  ;;  %1297 = vrot.lane.b32.xlu2 %v1296_v5, %s3218_s26  ;;  %v1353_v35 = vsel %vm528_vm6, %v1352_v12, %v1351_v27  ;;  %v1497_v63 = vrot.slane %v1489_v48, 6  ;;  %v1451_v5 = vld [vmem:[%s3288_s24 + $0x3] sm:$0x1]  ;;  %v2616_v12 = vld [vmem:[%s3288_s24 + $0x4b] sm:$0x1]  ;;  %v2603_v33 = vrot.slane %v2596_v19, 7 }
  0xaf   : > { %v1460_v15 = vsel %vm226_vm1, %v1459_v1, %v1451_v5  ;;  %v2741_v23 = vld [vmem:[%s3288_s24 + $0x3a] sm:$0x1]  ;;  %v2742_v27 = vld [vmem:[%s3288_s24 + $0x52] sm:$0x1]  ;;  %v2595_v36 = vld [vmem:[%s3288_s24 + $0x2] sm:$0x1] }
  0xb0   : > { %v491_v18 = vpop.permute.xlu0 %490  ;;  %v3816_v26 = vpop.permute.xlu2 %650  ;;  %v1498_v11 = vsel %vm229_vm2, %v1497_v63, %v1496_v4  ;;  %v1462_v30 = vsel %vm229_vm2, %v1461_v10, %v1460_v15  ;;  %v2749_v37 = vrot.slane %v2741_v23, 6  ;;  %v2443_v40 = vld [vmem:[%s3288_s24 + $0xa] sm:$0x1]  ;;  %v2444_v41 = vld [vmem:[%s3288_s24 + $0x22] sm:$0x1]  ;;  %v2751_v44 = vrot.slane %v2742_v27, 5 }
  0xb1   : > { %493 = vst.msk [vmem:[#allocation2 + $0x8] sm:$0xf] %vm4717_vm13, %v491_v18  ;;  %vm593_vm13 = vcmask 523652   ;;  %v2621_v18 = vrot.slane %v2614_v7, 7  ;;  %v1464_v39 = vsel %vm232_vm3, %v1463_v24, %v1462_v30  ;;  %v2605_v45 = vrot.slane %v2597_v32, 6 }
  0xb2   : > { %511 = vst.msk [vmem:[#allocation2 + $0x8] sm:$0xf] %vm4716_vm14, %v509_v8  ;;  %vm573_vm14 = vcmask 392452   ;;  %v1499_v8 = vrot.slane %v1490_v54, 5  ;;  %v2445_v48 = vld [vmem:[%s3288_s24 + $0x3a] sm:$0x1] }
  0xb3   : > { %v2291_v49 = vld [vmem:[%s3288_s24 + $0x2] sm:$0x1]  ;;  %v2292_v51 = vld [vmem:[%s3288_s24 + $0x1a] sm:$0x1]  ;;  %v2451_v53 = vrot.slane %v2443_v40, 4  ;;  %v2452_v54 = vrot.slane %v2444_v41, 3 }
  0xb4   : > { %1392 = vrot.lane.b32.xlu1 %v1391_v22, %s3223_s6  ;;  %v2739_v22 = vld [vmem:[%s3288_s24 + $0xa] sm:$0x1]  ;;  %v1500_v25 = vsel %vm232_vm3, %v1499_v8, %v1498_v11  ;;  %v2758_v55 = vld [vmem:[%s3288_s24 + $0x23] sm:$0x1]  ;;  %v2293_v62 = vld [vmem:[%s3288_s24 + $0x32] sm:$0x1] }
  0xb5   : > { %v2748_v43 = vsel %vm226_vm1, %v2747_v28, %v2739_v22  ;;  %v2299_v63 = vrot.slane %v2291_v49, 4  ;;  %v2300_v0 = vrot.slane %v2292_v51, 3  ;;  %v2454_v4 = vrot.slane %v2445_v48, 2  ;;  %v2759_v5 = vld [vmem:[%s3288_s24 + $0x3b] sm:$0x1] }
  0xb6   : > { %1373 = vrot.lane.b32.xlu0 %v1372_v31, %s3221_s29  ;;  %v571_v42 = vpop.permute.xlu1 %570  ;;  %1354 = vrot.lane.b32.xlu2 %v1353_v35, %s3219_s27  ;;  %v2623_v31 = vrot.slane %v2615_v17, 6  ;;  %v2622_v35 = vsel %vm226_vm1, %v2621_v18, %v2613_v13  ;;  %v2765_v2 = vrot.slane %v2758_v55, 7  ;;  %v2294_v7 = vld [vmem:[%s3288_s24 + $0x4a] sm:$0x1]  ;;  %v2024_v8 = vld [vmem:[%s3288_s24 + $0x1b] sm:$0x1] }
  0xb7   : > { %v2757_v9 = vld [vmem:[%s3288_s24 + $0xb] sm:$0x1]  ;;  %v2302_v38 = vrot.slane %v2293_v62, 2  ;;  %v2301_v11 = vsel %vm522_vm4, %v2300_v0, %v2299_v63  ;;  %v2760_v13 = vld [vmem:[%s3288_s24 + $0x53] sm:$0x1]  ;;  %v2767_v14 = vrot.slane %v2759_v5, 6 }
  0xb8   : > { %v551_v52 = vpop.permute.xlu0 %550  ;;  %v3843_v61 = vpop.permute.xlu2 %709  ;;  %v2624_v47 = vsel %vm229_vm2, %v2623_v31, %v2622_v35  ;;  %v2304_v17 = vrot.slane %v2294_v7, 1  ;;  %v2031_v18 = vrot.slane %v2024_v8, 7  ;;  %v2776_v19 = vld [vmem:[%s3288_s24 + $0x24] sm:$0x1]  ;;  %v2023_v21 = vld [vmem:[%s3288_s24 + $0x3] sm:$0x1] }
  0xb9   : > { %554 = vst.msk [vmem:[#allocation2] sm:$0xf0] %vm553_vm0, %v551_v52  ;;  %v2604_v52 = vsel %vm226_vm1, %v2603_v33, %v2595_v36  ;;  %v2632_v22 = vld [vmem:[%s3288_s24 + $0x1c] sm:$0x1]  ;;  %v2303_v24 = vsel %vm525_vm5, %v2302_v38, %v2301_v11  ;;  %v2775_v27 = vld [vmem:[%s3288_s24 + $0xc] sm:$0x1] }
  0xba   : > { %574 = vst.msk [vmem:[#allocation2] sm:$0xf0] %vm573_vm14, %v571_v42  ;;  %v2625_v42 = vrot.slane %v2616_v12, 5  ;;  %v2025_v12 = vld [vmem:[%s3288_s24 + $0x33] sm:$0x1]  ;;  %v2769_v28 = vrot.slane %v2760_v13, 5  ;;  %v2032_v40 = vsel %vm226_vm1, %v2031_v18, %v2023_v21 }
  0xbb   : > { %594 = vst.msk [vmem:[#allocation2] sm:$0xf0] %vm593_vm13, %v3786_v59  ;;  %v2777_v31 = vld [vmem:[%s3288_s24 + $0x3c] sm:$0x1]  ;;  %v2783_v32 = vrot.slane %v2776_v19, 7  ;;  %v2033_v35 = vrot.slane %v2025_v12, 6 }
  0xbc   : > { %1447 = vrot.lane.b32.xlu1 %v1446_v58, %s3225_s8  ;;  %v2750_v58 = vsel %vm229_vm2, %v2749_v37, %v2748_v43  ;;  %v2626_v56 = vsel %vm232_vm3, %v2625_v42, %v2624_v47  ;;  %v2633_v36 = vld [vmem:[%s3288_s24 + $0x34] sm:$0x1]  ;;  %v2639_v37 = vrot.slane %v2632_v22, 7  ;;  %v2631_v42 = vld [vmem:[%s3288_s24 + $0x4] sm:$0x1]  ;;  %v2785_v43 = vrot.slane %v2777_v31, 6 }
  0xbd   : > { %v2752_v6 = vsel %vm232_vm3, %v2751_v44, %v2750_v58  ;;  %v2778_v41 = vld [vmem:[%s3288_s24 + $0x54] sm:$0x1]  ;;  %v2634_v47 = vld [vmem:[%s3288_s24 + $0x4c] sm:$0x1]  ;;  %v2641_v48 = vrot.slane %v2633_v36, 6  ;;  %v2034_v51 = vsel %vm229_vm2, %v2033_v35, %v2032_v40 }
  0xbe   : > { %1429 = vrot.lane.b32.xlu0 %v1428_v3, %s3226_s9  ;;  %v631_v59 = vpop.permute.xlu1 %630  ;;  %1411 = vrot.lane.b32.xlu2 %v1410_v50, %s3222_s30  ;;  %v2606_v3 = vsel %vm229_vm2, %v2605_v45, %v2604_v52  ;;  %v2453_v50 = vsel %vm522_vm4, %v2452_v54, %v2451_v53  ;;  %v2463_v45 = vld [vmem:[%s3288_s24 + $0x23] sm:$0x1]  ;;  %v2787_v52 = vrot.slane %v2778_v41, 5  ;;  %v2311_v54 = vld [vmem:[%s3288_s24 + $0x1b] sm:$0x1]  ;;  %v2640_v55 = vsel %vm226_vm1, %v2639_v37, %v2631_v42 }
  0xbf   : > { %v2455_v16 = vsel %vm525_vm5, %v2454_v4, %v2453_v50  ;;  %v2310_v53 = vld [vmem:[%s3288_s24 + $0x3] sm:$0x1]  ;;  %v2465_v0 = vld [vmem:[%s3288_s24 + $0x53] sm:$0x1]  ;;  %v2642_v50 = vsel %vm229_vm2, %v2641_v48, %v2640_v55  ;;  %v1560_v7 = vld [vmem:[%s3288_s24 + $0x21] sm:$0x1] }
  0xc0   : > { %v611_v20 = vpop.permute.xlu0 %610  ;;  %v3874_v29 = vpop.permute.xlu2 %766  ;;  %v2318_v5 = vrot.slane %v2310_v53, 4  ;;  %v2165_v11 = vld [vmem:[%s3288_s24 + $0xb] sm:$0x1]  ;;  %v2475_v13 = vrot.slane %v2465_v0, 1  ;;  %v2794_v19 = vld [vmem:[%s3288_s24 + $0x25] sm:$0x1] }
  0xc1   : > { %614 = vst.msk [vmem:[#allocation2] sm:$0xf0] %vm613_vm12, %v611_v20  ;;  %v2766_v20 = vsel %vm226_vm1, %v2765_v2, %v2757_v9  ;;  %v2319_v2 = vrot.slane %v2311_v54, 3  ;;  %v2167_v9 = vld [vmem:[%s3288_s24 + $0x3b] sm:$0x1]  ;;  %v2801_v37 = vrot.slane %v2794_v19, 7 }
  0xc2   : > { %634 = vst.msk [vmem:[#allocation2] sm:$0xf0] %vm633_vm11, %v631_v59  ;;  %v2175_v21 = vrot.slane %v2167_v9, 6  ;;  %v2650_v31 = vld [vmem:[%s3288_s24 + $0x1d] sm:$0x1] }
  0xc3   : > { %654 = vst.msk [vmem:[#allocation2] sm:$0xf0] %vm4724_vm10, %v3816_v26  ;;  %v2598_v26 = vld [vmem:[%s3288_s24 + $0x4a] sm:$0x1]  ;;  %v2320_v18 = vsel %vm522_vm4, %v2319_v2, %v2318_v5  ;;  %v2793_v35 = vld [vmem:[%s3288_s24 + $0xd] sm:$0x1] }
  0xc4   : > { %1501 = vrot.lane.b32.xlu1 %v1500_v25, %s3228_s11  ;;  %v2607_v60 = vrot.slane %v2598_v26, 5  ;;  %v2026_v25 = vld [vmem:[%s3288_s24 + $0x4b] sm:$0x1]  ;;  %v3992_v36 = vld [vmem:[%s3288_s24 + $0x55] sm:$0x1] }
  0xc5   : > { %v2462_v26 = vld [vmem:[%s3288_s24 + $0xb] sm:$0x1]  ;;  %v2042_v40 = vld [vmem:[%s3288_s24 + $0x1c] sm:$0x1]  ;;  %v2649_v48 = vld [vmem:[%s3288_s24 + $0x5] sm:$0x1] }
  0xc6   : > { %1483 = vrot.lane.b32.xlu0 %v1482_v34, %s3229_s12  ;;  %v691_v46 = vpop.permute.xlu1 %690  ;;  %1465 = vrot.lane.b32.xlu2 %v1464_v39, %s3224_s7  ;;  %v2608_v10 = vsel %vm232_vm3, %v2607_v60, %v2606_v3  ;;  %v2768_v34 = vsel %vm229_vm2, %v2767_v14, %v2766_v20  ;;  %v2305_v39 = vsel %vm528_vm6, %v2304_v17, %v2303_v24  ;;  %v2470_v58 = vrot.slane %v2462_v26, 4  ;;  %v2312_v3 = vld [vmem:[%s3288_s24 + $0x33] sm:$0x1]  ;;  %v2313_v14 = vld [vmem:[%s3288_s24 + $0x4b] sm:$0x1] }
  0xc7   : > { %693 = vst.msk [vmem:[#allocation2 + $0x8] sm:$0xf0] %vm533_vm15, %v691_v46  ;;  %v2770_v44 = vsel %vm232_vm3, %v2769_v28, %v2768_v34  ;;  %v2035_v46 = vrot.slane %v2026_v25, 5  ;;  %v2471_v60 = vrot.slane %v2463_v45, 3  ;;  %v1561_v17 = vld [vmem:[%s3288_s24 + $0x39] sm:$0x1] }
  0xc8   : > { %712 = vst.msk [vmem:[#allocation2 + $0x8] sm:$0xf0] %vm553_vm0, %v3843_v61  ;;  %v671_v57 = vpop.permute.xlu0 %670  ;;  %v3905_v1 = vpop.permute.xlu2 %823  ;;  %v2446_v61 = vld [vmem:[%s3288_s24 + $0x52] sm:$0x1]  ;;  %v2168_v20 = vld [vmem:[%s3288_s24 + $0x53] sm:$0x1] }
  0xc9   : > { %674 = vst.msk [vmem:[#allocation2] sm:$0xf0] %vm4722_vm9, %v671_v57  ;;  %v2456_v59 = vrot.slane %v2446_v61, 1  ;;  %v2464_v57 = vld [vmem:[%s3288_s24 + $0x3b] sm:$0x1]  ;;  %v2643_v61 = vrot.slane %v2634_v47, 5  ;;  %v2036_v4 = vsel %vm232_vm3, %v2035_v46, %v2034_v51 }
  0xca   : > { %v2473_v8 = vrot.slane %v2464_v57, 2  ;;  %v2323_v25 = vrot.slane %v2313_v14, 1  ;;  %v1569_v28 = vrot.slane %v1561_v17, 6  ;;  %v4000_v26 = vld [vmem:[%s3288_s24 + $0x34] sm:$0x1]  ;;  %v2805_v55 = vrot.slane %v3992_v36, 5 }
  0xcb   : > { %v2457_v30 = vsel %vm528_vm6, %v2456_v59, %v2455_v16  ;;  %v2472_v59 = vsel %vm522_vm4, %v2471_v60, %v2470_v58  ;;  %v2644_v16 = vsel %vm232_vm3, %v2643_v61, %v2642_v50  ;;  %v4003_v45 = vld [vmem:[%s3288_s24 + $0x9] sm:$0x1]  ;;  %v2651_v46 = vld [vmem:[%s3288_s24 + $0x35] sm:$0x1]  ;;  %v2049_v57 = vrot.slane %v2042_v40, 7 }
  0xcc   : > { %2627 = vrot.lane.b32.xlu1 %v2626_v56, %s3232_s15  ;;  %v2166_v56 = vld [vmem:[%s3288_s24 + $0x23] sm:$0x1]  ;;  %v2474_v22 = vsel %vm525_vm5, %v2473_v8, %v2472_v59  ;;  %v1856_v58 = vld [vmem:[%s3288_s24 + $0x21] sm:$0x1]  ;;  %v2659_v60 = vrot.slane %v2651_v46, 6  ;;  %v1863_v0 = vrot.slane %v4003_v45, 4 }
  0xcd   : > { %v2173_v38 = vrot.slane %v2166_v56, 7  ;;  %v2476_v41 = vsel %vm528_vm6, %v2475_v13, %v2474_v22  ;;  %v1857_v5 = vld [vmem:[%s3288_s24 + $0x39] sm:$0x1]  ;;  %v1115_v50 = vld [vmem:[%s3288_s24 + $0x1] sm:$0x1] }
  0xce   : > { %2753 = vrot.lane.b32.xlu0 %v2752_v6, %s3233_s16  ;;  %v748_v15 = vpop.permute.xlu1 %747  ;;  %2609 = vrot.lane.b32.xlu2 %v2608_v10, %s3233_s16  ;;  %v1704_v2 = vld [vmem:[%s3288_s24 + $0x19] sm:$0x1]  ;;  %v1117_v59 = vld [vmem:[%s3288_s24 + $0x31] sm:$0x1]  ;;  %v1123_v13 = vrot.slane %v1115_v50, 4 }
  0xcf   : > { %v2174_v24 = vsel %vm226_vm1, %v2173_v38, %v2165_v11  ;;  %v1118_v11 = vld [vmem:[%s3288_s24 + $0x49] sm:$0x1]  ;;  %v1705_v19 = vld [vmem:[%s3288_s24 + $0x31] sm:$0x1]  ;;  %v2184_v46 = vld [vmem:[%s3288_s24 + $0x24] sm:$0x1] }
  0xd0   : > { %v729_v23 = vpop.permute.xlu0 %728  ;;  %v3933_v33 = vpop.permute.xlu2 %877  ;;  %v1706_v36 = vld [vmem:[%s3288_s24 + $0x49] sm:$0x1] }
  0xd1   : > { %731 = vst.msk [vmem:[#allocation2 + $0x8] sm:$0xf0] %vm573_vm14, %v729_v23  ;;  %v1559_v23 = vld [vmem:[%s3288_s24 + $0x9] sm:$0x1] }
  0xd2   : > { %750 = vst.msk [vmem:[#allocation2 + $0x8] sm:$0xf0] %vm593_vm13, %v748_v15  ;;  %v2321_v15 = vrot.slane %v2312_v3, 2 }
  0xd3   : > { %769 = vst.msk [vmem:[#allocation2 + $0x8] sm:$0xf0] %vm613_vm12, %v3874_v29  ;;  %v2784_v29 = vsel %vm226_vm1, %v2783_v32, %v2775_v27  ;;  %v1562_v27 = vld [vmem:[%s3288_s24 + $0x51] sm:$0x1] }
  0xd4   : > { %2458 = vrot.lane.b32.xlu1 %v2457_v30, %s3226_s9  ;;  %v2786_v63 = vsel %vm229_vm2, %v2785_v43, %v2784_v29  ;;  %v2795_v30 = vld [vmem:[%s3288_s24 + $0x3d] sm:$0x1]  ;;  %v2322_v34 = vsel %vm525_vm5, %v2321_v15, %v2320_v18  ;;  %v2657_v29 = vrot.slane %v2650_v31, 7  ;;  %v1864_v15 = vrot.slane %v1856_v58, 3 }
  0xd5   : > { %v2788_v10 = vsel %vm232_vm3, %v2787_v52, %v2786_v63  ;;  %v2324_v47 = vsel %vm528_vm6, %v2323_v25, %v2322_v34  ;;  %v1571_v52 = vrot.slane %v1562_v27, 5  ;;  %v2803_v53 = vrot.slane %v2795_v30, 6  ;;  %v2482_v25 = vld [vmem:[%s3288_s24 + $0x24] sm:$0x1] }
  0xd6   : > { %2306 = vrot.lane.b32.xlu0 %v2305_v39, %s3226_s9  ;;  %v805_v49 = vpop.permute.xlu1 %804  ;;  %2771 = vrot.lane.b32.xlu2 %v2770_v44, %s3232_s15  ;;  %v2177_v39 = vrot.slane %v2168_v20, 5  ;;  %v2176_v44 = vsel %vm229_vm2, %v2175_v21, %v2174_v24  ;;  %v2051_v63 = vrot.slane %v4000_v26, 6  ;;  %v2658_v3 = vsel %vm226_vm1, %v2657_v29, %v2649_v48  ;;  %v2481_v24 = vld [vmem:[%s3288_s24 + $0xc] sm:$0x1]  ;;  %v2484_v48 = vld [vmem:[%s3288_s24 + $0x54] sm:$0x1] }
  0xd7   : > { %v2660_v17 = vsel %vm229_vm2, %v2659_v60, %v2658_v3  ;;  %v1126_v18 = vrot.slane %v1117_v59, 2  ;;  %v1712_v21 = vrot.slane %v1704_v2, 3  ;;  %v1866_v30 = vrot.slane %v1857_v5, 2  ;;  %v2183_v3 = vld [vmem:[%s3288_s24 + $0xc] sm:$0x1] }
  0xd8   : > { %v786_v62 = vpop.permute.xlu0 %785  ;;  %v3963_v6 = vpop.permute.xlu2 %931  ;;  %v2178_v54 = vsel %vm232_vm3, %v2177_v39, %v2176_v44  ;;  %v2330_v44 = vld [vmem:[%s3288_s24 + $0x1c] sm:$0x1]  ;;  %v1579_v59 = vld [vmem:[%s3288_s24 + $0x3a] sm:$0x1] }
  0xd9   : > { %788 = vst.msk [vmem:[#allocation2 + $0x8] sm:$0xf0] %vm633_vm11, %v786_v62  ;;  %v2041_v62 = vld [vmem:[%s3288_s24 + $0x4] sm:$0x1] }
  0xda   : > { %807 = vst.msk [vmem:[#allocation2 + $0x8] sm:$0xf0] %vm4724_vm10, %v805_v49  ;;  %v2652_v49 = vld [vmem:[%s3288_s24 + $0x4d] sm:$0x1]  ;;  %vm4728_vm10 = vcmask 781952  }
  0xdb   : > { %826 = vst.msk [vmem:[#allocation2 + $0x8] sm:$0xf0] %vm4722_vm9, %v3905_v1  ;;  %v1567_v1 = vrot.slane %v1560_v7, 7  ;;  %vm4725_vm9 = vcmask 388352   ;;  %v2661_v61 = vrot.slane %v2652_v49, 5 }
  0xdc   : > { %2037 = vrot.lane.b32.xlu1 %v2036_v4, %s3218_s26  ;;  %v1703_v4 = vld [vmem:[%s3288_s24 + $0x1] sm:$0x1]  ;;  %v1116_v7 = vld [vmem:[%s3288_s24 + $0x19] sm:$0x1] }
  0xdd   : > { %v1568_v42 = vsel %vm226_vm1, %v1567_v1, %v1559_v23  ;;  %v1124_v14 = vrot.slane %v1116_v7, 3  ;;  %v1128_v1 = vrot.slane %v1118_v11, 1  ;;  %v1711_v20 = vrot.slane %v1703_v4, 4 }
  0xde   : > { %2789 = vrot.lane.b32.xlu0 %v2788_v10, %s3236_s21  ;;  %v860_v12 = vpop.permute.xlu1 %859  ;;  %2645 = vrot.lane.b32.xlu2 %v2644_v16, %s3236_s21  ;;  %v1570_v51 = vsel %vm229_vm2, %v1569_v28, %v1568_v42  ;;  %v2044_v10 = vld [vmem:[%s3288_s24 + $0x4c] sm:$0x1]  ;;  %v2050_v23 = vsel %vm226_vm1, %v2049_v57, %v2041_v62  ;;  %v1858_v28 = vld [vmem:[%s3288_s24 + $0x51] sm:$0x1]  ;;  %v2662_v31 = vsel %vm232_vm3, %v2661_v61, %v2660_v17  ;;  %v2490_v42 = vrot.slane %v2482_v25, 3 }
  0xdf   : > { %v1572_v9 = vsel %vm232_vm3, %v1571_v52, %v1570_v51  ;;  %v2052_v40 = vsel %vm229_vm2, %v2051_v63, %v2050_v23  ;;  %v1713_v26 = vsel %vm522_vm4, %v1712_v21, %v1711_v20  ;;  %v1868_v45 = vrot.slane %v1858_v28, 1  ;;  %v2331_v51 = vld [vmem:[%s3288_s24 + $0x34] sm:$0x1]  ;;  %v2813_v17 = vld [vmem:[%s3288_s24 + $0x3e] sm:$0x1] }
  0xe0   : > { %v842_v32 = vpop.permute.xlu0 %841  ;;  %v986_v43 = vpop.permute.xlu2 %985  ;;  %v1716_v52 = vrot.slane %v1706_v36, 1  ;;  %v2191_v62 = vrot.slane %v2184_v46, 7  ;;  %v2186_v61 = vld [vmem:[%s3288_s24 + $0x54] sm:$0x1]  ;;  %v2494_v4 = vrot.slane %v2484_v48, 1  ;;  %v2340_v5 = vrot.slane %v2331_v51, 2 }
  0xe1   : > { %844 = vst.msk [vmem:[#allocation2 + $0x10] sm:$0xf] %vm4723_vm7, %v842_v32  ;;  %v2483_v32 = vld [vmem:[%s3288_s24 + $0x3c] sm:$0x1]  ;;  %v2811_v23 = vld [vmem:[%s3288_s24 + $0xe] sm:$0x1] }
  0xe2   : > { %862 = vst.msk [vmem:[#allocation2 + $0x10] sm:$0xf] %vm254_vm8, %v860_v12  ;;  %v1125_v12 = vsel %vm522_vm4, %v1124_v14, %v1123_v13  ;;  %v2492_v49 = vrot.slane %v2483_v32, 2  ;;  %v2812_v13 = vld [vmem:[%s3288_s24 + $0x26] sm:$0x1]  ;;  %v2192_v14 = vsel %vm226_vm1, %v2191_v62, %v2183_v3 }
  0xe3   : > { %880 = vst.msk [vmem:[#allocation2 + $0x10] sm:$0xf] %vm4725_vm9, %v3933_v33  ;;  %v2802_v33 = vsel %vm226_vm1, %v2801_v37, %v2793_v35  ;;  %vm4726_vm9 = vcmask 519552   ;;  %v1127_v27 = vsel %vm525_vm5, %v1126_v18, %v1125_v12  ;;  %v1865_v35 = vsel %vm522_vm4, %v1864_v15, %v1863_v0  ;;  %v1578_v0 = vld [vmem:[%s3288_s24 + $0x22] sm:$0x1] }
  0xe4   : > { %2477 = vrot.lane.b32.xlu1 %v2476_v41, %s3225_s8  ;;  %988 = vst.msk [vmem:[#allocation2 + $0x18] sm:$0xf] %vm4723_vm7, %v986_v43  ;;  %v2804_v38 = vsel %vm229_vm2, %v2803_v53, %v2802_v33  ;;  %vm4727_vm7 = vcmask 650752   ;;  %v1129_v34 = vsel %vm528_vm6, %v1128_v1, %v1127_v27  ;;  %v1714_v37 = vrot.slane %v1705_v19, 2  ;;  %v2329_v43 = vld [vmem:[%s3288_s24 + $0x4] sm:$0x1] }
  0xe5   : > { %v2806_v22 = vsel %vm232_vm3, %v2805_v55, %v2804_v38  ;;  %1131 = vst.msk [vmem:[#allocation2 + $0x10] sm:$0xf0] %vm533_vm15, %v1129_v34  ;;  %v2489_v41 = vrot.slane %v2481_v24, 4  ;;  %v2337_v33 = vrot.slane %v2329_v43, 4  ;;  %v2338_v55 = vrot.slane %v2330_v44, 3 }
  0xe6   : > { %2325 = vrot.lane.b32.xlu0 %v2324_v47, %s3225_s8  ;;  %v914_v56 = vpop.permute.xlu1 %913  ;;  %2179 = vrot.lane.b32.xlu2 %v2178_v54, %s3218_s26  ;;  %v1867_v47 = vsel %vm525_vm5, %v1866_v30, %v1865_v35  ;;  %v2332_v54 = vld [vmem:[%s3288_s24 + $0x4c] sm:$0x1]  ;;  %v1715_v58 = vsel %vm525_vm5, %v1714_v37, %v1713_v26  ;;  %v1585_v11 = vrot.slane %v1578_v0, 7  ;;  %v2195_v15 = vrot.slane %v2186_v61, 5  ;;  %v2668_v18 = vld [vmem:[%s3288_s24 + $0x1e] sm:$0x1] }
  0xe7   : > { %v2491_v60 = vsel %vm522_vm4, %v2490_v42, %v2489_v41  ;;  %v1869_v63 = vsel %vm528_vm6, %v1868_v45, %v1867_v47  ;;  %v1717_v2 = vsel %vm528_vm6, %v1716_v52, %v1715_v58  ;;  %v2339_v7 = vsel %vm522_vm4, %v2338_v55, %v2337_v33  ;;  %v1265_v1 = vld [vmem:[%s3288_s24 + $0x9] sm:$0x1]  ;;  %v1266_v19 = vld [vmem:[%s3288_s24 + $0x21] sm:$0x1]  ;;  %v1267_v24 = vld [vmem:[%s3288_s24 + $0x39] sm:$0x1] }
  0xe8   : > { %v896_v8 = vpop.permute.xlu0 %895  ;;  %v4036_v16 = vpop.permute.xlu2 %1039  ;;  %v2493_v50 = vsel %vm525_vm5, %v2492_v49, %v2491_v60  ;;  %v2341_v12 = vsel %vm525_vm5, %v2340_v5, %v2339_v7  ;;  %v1268_v25 = vld [vmem:[%s3288_s24 + $0x51] sm:$0x1]  ;;  %v1273_v27 = vrot.slane %v1265_v1, 4  ;;  %v1274_v28 = vrot.slane %v1266_v19, 3  ;;  %v2669_v36 = vld [vmem:[%s3288_s24 + $0x36] sm:$0x1] }
  0xe9   : > { %898 = vst.msk [vmem:[#allocation2 + $0x10] sm:$0xf] %vm4726_vm9, %v896_v8  ;;  %v2342_v8 = vrot.slane %v2332_v54, 1  ;;  %v2495_v21 = vsel %vm528_vm6, %v2494_v4, %v2493_v50  ;;  %v2819_v30 = vrot.slane %v2812_v13, 7  ;;  %v1276_v34 = vrot.slane %v1267_v24, 2 }
  0xea   : > { %916 = vst.msk [vmem:[#allocation2 + $0x10] sm:$0xf] %vm4727_vm7, %v914_v56  ;;  %vm4729_vm7 = vcmask 913152   ;;  %v2185_v56 = vld [vmem:[%s3288_s24 + $0x3c] sm:$0x1]  ;;  %vm4731_vm9 = vcmask 388352  }
  0xeb   : > { %934 = vst.msk [vmem:[#allocation2 + $0x10] sm:$0xf] %vm4728_vm10, %v3963_v6  ;;  %v2053_v6 = vrot.slane %v2044_v10, 5  ;;  %vm4730_vm10 = vcmask 1044352   ;;  %v1577_v10 = vld [vmem:[%s3288_s24 + $0xa] sm:$0x1]  ;;  %v2820_v48 = vsel %vm226_vm1, %v2819_v30, %v2811_v23 }
  0xec   : > { %1573 = vrot.lane.b32.xlu1 %v1572_v9, %s3226_s9  ;;  %v2193_v9 = vrot.slane %v2185_v56, 6  ;;  %v1587_v35 = vrot.slane %v1579_v59, 6  ;;  %v2675_v37 = vrot.slane %v2668_v18, 7  ;;  %v1586_v41 = vsel %vm226_vm1, %v1585_v11, %v1577_v10  ;;  %v2814_v42 = vld [vmem:[%s3288_s24 + $0x56] sm:$0x1] }
  0xed   : > { %v2054_v53 = vsel %vm232_vm3, %v2053_v6, %v2052_v40  ;;  %v1278_v6 = vrot.slane %v1268_v25, 1  ;;  %v2343_v40 = vsel %vm528_vm6, %v2342_v8, %v2341_v12  ;;  %v2667_v43 = vld [vmem:[%s3288_s24 + $0x6] sm:$0x1]  ;;  %v2821_v26 = vrot.slane %v2813_v17, 6  ;;  %v2060_v46 = vld [vmem:[%s3288_s24 + $0x1d] sm:$0x1] }
  0xee   : > { %2807 = vrot.lane.b32.xlu0 %v2806_v22, %s3235_s20  ;;  %v968_v39 = vpop.permute.xlu1 %967  ;;  %2663 = vrot.lane.b32.xlu2 %v2662_v31, %s3235_s20  ;;  %v1580_v22 = vld [vmem:[%s3288_s24 + $0x52] sm:$0x1]  ;;  %v2194_v32 = vsel %vm229_vm2, %v2193_v9, %v2192_v14  ;;  %v2670_v49 = vld [vmem:[%s3288_s24 + $0x4e] sm:$0x1]  ;;  %v2677_v51 = vrot.slane %v2669_v36, 6  ;;  %v2676_v58 = vsel %vm226_vm1, %v2675_v37, %v2667_v43  ;;  %v2823_v60 = vrot.slane %v2814_v42, 5 }
  0xef   : > { %v2196_v45 = vsel %vm232_vm3, %v2195_v15, %v2194_v32  ;;  %v1589_v47 = vrot.slane %v1580_v22, 5  ;;  %v2059_v54 = vld [vmem:[%s3288_s24 + $0x5] sm:$0x1]  ;;  %v1874_v33 = vld [vmem:[%s3288_s24 + $0xa] sm:$0x1]  ;;  %v2067_v56 = vrot.slane %v2060_v46, 7  ;;  %v2822_v3 = vsel %vm229_vm2, %v2821_v26, %v2820_v48 }
  0xf0   : > { %v950_v29 = vpop.permute.xlu0 %949  ;;  %v4070_v57 = vpop.permute.xlu2 %1093  ;;  %v1875_v55 = vld [vmem:[%s3288_s24 + $0x22] sm:$0x1]  ;;  %v2062_v61 = vld [vmem:[%s3288_s24 + $0x4d] sm:$0x1]  ;;  %v1876_v5 = vld [vmem:[%s3288_s24 + $0x3a] sm:$0x1]  ;;  %v2678_v10 = vsel %vm229_vm2, %v2677_v51, %v2676_v58  ;;  %v2824_v14 = vsel %vm232_vm3, %v2823_v60, %v2822_v3 }
  0xf1   : > { %952 = vst.msk [vmem:[#allocation2 + $0x10] sm:$0xf] %vm4729_vm7, %v950_v29  ;;  %vm4732_vm7 = vcmask 519552   ;;  %v2061_v29 = vld [vmem:[%s3288_s24 + $0x35] sm:$0x1]  ;;  %v1882_v8 = vrot.slane %v1874_v33, 4  ;;  %v2068_v15 = vsel %vm226_vm1, %v2067_v56, %v2059_v54 }
  0xf2   : > { %970 = vst.msk [vmem:[#allocation2 + $0x10] sm:$0xf] %vm4730_vm10, %v968_v39  ;;  %v1275_v39 = vsel %vm522_vm4, %v1274_v28, %v1273_v27  ;;  %v1722_v62 = vld [vmem:[%s3288_s24 + $0x2] sm:$0x1]  ;;  %v2069_v4 = vrot.slane %v2061_v29, 6  ;;  %vm4733_vm10 = vcmask 650752  }
  0xf3   : > { %v1277_v44 = vsel %vm525_vm5, %v1276_v34, %v1275_v39  ;;  %v1877_v7 = vld [vmem:[%s3288_s24 + $0x52] sm:$0x1]  ;;  %v1883_v9 = vrot.slane %v1875_v55, 3  ;;  %v1730_v11 = vrot.slane %v1722_v62, 4  ;;  %v1885_v17 = vrot.slane %v1876_v5, 2 }
  0xf4   : > { %2055 = vrot.lane.b32.xlu1 %v2054_v53, %s3220_s28  ;;  %v1588_v53 = vsel %vm229_vm2, %v1587_v35, %v1586_v41  ;;  %v1724_v59 = vld [vmem:[%s3288_s24 + $0x32] sm:$0x1]  ;;  %v2500_v1 = vld [vmem:[%s3288_s24 + $0xd] sm:$0x1]  ;;  %v2501_v19 = vld [vmem:[%s3288_s24 + $0x25] sm:$0x1]  ;;  %v2070_v24 = vsel %vm229_vm2, %v2069_v4, %v2068_v15 }
  0xf5   : > { %v1590_v50 = vsel %vm232_vm3, %v1589_v47, %v1588_v53  ;;  %v1887_v12 = vrot.slane %v1877_v7, 1  ;;  %v1733_v22 = vrot.slane %v1724_v59, 2  ;;  %v2502_v25 = vld [vmem:[%s3288_s24 + $0x3d] sm:$0x1]  ;;  %v2348_v27 = vld [vmem:[%s3288_s24 + $0x5] sm:$0x1] }
  0xf6   : > { %1870 = vrot.lane.b32.xlu0 %v1869_v63, %s3233_s16  ;;  %v1022_v38 = vpop.permute.xlu1 %1021  ;;  %1718 = vrot.lane.b32.xlu2 %v1717_v2, %s3233_s16  ;;  %v1723_v63 = vld [vmem:[%s3288_s24 + $0x1a] sm:$0x1]  ;;  %v2679_v2 = vrot.slane %v2670_v49, 5  ;;  %v2349_v28 = vld [vmem:[%s3288_s24 + $0x1d] sm:$0x1]  ;;  %v2508_v32 = vrot.slane %v2500_v1, 4 }
  0xf7   : > { %v1731_v13 = vrot.slane %v1723_v63, 3  ;;  %v2509_v34 = vrot.slane %v2501_v19, 3  ;;  %v2503_v37 = vld [vmem:[%s3288_s24 + $0x55] sm:$0x1]  ;;  %v2356_v42 = vrot.slane %v2348_v27, 4  ;;  %v2357_v43 = vrot.slane %v2349_v28, 3 }
  0xf8   : > { %v1004_v20 = vpop.permute.xlu0 %1003  ;;  %v4101_v31 = vpop.permute.xlu2 %1166  ;;  %v2680_v18 = vsel %vm232_vm3, %v2679_v2, %v2678_v10  ;;  %v2350_v41 = vld [vmem:[%s3288_s24 + $0x35] sm:$0x1]  ;;  %v2201_v47 = vld [vmem:[%s3288_s24 + $0xd] sm:$0x1]  ;;  %v2513_v53 = vrot.slane %v2503_v37, 1 }
  0xf9   : > { %1006 = vst.msk [vmem:[#allocation2 + $0x18] sm:$0xf] %vm254_vm8, %v1004_v20  ;;  %v2071_v20 = vrot.slane %v2062_v61, 5  ;;  %v1732_v30 = vsel %vm522_vm4, %v1731_v13, %v1730_v11  ;;  %v2351_v48 = vld [vmem:[%s3288_s24 + $0x4d] sm:$0x1]  ;;  %v2359_v49 = vrot.slane %v2350_v41, 2  ;;  %v2358_v54 = vsel %vm522_vm4, %v2357_v43, %v2356_v42 }
  0xfa   : > { %1024 = vst.msk [vmem:[#allocation2 + $0x18] sm:$0xf] %vm4731_vm9, %v1022_v38  ;;  %vm4734_vm9 = vcmask 781952   ;;  %v1734_v26 = vsel %vm525_vm5, %v1733_v22, %v1732_v30  ;;  %v2204_v33 = vld [vmem:[%s3288_s24 + $0x55] sm:$0x1] }
  0xfb   : > { %1042 = vst.msk [vmem:[#allocation2 + $0x18] sm:$0xf] %vm4732_vm7, %v4036_v16  ;;  %v1279_v16 = vsel %vm528_vm6, %v1278_v6, %v1277_v44  ;;  %vm4735_vm7 = vcmask 913152   ;;  %v2202_v6 = vld [vmem:[%s3288_s24 + $0x25] sm:$0x1]  ;;  %v2360_v2 = vsel %vm525_vm5, %v2359_v49, %v2358_v54 }
  0xfc   : > { %2496 = vrot.lane.b32.xlu1 %v2495_v21, %s3224_s7  ;;  %1281 = vst.msk [vmem:[#allocation2 + $0x18] sm:$0xf0] %vm533_vm15, %v1279_v16  ;;  %v1884_v21 = vsel %vm522_vm4, %v1883_v9, %v1882_v8  ;;  %v2209_v46 = vrot.slane %v2202_v6, 7  ;;  %v2510_v16 = vsel %vm522_vm4, %v2509_v34, %v2508_v32  ;;  %v1595_v56 = vld [vmem:[%s3288_s24 + $0xb] sm:$0x1]  ;;  %v2213_v8 = vrot.slane %v2204_v33, 5 }
  0xfd   : > { %v1886_v36 = vsel %vm525_vm5, %v1885_v17, %v1884_v21  ;;  %v2830_v62 = vld [vmem:[%s3288_s24 + $0x27] sm:$0x1]  ;;  %v1597_v3 = vld [vmem:[%s3288_s24 + $0x3b] sm:$0x1]  ;;  %v2686_v4 = vld [vmem:[%s3288_s24 + $0x1f] sm:$0x1] }
  0xfe   : > { %2344 = vrot.lane.b32.xlu0 %v2343_v40, %s3224_s7  ;;  %v1076_v52 = vpop.permute.xlu1 %1075  ;;  %2197 = vrot.lane.b32.xlu2 %v2196_v45, %s3220_s28  ;;  %v2072_v40 = vsel %vm232_vm3, %v2071_v20, %v2070_v24  ;;  %v2203_v45 = vld [vmem:[%s3288_s24 + $0x3d] sm:$0x1]  ;;  %v1888_v29 = vsel %vm528_vm6, %v1887_v12, %v1886_v36  ;;  %v2210_v63 = vsel %vm226_vm1, %v2209_v46, %v2201_v47  ;;  %v2829_v7 = vld [vmem:[%s3288_s24 + $0xf] sm:$0x1]  ;;  %v2837_v59 = vrot.slane %v2830_v62, 7 }
  0xff   : > { %v2211_v55 = vrot.slane %v2203_v45, 6  ;;  %v2831_v10 = vld [vmem:[%s3288_s24 + $0x3f] sm:$0x1]  ;;  %v2687_v15 = vld [vmem:[%s3288_s24 + $0x37] sm:$0x1]  ;;  %v2693_v17 = vrot.slane %v2686_v4, 7 }
 0x100   : > { %v1058_v0 = vpop.permute.xlu0 %1057  ;;  %v4137_v38 = vpop.permute.xlu2 %1223  ;;  %v2685_v19 = vld [vmem:[%s3288_s24 + $0x7] sm:$0x1]  ;;  %v2832_v20 = vld [vmem:[%s3288_s24 + $0x57] sm:$0x1]  ;;  %v2839_v21 = vrot.slane %v2831_v10, 6 }
 0x101   : > { %1060 = vst.msk [vmem:[#allocation2 + $0x18] sm:$0xf] %vm4733_vm10, %v1058_v0  ;;  %vm4736_vm10 = vcmask 1044352   ;;  %v2361_v0 = vrot.slane %v2351_v48, 1  ;;  %v2212_v13 = vsel %vm229_vm2, %v2211_v55, %v2210_v63  ;;  %v2688_v24 = vld [vmem:[%s3288_s24 + $0x4f] sm:$0x1]  ;;  %v2694_v34 = vsel %vm226_vm1, %v2693_v17, %v2685_v19 }
 0x102   : > { %1078 = vst.msk [vmem:[#allocation2 + $0x18] sm:$0xf] %vm4734_vm9, %v1076_v52  ;;  %v1596_v52 = vld [vmem:[%s3288_s24 + $0x23] sm:$0x1]  ;;  %v2214_v12 = vsel %vm232_vm3, %v2213_v8, %v2212_v13  ;;  %v1893_v30 = vld [vmem:[%s3288_s24 + $0xb] sm:$0x1] }
 0x103   : > { %1096 = vst.msk [vmem:[#allocation2 + $0x18] sm:$0xf] %vm4735_vm7, %v4070_v57  ;;  %v1725_v57 = vld [vmem:[%s3288_s24 + $0x4a] sm:$0x1]  ;;  %v1603_v61 = vrot.slane %v1596_v52, 7  ;;  %v2841_v6 = vrot.slane %v2832_v20, 5 }
 0x104   : > { %1591 = vrot.lane.b32.xlu1 %v1590_v50, %s3225_s8  ;;  %v1735_v39 = vrot.slane %v1725_v57, 1  ;;  %v1598_v50 = vld [vmem:[%s3288_s24 + $0x53] sm:$0x1]  ;;  %v2078_v57 = vld [vmem:[%s3288_s24 + $0x1e] sm:$0x1]  ;;  %vm4737_vm9 = vcmask 917252  }
 0x105   : > { %v1604_v1 = vsel %vm226_vm1, %v1603_v61, %v1595_v56  ;;  %v1607_v22 = vrot.slane %v1598_v50, 5  ;;  %v1894_v32 = vld [vmem:[%s3288_s24 + $0x23] sm:$0x1]  ;;  %v1742_v37 = vld [vmem:[%s3288_s24 + $0x1b] sm:$0x1]  ;;  %v1901_v45 = vrot.slane %v1893_v30, 4 }
 0x106   : > { %2825 = vrot.lane.b32.xlu0 %v2824_v14, %s3234_s17  ;;  %v1148_v23 = vpop.permute.xlu1 %1147  ;;  %2681 = vrot.lane.b32.xlu2 %v2680_v18, %s3234_s17  ;;  %v1736_v51 = vsel %vm528_vm6, %v1735_v39, %v1734_v26  ;;  %v1605_v14 = vrot.slane %v1597_v3, 6  ;;  %v2362_v18 = vsel %vm528_vm6, %v2361_v0, %v2360_v2  ;;  %v1741_v36 = vld [vmem:[%s3288_s24 + $0x3] sm:$0x1]  ;;  %v2077_v41 = vld [vmem:[%s3288_s24 + $0x6] sm:$0x1]  ;;  %v1902_v46 = vrot.slane %v1894_v32, 3 }
 0x107   : > { %1150 = vst.msk [vmem:[#allocation2 + $0x10] sm:$0xf0] %vm553_vm0, %v1148_v23  ;;  %v2838_v23 = vsel %vm226_vm1, %v2837_v59, %v2829_v7  ;;  %v2080_v42 = vld [vmem:[%s3288_s24 + $0x4e] sm:$0x1]  ;;  %vm4738_vm7 = vcmask 1048452   ;;  %v1749_v48 = vrot.slane %v1741_v36, 4 }
 0x108   : > { %1169 = vst.msk [vmem:[#allocation2 + $0x10] sm:$0xf0] %vm573_vm14, %v4101_v31  ;;  %v1112_v35 = vpop.permute.xlu0 %1111  ;;  %v1298_v44 = vpop.permute.xlu2 %1297  ;;  %v2511_v31 = vrot.slane %v2502_v25, 2  ;;  %v2695_v25 = vrot.slane %v2687_v15, 6  ;;  %v1606_v28 = vsel %vm229_vm2, %v1605_v14, %v1604_v1  ;;  %v1743_v47 = vld [vmem:[%s3288_s24 + $0x33] sm:$0x1]  ;;  %v1903_v56 = vsel %vm522_vm4, %v1902_v46, %v1901_v45 }
 0x109   : > { %1114 = vst.msk [vmem:[#allocation2 + $0x18] sm:$0xf] %vm4736_vm10, %v1112_v35  ;;  %v2085_v35 = vrot.slane %v2078_v57, 7  ;;  %v1608_v26 = vsel %vm232_vm3, %v1607_v22, %v1606_v28  ;;  %v1750_v49 = vrot.slane %v1742_v37, 3  ;;  %v2519_v55 = vld [vmem:[%s3288_s24 + $0xe] sm:$0x1]  ;;  %vm4739_vm10 = vmmov %vm4737_vm9 }
 0x10a   : > { %1300 = vst.msk [vmem:[#allocation2 + $0x18] sm:$0xf0] %vm553_vm0, %v1298_v44  ;;  %v2512_v60 = vsel %vm525_vm5, %v2511_v31, %v2510_v16  ;;  %v2697_v44 = vrot.slane %v2688_v24, 5  ;;  %v1895_v31 = vld [vmem:[%s3288_s24 + $0x3b] sm:$0x1]  ;;  %v2696_v16 = vsel %vm229_vm2, %v2695_v25, %v2694_v34  ;;  %v1752_v63 = vrot.slane %v1743_v47, 2 }
 0x10b   : > { %v2514_v9 = vsel %vm528_vm6, %v2513_v53, %v2512_v60  ;;  %v2086_v52 = vsel %vm226_vm1, %v2085_v35, %v2077_v41  ;;  %v1896_v53 = vld [vmem:[%s3288_s24 + $0x53] sm:$0x1]  ;;  %v1904_v54 = vrot.slane %v1895_v31, 2  ;;  %v2089_v60 = vrot.slane %v2080_v42, 5  ;;  %v1744_v62 = vld [vmem:[%s3288_s24 + $0x4b] sm:$0x1] }
 0x10c   : > { %2073 = vrot.lane.b32.xlu1 %v2072_v40, %s3217_s25  ;;  %v2840_v40 = vsel %vm229_vm2, %v2839_v21, %v2838_v23  ;;  %v2698_v33 = vsel %vm232_vm3, %v2697_v44, %v2696_v16  ;;  %v1906_v61 = vrot.slane %v1896_v53, 1  ;;  %v2367_v4 = vld [vmem:[%s3288_s24 + $0x6] sm:$0x1]  ;;  %v1751_v2 = vsel %vm522_vm4, %v1750_v49, %v1749_v48  ;;  %v2521_v50 = vld [vmem:[%s3288_s24 + $0x3e] sm:$0x1] }
 0x10d   : > { %v2527_v7 = vrot.slane %v2519_v55, 4  ;;  %v1905_v59 = vsel %vm525_vm5, %v1904_v54, %v1903_v56  ;;  %v2522_v13 = vld [vmem:[%s3288_s24 + $0x56] sm:$0x1]  ;;  %v1754_v15 = vrot.slane %v1744_v62, 1  ;;  %v2375_v1 = vrot.slane %v2367_v4, 4 }
 0x10e   : > { %1889 = vrot.lane.b32.xlu0 %v1888_v29, %s3232_s15  ;;  %v1205_v58 = vpop.permute.xlu1 %1204  ;;  %1737 = vrot.lane.b32.xlu2 %v1736_v51, %s3232_s15  ;;  %v2842_v51 = vsel %vm232_vm3, %v2841_v6, %v2840_v40  ;;  %v2369_v14 = vld [vmem:[%s3288_s24 + $0x36] sm:$0x1]  ;;  %v1753_v21 = vsel %vm525_vm5, %v1752_v63, %v1751_v2  ;;  %v2221_v57 = vld [vmem:[%s3288_s24 + $0x3e] sm:$0x1]  ;;  %v1907_v23 = vsel %vm528_vm6, %v1906_v61, %v1905_v59  ;;  %v2532_v34 = vrot.slane %v2522_v13, 1 }
 0x10f   : > { %v1614_v24 = vld [vmem:[%s3288_s24 + $0x24] sm:$0x1]  ;;  %v2219_v25 = vld [vmem:[%s3288_s24 + $0xe] sm:$0x1]  ;;  %v1755_v28 = vsel %vm528_vm6, %v1754_v15, %v1753_v21  ;;  %v1615_v30 = vld [vmem:[%s3288_s24 + $0x3c] sm:$0x1] }
 0x110   : > { %v1186_v5 = vpop.permute.xlu0 %1185  ;;  %v4194_v11 = vpop.permute.xlu2 %1354  ;;  %v4268_v32 = vld [vmem:[%s3288_s24 + $0x54] sm:$0x1]  ;;  %v2848_v6 = vld [vmem:[%s3288_s24 + $0x28] sm:$0x1]  ;;  %v2222_v35 = vld [vmem:[%s3288_s24 + $0x56] sm:$0x1] }
 0x111   : > { %1188 = vst.msk [vmem:[#allocation2 + $0x10] sm:$0xf0] %vm593_vm13, %v1186_v5  ;;  %v2368_v5 = vld [vmem:[%s3288_s24 + $0x1e] sm:$0x1]  ;;  %v2229_v36 = vrot.slane %v2221_v57, 6  ;;  %v1621_v42 = vrot.slane %v1614_v24, 7 }
 0x112   : > { %1207 = vst.msk [vmem:[#allocation2 + $0x10] sm:$0xf0] %vm613_vm12, %v1205_v58  ;;  %v2520_v58 = vld [vmem:[%s3288_s24 + $0x26] sm:$0x1]  ;;  %v2376_v19 = vrot.slane %v2368_v5, 3  ;;  %v1623_v44 = vrot.slane %v1615_v30, 6 }
 0x113   : > { %1226 = vst.msk [vmem:[#allocation2 + $0x10] sm:$0xf0] %vm633_vm11, %v4137_v38  ;;  %v2079_v38 = vld [vmem:[%s3288_s24 + $0x36] sm:$0x1]  ;;  %v2528_v8 = vrot.slane %v2520_v58, 3  ;;  %v2855_v49 = vrot.slane %v2848_v6, 7 }
 0x114   : > { %2515 = vrot.lane.b32.xlu1 %v2514_v9, %s3229_s12  ;;  %v2087_v43 = vrot.slane %v2079_v38, 6  ;;  %v2220_v9 = vld [vmem:[%s3288_s24 + $0x26] sm:$0x1]  ;;  %v1613_v41 = vld [vmem:[%s3288_s24 + $0xc] sm:$0x1] }
 0x115   : > { %v2227_v22 = vrot.slane %v2220_v9, 7  ;;  %v2529_v38 = vsel %vm522_vm4, %v2528_v8, %v2527_v7  ;;  %v2847_v31 = vld [vmem:[%s3288_s24 + $0x10] sm:$0x1]  ;;  %v2849_v45 = vld [vmem:[%s3288_s24 + $0x40] sm:$0x1] }
 0x116   : > { %2363 = vrot.lane.b32.xlu0 %v2362_v18, %s3229_s12  ;;  %v1262_v27 = vpop.permute.xlu1 %1261  ;;  %2215 = vrot.lane.b32.xlu2 %v2214_v12, %s3217_s25  ;;  %v2088_v3 = vsel %vm229_vm2, %v2087_v43, %v2086_v52  ;;  %v2370_v18 = vld [vmem:[%s3288_s24 + $0x4e] sm:$0x1]  ;;  %v2530_v12 = vrot.slane %v2521_v50, 2  ;;  %v2704_v46 = vld [vmem:[%s3288_s24 + $0x20] sm:$0x1]  ;;  %v2857_v56 = vrot.slane %v2849_v45, 6  ;;  %v2856_v4 = vsel %vm226_vm1, %v2855_v49, %v2847_v31 }
 0x117   : > { %v2090_v17 = vsel %vm232_vm3, %v2089_v60, %v2088_v3  ;;  %v2380_v40 = vrot.slane %v2370_v18, 1  ;;  %v2228_v43 = vsel %vm226_vm1, %v2227_v22, %v2219_v25  ;;  %v2850_v48 = vld [vmem:[%s3288_s24 + $0x58] sm:$0x1]  ;;  %v4285_v52 = vld [vmem:[%s3288_s24 + $0x1f] sm:$0x1]  ;;  %v1622_v60 = vsel %vm226_vm1, %v1621_v42, %v1613_v41  ;;  %s4756_s25 = smov 111  }
 0x118   : > { %v1243_v39 = vpop.permute.xlu0 %1242  ;;  %v4225_v29 = vpop.permute.xlu2 %1411  ;;  %v4291_v55 = vld [vmem:[%s3288_s24 + $0x37] sm:$0x1]  ;;  %v4294_v58 = vld [vmem:[%s3288_s24 + $0xc] sm:$0x1]  ;;  %v2705_v62 = vld [vmem:[%s3288_s24 + $0x38] sm:$0x1] }
 0x119   : > { %1245 = vst.msk [vmem:[#allocation2 + $0x10] sm:$0xf0] %vm4737_vm9, %v1243_v39  ;;  %v2531_v39 = vsel %vm525_vm5, %v2530_v12, %v2529_v38  ;;  %v2711_v63 = vrot.slane %v2704_v46, 7  ;;  %vm4740_vm9 = vmmov %vm4738_vm7  ;;  %v4303_v3 = vld [vmem:[%s3288_s24 + $0x24] sm:$0x1]  ;;  %v2859_v7 = vrot.slane %v2850_v48, 5 }
 0x11a   : > { %1264 = vst.msk [vmem:[#allocation2 + $0x10] sm:$0xf0] %vm4738_vm7, %v1262_v27  ;;  %v2378_v27 = vrot.slane %v2369_v14, 2  ;;  %v2533_v53 = vsel %vm528_vm6, %v2532_v34, %v2531_v39  ;;  %v2703_v61 = vld [vmem:[%s3288_s24 + $0x8] sm:$0x1]  ;;  %vm4741_vm7 = vcmask 125952  }
 0x11b   : > { %v2706_v2 = vld [vmem:[%s3288_s24 + $0x50] sm:$0x1]  ;;  %v4312_v50 = vld [vmem:[%s3288_s24 + $0x4] sm:$0x1]  ;;  %v2103_v8 = vrot.slane %v4285_v52, 7  ;;  %v2713_v9 = vrot.slane %v2705_v62, 6  ;;  %v2712_v18 = vsel %vm226_vm1, %v2711_v63, %v2703_v61 }
 0x11c   : > { %1609 = vrot.lane.b32.xlu1 %v1608_v26, %s3224_s7  ;;  %v1625_v26 = vrot.slane %v4268_v32, 5  ;;  %v2095_v13 = vld [vmem:[%s3288_s24 + $0x7] sm:$0x1]  ;;  %v2105_v14 = vrot.slane %v4291_v55, 6  ;;  %v1920_v15 = vrot.slane %v4294_v58, 4  ;;  %v2715_v21 = vrot.slane %v2706_v2, 5 }
 0x11d   : > { %v1768_v12 = vrot.slane %v4312_v50, 4  ;;  %v2149_v57 = vld [vmem:[%s3288_s24 + $0xa] sm:$0x1]  ;;  %v2150_v22 = vld [vmem:[%s3288_s24 + $0x22] sm:$0x1]  ;;  %v2714_v6 = vsel %vm229_vm2, %v2713_v9, %v2712_v18 }
 0x11e   : > { %2843 = vrot.lane.b32.xlu0 %v2842_v51, %s3239_s13  ;;  %v1336_v0 = vpop.permute.xlu1 %1335  ;;  %2699 = vrot.lane.b32.xlu2 %v2698_v33, %s3239_s13  ;;  %v2231_v51 = vrot.slane %v2222_v35, 5  ;;  %v2230_v33 = vsel %vm229_vm2, %v2229_v36, %v2228_v43  ;;  %v2098_v38 = vld [vmem:[%s3288_s24 + $0x4f] sm:$0x1]  ;;  %v4331_v24 = vld [vmem:[%s3288_s24 + $0x34] sm:$0x1]  ;;  %v2157_v30 = vrot.slane %v2150_v22, 7  ;;  %v2104_v43 = vsel %vm226_vm1, %v2103_v8, %v2095_v13 }
 0x11f   : > { %v1915_v34 = vld [vmem:[%s3288_s24 + $0x54] sm:$0x1]  ;;  %v2008_v41 = vld [vmem:[%s3288_s24 + $0x1a] sm:$0x1]  ;;  %v2009_v42 = vld [vmem:[%s3288_s24 + $0x32] sm:$0x1]  ;;  %v2106_v58 = vsel %vm229_vm2, %v2105_v14, %v2104_v43 }
 0x120   : > { %v1317_v10 = vpop.permute.xlu0 %1316  ;;  %v4253_v20 = vpop.permute.xlu2 %1465  ;;  %v2232_v5 = vsel %vm232_vm3, %v2231_v51, %v2230_v33  ;;  %v2015_v31 = vrot.slane %v2008_v41, 7  ;;  %v2017_v45 = vrot.slane %v2009_v42, 6  ;;  %v2539_v48 = vld [vmem:[%s3288_s24 + $0x27] sm:$0x1]  ;;  %v2387_v62 = vld [vmem:[%s3288_s24 + $0x1f] sm:$0x1] }
 0x121   : > { %1319 = vst.msk [vmem:[#allocation2 + $0x18] sm:$0xf0] %vm573_vm14, %v1317_v10  ;;  %v1761_v10 = vld [vmem:[%s3288_s24 + $0x1c] sm:$0x1]  ;;  %v2238_v2 = vld [vmem:[%s3288_s24 + $0x27] sm:$0x1] }
 0x122   : > { %1338 = vst.msk [vmem:[#allocation2 + $0x18] sm:$0xf0] %vm593_vm13, %v1336_v0  ;;  %v1769_v25 = vrot.slane %v1761_v10, 3  ;;  %v2388_v10 = vld [vmem:[%s3288_s24 + $0x37] sm:$0x1]  ;;  %v2395_v13 = vrot.slane %v2387_v62, 3 }
 0x123   : > { %1357 = vst.msk [vmem:[#allocation2 + $0x18] sm:$0xf0] %vm613_vm12, %v4194_v11  ;;  %v2377_v11 = vsel %vm522_vm4, %v2376_v19, %v2375_v1  ;;  %v2858_v1 = vsel %vm229_vm2, %v2857_v56, %v2856_v4  ;;  %v1914_v19 = vld [vmem:[%s3288_s24 + $0x3c] sm:$0x1]  ;;  %v2386_v56 = vld [vmem:[%s3288_s24 + $0x7] sm:$0x1] }
 0x124   : > { %2091 = vrot.lane.b32.xlu1 %v2090_v17, %s3219_s27  ;;  %v2379_v47 = vsel %vm525_vm5, %v2378_v27, %v2377_v11  ;;  %v1921_v17 = vrot.slane %v4303_v3, 3  ;;  %v2151_v27 = vld [vmem:[%s3288_s24 + $0x3a] sm:$0x1]  ;;  %v2860_v39 = vsel %vm232_vm3, %v2859_v7, %v2858_v1  ;;  %v1923_v46 = vrot.slane %v1914_v19, 2  ;;  %v2540_v3 = vld [vmem:[%s3288_s24 + $0x3f] sm:$0x1] }
 0x125   : > { %v2381_v0 = vsel %vm528_vm6, %v2380_v40, %v2379_v47  ;;  %v2159_v35 = vrot.slane %v2151_v27, 6  ;;  %v2158_v40 = vsel %vm226_vm1, %v2157_v30, %v2149_v57  ;;  %v2538_v47 = vld [vmem:[%s3288_s24 + $0xf] sm:$0x1]  ;;  %v1770_v63 = vsel %vm522_vm4, %v1769_v25, %v1768_v12  ;;  %v2541_v7 = vld [vmem:[%s3288_s24 + $0x57] sm:$0x1] }
 0x126   : > { %1908 = vrot.lane.b32.xlu0 %v1907_v23, %s3236_s21  ;;  %v1393_v37 = vpop.permute.xlu1 %1392  ;;  %1756 = vrot.lane.b32.xlu2 %v1755_v28, %s3236_s21  ;;  %v2152_v28 = vld [vmem:[%s3288_s24 + $0x52] sm:$0x1]  ;;  %v1922_v52 = vsel %vm522_vm4, %v1921_v17, %v1920_v15  ;;  %v2546_v61 = vrot.slane %v2538_v47, 4  ;;  %v2547_v4 = vrot.slane %v2539_v48, 3  ;;  %v2549_v17 = vrot.slane %v2540_v3, 2 }
 0x127   : > { %v2161_v36 = vrot.slane %v2152_v28, 5  ;;  %v2239_v18 = vld [vmem:[%s3288_s24 + $0x3f] sm:$0x1]  ;;  %v2245_v1 = vrot.slane %v2238_v2, 7  ;;  %v2389_v12 = vld [vmem:[%s3288_s24 + $0x4f] sm:$0x1] }
 0x128   : > { %v1374_v16 = vpop.permute.xlu0 %1373  ;;  %v2610_v54 = vpop.permute.xlu2 %2609  ;;  %v1632_v57 = vld [vmem:[%s3288_s24 + $0x25] sm:$0x1]  ;;  %v2237_v22 = vld [vmem:[%s3288_s24 + $0xf] sm:$0x1]  ;;  %v2240_v27 = vld [vmem:[%s3288_s24 + $0x57] sm:$0x1] }
 0x129   : > { %1376 = vst.msk [vmem:[#allocation2 + $0x18] sm:$0xf0] %vm633_vm11, %v1374_v16  ;;  %v2716_v16 = vsel %vm232_vm3, %v2715_v21, %v2714_v6  ;;  %v2548_v21 = vsel %vm522_vm4, %v2547_v4, %v2546_v61  ;;  %v2247_v28 = vrot.slane %v2239_v18, 6  ;;  %v1631_v6 = vld [vmem:[%s3288_s24 + $0xd] sm:$0x1] }
 0x12a   : > { %1395 = vst.msk [vmem:[#allocation2 + $0x18] sm:$0xf0] %vm4739_vm10, %v1393_v37  ;;  %vm4742_vm10 = vmmov %vm4741_vm7  ;;  %v2007_v37 = vld [vmem:[%s3288_s24 + $0x2] sm:$0x1]  ;;  %v1634_v43 = vld [vmem:[%s3288_s24 + $0x55] sm:$0x1] }
 0x12b   : > { %1414 = vst.msk [vmem:[#allocation2 + $0x18] sm:$0xf0] %vm4740_vm9, %v4225_v29  ;;  %v1624_v29 = vsel %vm229_vm2, %v1623_v44, %v1622_v60  ;;  %vm4743_vm9 = vcmask 388352   ;;  %v2160_v44 = vsel %vm229_vm2, %v2159_v35, %v2158_v40  ;;  %v2016_v33 = vsel %vm226_vm1, %v2015_v31, %v2007_v37  ;;  %v2722_v40 = vld [vmem:[%s3288_s24 + $0x21] sm:$0x1] }
 0x12c   : > { %2534 = vrot.lane.b32.xlu1 %v2533_v53, %s3228_s11  ;;  %2612 = vst.msk [vmem:[#allocation2 + $0x40] sm:$0xf] %vm4741_vm7, %v2610_v54  ;;  %v1626_v32 = vsel %vm232_vm3, %v1625_v26, %v1624_v29  ;;  %v2010_v26 = vld [vmem:[%s3288_s24 + $0x4a] sm:$0x1]  ;;  %v2162_v49 = vsel %vm232_vm3, %v2161_v36, %v2160_v44  ;;  %v1763_v53 = vld [vmem:[%s3288_s24 + $0x4c] sm:$0x1]  ;;  %v1924_v29 = vsel %vm525_vm5, %v1923_v46, %v1922_v52 }
 0x12d   : > { %v2019_v51 = vrot.slane %v2010_v26, 5  ;;  %v1771_v54 = vrot.slane %v4331_v24, 2  ;;  %2164 = vst.msk [vmem:[#allocation2 + $0x38] sm:$0xf] %vm4741_vm7, %v2162_v49  ;;  %v1925_v60 = vrot.slane %v1915_v34, 1  ;;  %v1773_v8 = vrot.slane %v1763_v53, 1 }
 0x12e   : > { %2382 = vrot.lane.b32.xlu0 %v2381_v0, %s3228_s11  ;;  %v1448_v59 = vpop.permute.xlu1 %1447  ;;  %2233 = vrot.lane.b32.xlu2 %v2232_v5, %s3219_s27  ;;  %v2018_v0 = vsel %vm229_vm2, %v2017_v45, %v2016_v33  ;;  %v2551_v24 = vrot.slane %v2541_v7, 1  ;;  %v2399_v34 = vrot.slane %v2389_v12, 1  ;;  %v1639_v35 = vrot.slane %v1632_v57, 7  ;;  %v2866_v36 = vld [vmem:[%s3288_s24 + $0x29] sm:$0x1] }
 0x12f   : > { %v2020_v5 = vsel %vm232_vm3, %v2019_v51, %v2018_v0  ;;  %v1772_v15 = vsel %vm525_vm5, %v1771_v54, %v1770_v63  ;;  %v1926_v19 = vsel %vm528_vm6, %v1925_v60, %v1924_v29  ;;  %v2246_v37 = vsel %vm226_vm1, %v2245_v1, %v2237_v22  ;;  %v2865_v44 = vld [vmem:[%s3288_s24 + $0x11] sm:$0x1]  ;;  %v2867_v26 = vld [vmem:[%s3288_s24 + $0x41] sm:$0x1]  ;;  %v2868_v46 = vld [vmem:[%s3288_s24 + $0x59] sm:$0x1] }
 0x130   : > { %v1430_v23 = vpop.permute.xlu0 %1429  ;;  %v4338_v11 = vpop.permute.xlu2 %2771  ;;  %v2249_v31 = vrot.slane %v2240_v27, 5  ;;  %v2248_v48 = vsel %vm229_vm2, %v2247_v28, %v2246_v37  ;;  %v2723_v51 = vld [vmem:[%s3288_s24 + $0x39] sm:$0x1]  ;;  %v1640_v53 = vsel %vm226_vm1, %v1639_v35, %v1631_v6  ;;  %v2114_v54 = vld [vmem:[%s3288_s24 + $0x20] sm:$0x1]  ;;  %v2877_v61 = vrot.slane %v2868_v46, 5 }
 0x131   : > { %1432 = vst.msk [vmem:[#allocation2 + $0x20] sm:$0xf] %vm4742_vm10, %v1430_v23  ;;  %vm4744_vm10 = vmmov %vm4741_vm7  ;;  %vm4746_vm7 = vcmask 650752   ;;  %v2397_v23 = vrot.slane %v2388_v10, 2  ;;  %v2721_v33 = vld [vmem:[%s3288_s24 + $0x9] sm:$0x1] }
 0x132   : > { %1450 = vst.msk [vmem:[#allocation2 + $0x20] sm:$0xf] %vm254_vm8, %v1448_v59  ;;  %v2394_v59 = vrot.slane %v2386_v56, 4  ;;  %v2115_v56 = vld [vmem:[%s3288_s24 + $0x38] sm:$0x1]  ;;  %v2731_v63 = vrot.slane %v2723_v51, 6 }
 0x133   : > { %1468 = vst.msk [vmem:[#allocation2 + $0x20] sm:$0xf] %vm4743_vm9, %v4253_v20  ;;  %v2107_v20 = vrot.slane %v2098_v38, 5  ;;  %vm4745_vm9 = vcmask 519552   ;;  %v1774_v38 = vsel %vm528_vm6, %v1773_v8, %v1772_v15  ;;  %v2724_v62 = vld [vmem:[%s3288_s24 + $0x51] sm:$0x1] }
 0x134   : > { %1627 = vrot.lane.b32.xlu1 %v1626_v32, %s3229_s12  ;;  %2022 = vst.msk [vmem:[#allocation2 + $0x30] sm:$0xf] %vm4744_vm10, %v2020_v5  ;;  %v2396_v25 = vsel %vm522_vm4, %v2395_v13, %v2394_v59  ;;  %v2550_v32 = vsel %vm525_vm5, %v2549_v17, %v2548_v21  ;;  %vm4747_vm10 = vcmask 388352   ;;  %v2113_v4 = vld [vmem:[%s3288_s24 + $0x8] sm:$0x1]  ;;  %v2121_v5 = vrot.slane %v2114_v54, 7 }
 0x135   : > { %v2108_v9 = vsel %vm232_vm3, %v2107_v20, %v2106_v58  ;;  %v2398_v42 = vsel %vm525_vm5, %v2397_v23, %v2396_v25  ;;  %v2552_v45 = vsel %vm528_vm6, %v2551_v24, %v2550_v32  ;;  %v2729_v20 = vrot.slane %v2722_v40, 7  ;;  %v1931_v2 = vld [vmem:[%s3288_s24 + $0xd] sm:$0x1]  ;;  %v1779_v7 = vld [vmem:[%s3288_s24 + $0x5] sm:$0x1] }
 0x136   : > { %2861 = vrot.lane.b32.xlu0 %v2860_v39, %s3238_s23  ;;  %v1502_v55 = vpop.permute.xlu1 %1501  ;;  %2717 = vrot.lane.b32.xlu2 %v2716_v16, %s3238_s23  ;;  %v1633_v39 = vld [vmem:[%s3288_s24 + $0x3d] sm:$0x1]  ;;  %v2873_v16 = vrot.slane %v2866_v36, 7  ;;  %v2400_v52 = vsel %vm528_vm6, %v2399_v34, %v2398_v42  ;;  %v2250_v58 = vsel %vm232_vm3, %v2249_v31, %v2248_v48  ;;  %v2116_v59 = vld [vmem:[%s3288_s24 + $0x50] sm:$0x1]  ;;  %v2123_v13 = vrot.slane %v2115_v56, 6 }
 0x137   : > { %v1641_v49 = vrot.slane %v1633_v39, 6  ;;  %v2730_v29 = vsel %vm226_vm1, %v2729_v20, %v2721_v33  ;;  %v1780_v8 = vld [vmem:[%s3288_s24 + $0x1d] sm:$0x1]  ;;  %v2733_v15 = vrot.slane %v2724_v62, 5  ;;  %v1934_v18 = vld [vmem:[%s3288_s24 + $0x55] sm:$0x1]  ;;  %v2122_v24 = vsel %vm226_vm1, %v2121_v5, %v2113_v4 }
 0x138   : > { %v1484_v50 = vpop.permute.xlu0 %1483  ;;  %v2646_v14 = vpop.permute.xlu2 %2645  ;;  %v2874_v60 = vsel %vm226_vm1, %v2873_v16, %v2865_v44  ;;  %v1939_v1 = vrot.slane %v1931_v2, 4  ;;  %v2732_v12 = vsel %vm229_vm2, %v2731_v63, %v2730_v29  ;;  %v1781_v57 = vld [vmem:[%s3288_s24 + $0x35] sm:$0x1]  ;;  %v1787_v22 = vrot.slane %v1779_v7, 4  ;;  %v2557_v28 = vld [vmem:[%s3288_s24 + $0x10] sm:$0x1] }
 0x139   : > { %1486 = vst.msk [vmem:[#allocation2 + $0x20] sm:$0xf] %vm4745_vm9, %v1484_v50  ;;  %vm4748_vm9 = vcmask 125952   ;;  %v1642_v3 = vsel %vm229_vm2, %v1641_v49, %v1640_v53  ;;  %v1932_v50 = vld [vmem:[%s3288_s24 + $0x25] sm:$0x1]  ;;  %v1788_v23 = vrot.slane %v1780_v8, 3  ;;  %v2734_v27 = vsel %vm232_vm3, %v2733_v15, %v2732_v12 }
 0x13a   : > { %1504 = vst.msk [vmem:[#allocation2 + $0x20] sm:$0xf] %vm4746_vm7, %v1502_v55  ;;  %v2875_v55 = vrot.slane %v2867_v26, 6  ;;  %vm4749_vm7 = vcmask 519552   ;;  %v2125_v32 = vrot.slane %v2116_v59, 5  ;;  %v1944_v6 = vrot.slane %v1934_v18, 1 }
 0x13b   : > { %v1782_v35 = vld [vmem:[%s3288_s24 + $0x4d] sm:$0x1]  ;;  %v1790_v36 = vrot.slane %v1781_v57, 2  ;;  %v2124_v39 = vsel %vm229_vm2, %v2123_v13, %v2122_v24  ;;  %v2559_v40 = vld [vmem:[%s3288_s24 + $0x40] sm:$0x1]  ;;  %v2565_v44 = vrot.slane %v2557_v28, 4 }
 0x13c   : > { %2109 = vrot.lane.b32.xlu1 %v2108_v9, %s3221_s29  ;;  %v2876_v10 = vsel %vm229_vm2, %v2875_v55, %v2874_v60  ;;  %v2406_v42 = vld [vmem:[%s3288_s24 + $0x20] sm:$0x1]  ;;  %v2256_v31 = vld [vmem:[%s3288_s24 + $0x28] sm:$0x1]  ;;  %v2560_v16 = vld [vmem:[%s3288_s24 + $0x58] sm:$0x1]  ;;  %v2126_v48 = vsel %vm232_vm3, %v2125_v32, %v2124_v39 }
 0x13d   : > { %v2407_v49 = vld [vmem:[%s3288_s24 + $0x38] sm:$0x1]  ;;  %v2414_v20 = vrot.slane %v2406_v42, 3  ;;  %v2568_v54 = vrot.slane %v2559_v40, 2  ;;  %v2257_v33 = vld [vmem:[%s3288_s24 + $0x40] sm:$0x1] }
 0x13e   : > { %1927 = vrot.lane.b32.xlu0 %v1926_v19, %s3235_s20  ;;  %v2628_v30 = vpop.permute.xlu1 %2627  ;;  %1775 = vrot.lane.b32.xlu2 %v1774_v38, %s3235_s20  ;;  %v1940_v19 = vrot.slane %v1932_v50, 3  ;;  %v2878_v38 = vsel %vm232_vm3, %v2877_v61, %v2876_v10  ;;  %v2263_v55 = vrot.slane %v2256_v31, 7  ;;  %v2408_v60 = vld [vmem:[%s3288_s24 + $0x50] sm:$0x1]  ;;  %v2416_v62 = vrot.slane %v2407_v49, 2 }
 0x13f   : > { %2630 = vst.msk [vmem:[#allocation2 + $0x40] sm:$0xf] %vm254_vm8, %v2628_v30  ;;  %v2558_v30 = vld [vmem:[%s3288_s24 + $0x28] sm:$0x1]  ;;  %v2255_v56 = vld [vmem:[%s3288_s24 + $0x10] sm:$0x1] }
 0x140   : > { %v2754_v41 = vpop.permute.xlu0 %2753  ;;  %2648 = vst.msk [vmem:[#allocation2 + $0x40] sm:$0xf] %vm4747_vm10, %v2646_v14  ;;  %v2180_v47 = vpop.permute.xlu2 %2179  ;;  %v1933_v14 = vld [vmem:[%s3288_s24 + $0x3d] sm:$0x1]  ;;  %v1941_v34 = vsel %vm522_vm4, %v1940_v19, %v1939_v1  ;;  %v2566_v26 = vrot.slane %v2558_v30, 3  ;;  %v2570_v61 = vrot.slane %v2560_v16, 1  ;;  %v2264_v10 = vsel %vm226_vm1, %v2263_v55, %v2255_v56 }
 0x141   : > { %2756 = vst.msk [vmem:[#allocation2 + $0x48] sm:$0xf] %vm4748_vm9, %v2754_v41  ;;  %v1942_v25 = vrot.slane %v1933_v14, 2  ;;  %v2405_v41 = vld [vmem:[%s3288_s24 + $0x8] sm:$0x1]  ;;  %v2265_v2 = vrot.slane %v2257_v33, 6  ;;  %vm4750_vm9 = vmmov %vm4747_vm10 }
 0x142   : > { %2774 = vst.msk [vmem:[#allocation2 + $0x48] sm:$0xf] %vm254_vm8, %v4338_v11  ;;  %v1643_v11 = vrot.slane %v1634_v43, 5  ;;  %v1789_v43 = vsel %vm522_vm4, %v1788_v23, %v1787_v22  ;;  %v2413_v51 = vrot.slane %v2405_v41, 4  ;;  %v2258_v5 = vld [vmem:[%s3288_s24 + $0x58] sm:$0x1] }
 0x143   : > { %2182 = vst.msk [vmem:[#allocation2 + $0x38] sm:$0xf] %vm254_vm8, %v2180_v47  ;;  %v1943_v46 = vsel %vm525_vm5, %v1942_v25, %v1941_v34  ;;  %v1792_v47 = vrot.slane %v1782_v35, 1  ;;  %v1791_v53 = vsel %vm525_vm5, %v1790_v36, %v1789_v43  ;;  %v2418_v7 = vrot.slane %v2408_v60, 1  ;;  %v1800_v8 = vld [vmem:[%s3288_s24 + $0x36] sm:$0x1] }
 0x144   : > { %2553 = vrot.lane.b32.xlu1 %v2552_v45, %s3227_s10  ;;  %v1644_v17 = vsel %vm232_vm3, %v1643_v11, %v1642_v3  ;;  %v2567_v11 = vsel %vm522_vm4, %v2566_v26, %v2565_v44  ;;  %v1799_v3 = vld [vmem:[%s3288_s24 + $0x1e] sm:$0x1]  ;;  %v2415_v4 = vsel %vm522_vm4, %v2414_v20, %v2413_v51  ;;  %v1801_v18 = vld [vmem:[%s3288_s24 + $0x4e] sm:$0x1]  ;;  %v2267_v19 = vrot.slane %v2258_v5, 5 }
 0x145   : > { %v1793_v63 = vsel %vm528_vm6, %v1792_v47, %v1791_v53  ;;  %v2569_v29 = vsel %vm525_vm5, %v2568_v54, %v2567_v11  ;;  %v1807_v13 = vrot.slane %v1799_v3, 3  ;;  %v1506_v14 = vld [vmem:[%s3288_s24 + $0x1e] sm:$0x1]  ;;  %v1649_v1 = vld [vmem:[%s3288_s24 + $0xe] sm:$0x1]  ;;  %v2266_v23 = vsel %vm229_vm2, %v2265_v2, %v2264_v10 }
 0x146   : > { %2401 = vrot.lane.b32.xlu0 %v2400_v52, %s3227_s10  ;;  %v2459_v0 = vpop.permute.xlu1 %2458  ;;  %2251 = vrot.lane.b32.xlu2 %v2250_v58, %s3221_s29  ;;  %v1945_v58 = vsel %vm528_vm6, %v1944_v6, %v1943_v46  ;;  %v1651_v12 = vld [vmem:[%s3288_s24 + $0x3e] sm:$0x1]  ;;  %v1507_v24 = vld [vmem:[%s3288_s24 + $0x36] sm:$0x1]  ;;  %v1513_v25 = vrot.slane %v1506_v14, 7  ;;  %v2268_v35 = vsel %vm232_vm3, %v2267_v19, %v2266_v23  ;;  %v1811_v36 = vrot.slane %v1801_v18, 1 }
 0x147   : > { %2461 = vst.msk [vmem:[#allocation2 + $0x38] sm:$0xf0] %vm533_vm15, %v2459_v0  ;;  %v1798_v0 = vld [vmem:[%s3288_s24 + $0x6] sm:$0x1]  ;;  %v1652_v30 = vld [vmem:[%s3288_s24 + $0x56] sm:$0x1] }
 0x148   : > { %v2307_v9 = vpop.permute.xlu0 %2306  ;;  %v2664_v21 = vpop.permute.xlu2 %2663  ;;  %v1806_v59 = vrot.slane %v1798_v0, 4  ;;  %v2274_v32 = vld [vmem:[%s3288_s24 + $0x29] sm:$0x1]  ;;  %v1505_v34 = vld [vmem:[%s3288_s24 + $0x6] sm:$0x1]  ;;  %v1659_v6 = vrot.slane %v1651_v12, 6 }
 0x149   : > { %2309 = vst.msk [vmem:[#allocation2 + $0x30] sm:$0xf0] %vm533_vm15, %v2307_v9  ;;  %v1650_v9 = vld [vmem:[%s3288_s24 + $0x26] sm:$0x1]  ;;  %v1508_v39 = vld [vmem:[%s3288_s24 + $0x4e] sm:$0x1]  ;;  %v1514_v46 = vsel %vm226_vm1, %v1513_v25, %v1505_v34 }
 0x14a   : > { %2666 = vst.msk [vmem:[#allocation2 + $0x40] sm:$0xf] %vm4749_vm7, %v2664_v21  ;;  %v2571_v21 = vsel %vm528_vm6, %v2570_v61, %v2569_v29  ;;  %v1657_v57 = vrot.slane %v1650_v9, 7  ;;  %v1808_v28 = vsel %vm522_vm4, %v1807_v13, %v1806_v59  ;;  %v1515_v40 = vrot.slane %v1507_v24, 6  ;;  %v2273_v44 = vld [vmem:[%s3288_s24 + $0x11] sm:$0x1] }
 0x14b   : > { %v1661_v43 = vrot.slane %v1652_v30, 5  ;;  %v2275_v26 = vld [vmem:[%s3288_s24 + $0x41] sm:$0x1]  ;;  %v2281_v31 = vrot.slane %v2274_v32, 7  ;;  %vm4751_vm7 = vcmask 125952  }
 0x14c   : > { %1645 = vrot.lane.b32.xlu1 %v1644_v17, %s3228_s11  ;;  %v2417_v17 = vsel %vm525_vm5, %v2416_v62, %v2415_v4  ;;  %v1950_v16 = vld [vmem:[%s3288_s24 + $0xe] sm:$0x1]  ;;  %v1951_v47 = vld [vmem:[%s3288_s24 + $0x26] sm:$0x1]  ;;  %v2276_v51 = vld [vmem:[%s3288_s24 + $0x59] sm:$0x1]  ;;  %v1516_v11 = vsel %vm229_vm2, %v1515_v40, %v1514_v46 }
 0x14d   : > { %v2131_v20 = vld [vmem:[%s3288_s24 + $0x9] sm:$0x1]  ;;  %v2283_v54 = vrot.slane %v2275_v26, 6  ;;  %v2133_v33 = vld [vmem:[%s3288_s24 + $0x39] sm:$0x1]  ;;  %v1958_v56 = vrot.slane %v1950_v16, 4  ;;  %v2282_v0 = vsel %vm226_vm1, %v2281_v31, %v2273_v44 }
 0x14e   : > { %2879 = vrot.lane.b32.xlu0 %v2878_v38, %s3237_s22  ;;  %v2038_v37 = vpop.permute.xlu1 %2037  ;;  %2735 = vrot.lane.b32.xlu2 %v2734_v27, %s3237_s22  ;;  %v1809_v38 = vrot.slane %v1800_v8, 2  ;;  %v2419_v27 = vsel %vm528_vm6, %v2418_v7, %v2417_v17  ;;  %v1952_v60 = vld [vmem:[%s3288_s24 + $0x3e] sm:$0x1]  ;;  %v1959_v62 = vrot.slane %v1951_v47, 3  ;;  %v2134_v3 = vld [vmem:[%s3288_s24 + $0x51] sm:$0x1] }
 0x14f   : > { %2040 = vst.msk [vmem:[#allocation2 + $0x30] sm:$0xf] %vm254_vm8, %v2038_v37  ;;  %v1658_v37 = vsel %vm226_vm1, %v1657_v57, %v1649_v1  ;;  %v1524_v61 = vld [vmem:[%s3288_s24 + $0x1f] sm:$0x1]  ;;  %v2141_v4 = vrot.slane %v2133_v33, 6  ;;  %v2285_v2 = vrot.slane %v2276_v51, 5  ;;  %v2284_v10 = vsel %vm229_vm2, %v2283_v54, %v2282_v0 }
 0x150   : > { %v2790_v45 = vpop.permute.xlu0 %2789  ;;  %v1719_v52 = vpop.permute.xlu2 %1718  ;;  %v1810_v42 = vsel %vm525_vm5, %v1809_v38, %v1808_v28  ;;  %v1660_v49 = vsel %vm229_vm2, %v1659_v6, %v1658_v37  ;;  %v1525_v29 = vld [vmem:[%s3288_s24 + $0x37] sm:$0x1]  ;;  %v1953_v7 = vld [vmem:[%s3288_s24 + $0x56] sm:$0x1]  ;;  %v1961_v8 = vrot.slane %v1952_v60, 2  ;;  %v2143_v59 = vrot.slane %v2134_v3, 5 }
 0x151   : > { %2792 = vst.msk [vmem:[#allocation2 + $0x48] sm:$0xf] %vm4747_vm10, %v2790_v45  ;;  %v2132_v45 = vld [vmem:[%s3288_s24 + $0x21] sm:$0x1]  ;;  %vm4752_vm10 = vcmask 519552   ;;  %v1812_v53 = vsel %vm528_vm6, %v1811_v36, %v1810_v42  ;;  %v1531_v14 = vrot.slane %v1524_v61, 7  ;;  %v1960_v18 = vsel %vm522_vm4, %v1959_v62, %v1958_v56 }
 0x152   : > { %1721 = vst.msk [vmem:[#allocation2 + $0x20] sm:$0xf0] %vm533_vm15, %v1719_v52  ;;  %v1517_v52 = vrot.slane %v1508_v39, 5  ;;  %v2139_v55 = vrot.slane %v2132_v45, 7  ;;  %v1523_v13 = vld [vmem:[%s3288_s24 + $0x7] sm:$0x1]  ;;  %v2286_v24 = vsel %vm232_vm3, %v2285_v2, %v2284_v10  ;;  %v1962_v32 = vsel %vm525_vm5, %v1961_v8, %v1960_v18 }
 0x153   : > { %v2577_v17 = vld [vmem:[%s3288_s24 + $0x29] sm:$0x1]  ;;  %v2425_v19 = vld [vmem:[%s3288_s24 + $0x21] sm:$0x1]  ;;  %v1526_v57 = vld [vmem:[%s3288_s24 + $0x4f] sm:$0x1]  ;;  %v1532_v37 = vsel %vm226_vm1, %v1531_v14, %v1523_v13 }
 0x154   : > { %2127 = vrot.lane.b32.xlu1 %v2126_v48, %s3223_s6  ;;  %v1518_v5 = vsel %vm232_vm3, %v1517_v52, %v1516_v11  ;;  %v2424_v1 = vld [vmem:[%s3288_s24 + $0x9] sm:$0x1]  ;;  %v2578_v23 = vld [vmem:[%s3288_s24 + $0x41] sm:$0x1]  ;;  %v1963_v38 = vrot.slane %v1953_v7, 1  ;;  %v2585_v28 = vrot.slane %v2577_v17, 3 }
 0x155   : > { %v2579_v25 = vld [vmem:[%s3288_s24 + $0x59] sm:$0x1]  ;;  %v2432_v6 = vrot.slane %v2424_v1, 4  ;;  %v2587_v39 = vrot.slane %v2578_v23, 2  ;;  %v1970_v42 = vld [vmem:[%s3288_s24 + $0x27] sm:$0x1] }
 0x156   : > { %1946 = vrot.lane.b32.xlu0 %v1945_v58, %s3234_s17  ;;  %v2478_v50 = vpop.permute.xlu1 %2477  ;;  %1794 = vrot.lane.b32.xlu2 %v1793_v63, %s3234_s17  ;;  %v1662_v63 = vsel %vm232_vm3, %v1661_v43, %v1660_v49  ;;  %v2426_v34 = vld [vmem:[%s3288_s24 + $0x39] sm:$0x1]  ;;  %v1964_v40 = vsel %vm528_vm6, %v1963_v38, %v1962_v32  ;;  %v1535_v43 = vrot.slane %v1526_v57, 5  ;;  %v2589_v26 = vrot.slane %v2579_v25, 1  ;;  %v2427_v31 = vld [vmem:[%s3288_s24 + $0x51] sm:$0x1] }
 0x157   : > { %2480 = vst.msk [vmem:[#allocation2 + $0x38] sm:$0xf0] %vm553_vm0, %v2478_v50  ;;  %v2140_v50 = vsel %vm226_vm1, %v2139_v55, %v2131_v20  ;;  %v2435_v45 = vrot.slane %v2426_v34, 2  ;;  %v1971_v47 = vld [vmem:[%s3288_s24 + $0x3f] sm:$0x1]  ;;  %v1978_v52 = vrot.slane %v1970_v42, 3 }
 0x158   : > { %v2326_v15 = vpop.permute.xlu0 %2325  ;;  %v2198_v22 = vpop.permute.xlu2 %2197  ;;  %v2142_v12 = vsel %vm229_vm2, %v2141_v4, %v2140_v50  ;;  %v1818_v49 = vld [vmem:[%s3288_s24 + $0x1f] sm:$0x1]  ;;  %v1972_v55 = vld [vmem:[%s3288_s24 + $0x57] sm:$0x1]  ;;  %v1980_v3 = vrot.slane %v1971_v47, 2 }
 0x159   : > { %2328 = vst.msk [vmem:[#allocation2 + $0x30] sm:$0xf0] %vm553_vm0, %v2326_v15  ;;  %v2576_v15 = vld [vmem:[%s3288_s24 + $0x11] sm:$0x1]  ;;  %v2144_v36 = vsel %vm232_vm3, %v2143_v59, %v2142_v12  ;;  %v1819_v60 = vld [vmem:[%s3288_s24 + $0x37] sm:$0x1] }
 0x15a   : > { %2200 = vst.msk [vmem:[#allocation2 + $0x38] sm:$0xf] %vm4750_vm9, %v2198_v22  ;;  %vm4753_vm9 = vcmask 650752   ;;  %v1533_v22 = vrot.slane %v1525_v29, 6  ;;  %v1826_v62 = vrot.slane %v1818_v49, 3  ;;  %v1828_v7 = vrot.slane %v1819_v60, 2 }
 0x15b   : > { %v1669_v61 = vld [vmem:[%s3288_s24 + $0x3f] sm:$0x1]  ;;  %v1820_v50 = vld [vmem:[%s3288_s24 + $0x4f] sm:$0x1]  ;;  %v1837_v10 = vld [vmem:[%s3288_s24 + $0x20] sm:$0x1] }
 0x15c   : > { %2572 = vrot.lane.b32.xlu1 %v2571_v21, %s3231_s14  ;;  %v1534_v16 = vsel %vm229_vm2, %v1533_v22, %v1532_v37  ;;  %v1667_v29 = vld [vmem:[%s3288_s24 + $0xf] sm:$0x1]  ;;  %v1982_v59 = vrot.slane %v1972_v55, 1  ;;  %v1670_v14 = vld [vmem:[%s3288_s24 + $0x57] sm:$0x1]  ;;  %v1830_v1 = vrot.slane %v1820_v50, 1 }
 0x15d   : > { %v1536_v11 = vsel %vm232_vm3, %v1535_v43, %v1534_v16  ;;  %v1845_v22 = vrot.slane %v1837_v10, 3  ;;  %v1542_v23 = vld [vmem:[%s3288_s24 + $0x20] sm:$0x1]  ;;  %v1839_v25 = vld [vmem:[%s3288_s24 + $0x50] sm:$0x1] }
 0x15e   : > { %2420 = vrot.lane.b32.xlu0 %v2419_v27, %s3231_s14  ;;  %v1574_v41 = vpop.permute.xlu1 %1573  ;;  %2269 = vrot.lane.b32.xlu2 %v2268_v35, %s3223_s6  ;;  %v2584_v27 = vrot.slane %v2576_v15, 4  ;;  %v2433_v35 = vrot.slane %v2425_v19, 3  ;;  %v1677_v15 = vrot.slane %v1669_v61, 6  ;;  %v1838_v19 = vld [vmem:[%s3288_s24 + $0x38] sm:$0x1] }
 0x15f   : > { %1576 = vst.msk [vmem:[#allocation2 + $0x28] sm:$0xf] %vm4751_vm7, %v1574_v41  ;;  %vm4754_vm7 = vcmask 388352   ;;  %v1969_v41 = vld [vmem:[%s3288_s24 + $0xf] sm:$0x1] }
 0x160   : > { %v2808_v48 = vpop.permute.xlu0 %2807  ;;  %v2682_v58 = vpop.permute.xlu2 %2681  ;;  %v2586_v44 = vsel %vm522_vm4, %v2585_v28, %v2584_v27  ;;  %v2434_v51 = vsel %vm522_vm4, %v2433_v35, %v2432_v6  ;;  %v1977_v20 = vrot.slane %v1969_v41, 4  ;;  %v1685_v27 = vld [vmem:[%s3288_s24 + $0x10] sm:$0x1]  ;;  %v1679_v28 = vrot.slane %v1670_v14, 5  ;;  %v1687_v32 = vld [vmem:[%s3288_s24 + $0x40] sm:$0x1] }
 0x161   : > { %2810 = vst.msk [vmem:[#allocation2 + $0x48] sm:$0xf] %vm4752_vm10, %v2808_v48  ;;  %v1817_v48 = vld [vmem:[%s3288_s24 + $0x7] sm:$0x1]  ;;  %v2588_v33 = vsel %vm525_vm5, %v2587_v39, %v2586_v44  ;;  %v2436_v0 = vsel %vm525_vm5, %v2435_v45, %v2434_v51  ;;  %v1543_v37 = vld [vmem:[%s3288_s24 + $0x38] sm:$0x1] }
 0x162   : > { %2684 = vst.msk [vmem:[#allocation2 + $0x40] sm:$0xf] %vm4753_vm9, %v2682_v58  ;;  %v2437_v58 = vrot.slane %v2427_v31, 1  ;;  %v1825_v56 = vrot.slane %v1817_v48, 4  ;;  %v1979_v2 = vsel %vm522_vm4, %v1978_v52, %v1977_v20  ;;  %v1549_v39 = vrot.slane %v1542_v23, 7 }
 0x163   : > { %v1981_v18 = vsel %vm525_vm5, %v1980_v3, %v1979_v2  ;;  %v1688_v42 = vld [vmem:[%s3288_s24 + $0x58] sm:$0x1]  ;;  %v1541_v43 = vld [vmem:[%s3288_s24 + $0x8] sm:$0x1]  ;;  %v1695_v44 = vrot.slane %v1687_v32, 6  ;;  %v1849_v31 = vrot.slane %v1839_v25, 1 }
 0x164   : > { %1813 = vrot.lane.b32.xlu1 %v1812_v53, %s3239_s13  ;;  %v1668_v53 = vld [vmem:[%s3288_s24 + $0x27] sm:$0x1]  ;;  %v2438_v8 = vsel %vm528_vm6, %v2437_v58, %v2436_v0  ;;  %v1827_v13 = vsel %vm522_vm4, %v1826_v62, %v1825_v56  ;;  %v1551_v16 = vrot.slane %v1543_v37, 6  ;;  %v1697_v49 = vrot.slane %v1688_v42, 5  ;;  %v1988_v20 = vld [vmem:[%s3288_s24 + $0x10] sm:$0x1] }
 0x165   : > { %v1675_v4 = vrot.slane %v1668_v53, 7  ;;  %v1550_v51 = vsel %vm226_vm1, %v1549_v39, %v1541_v43  ;;  %v1989_v52 = vld [vmem:[%s3288_s24 + $0x28] sm:$0x1]  ;;  %v1990_v60 = vld [vmem:[%s3288_s24 + $0x40] sm:$0x1]  ;;  %v1996_v56 = vrot.slane %v1988_v20, 4 }
 0x166   : > { %1663 = vrot.lane.b32.xlu0 %v1662_v63, %s3227_s10  ;;  %v2056_v9 = vpop.permute.xlu1 %2055  ;;  %1519 = vrot.lane.b32.xlu2 %v1518_v5, %s3227_s10  ;;  %v2590_v5 = vsel %vm528_vm6, %v2589_v26, %v2588_v33  ;;  %v1997_v62 = vrot.slane %v1989_v52, 3  ;;  %v1991_v3 = vld [vmem:[%s3288_s24 + $0x58] sm:$0x1]  ;;  %v1999_v61 = vrot.slane %v1990_v60, 2  ;;  %v2885_v60 = vld [vmem:[#allocation2 + $0x8] sm:$0xff] }
 0x167   : > { %2058 = vst.msk [vmem:[#allocation2 + $0x30] sm:$0xf] %vm4754_vm7, %v2056_v9  ;;  %v1836_v9 = vld [vmem:[%s3288_s24 + $0x8] sm:$0x1]  ;;  %v1676_v12 = vsel %vm226_vm1, %v1675_v4, %v1667_v29  ;;  %v2001_v50 = vrot.slane %v1991_v3, 1 }
 0x168   : > { %v1871_v21 = vpop.permute.xlu0 %1870  ;;  %v1738_v30 = vpop.permute.xlu2 %1737  ;;  %v1844_v57 = vrot.slane %v1836_v9, 4  ;;  %v1678_v35 = vsel %vm229_vm2, %v1677_v15, %v1676_v12 }
 0x169   : > { %1873 = vst.msk [vmem:[#allocation2 + $0x28] sm:$0xf0] %vm533_vm15, %v1871_v21  ;;  %vm4755_vm15 = vmmov %vm4752_vm10  ;;  %v1686_v21 = vld [vmem:[%s3288_s24 + $0x28] sm:$0x1]  ;;  %v1680_v26 = vsel %vm232_vm3, %v1679_v28, %v1678_v35 }
 0x16a   : > { %1740 = vst.msk [vmem:[#allocation2 + $0x20] sm:$0xf0] %vm553_vm0, %v1738_v30  ;;  %vm4757_vm10 = vmmov %vm4753_vm9  ;;  %v1983_v30 = vsel %vm528_vm6, %v1982_v59, %v1981_v18  ;;  %v1693_v34 = vrot.slane %v1686_v21, 7  ;;  %v1846_v41 = vsel %vm522_vm4, %v1845_v22, %v1844_v57 }
 0x16b   : > { %vm4759_vm9 = vmmov %vm4755_vm15 }
 0x16c   : > { %2287 = vrot.lane.b32.xlu1 %v2286_v24, %s3222_s30  ;;  %v1829_v24 = vsel %vm525_vm5, %v1828_v7, %v1827_v13  ;;  %v1694_v45 = vsel %vm226_vm1, %v1693_v34, %v1685_v27  ;;  %vm4760_vm1 = vmmov %vm4757_vm10 }
 0x16e   : > { %2145 = vrot.lane.b32.xlu0 %v2144_v36, %s3222_s30  ;;  %v2497_v46 = vpop.permute.xlu1 %2496  ;;  %1965 = vrot.lane.b32.xlu2 %v1964_v40, %s3239_s13  ;;  %v1847_v36 = vrot.slane %v1838_v19, 2  ;;  %v1831_v40 = vsel %vm528_vm6, %v1830_v1, %v1829_v24 }
 0x16f   : > { %2499 = vst.msk [vmem:[#allocation2 + $0x38] sm:$0xf0] %vm573_vm14, %v2497_v46  ;;  %v1544_v46 = vld [vmem:[%s3288_s24 + $0x50] sm:$0x1] }
 0x170   : > { %v2345_v54 = vpop.permute.xlu0 %2344  ;;  %v2216_v63 = vpop.permute.xlu2 %2215  ;;  %v1848_v48 = vsel %vm525_vm5, %v1847_v36, %v1846_v41  ;;  %v1553_v33 = vrot.slane %v1544_v46, 5 }
 0x171   : > { %2347 = vst.msk [vmem:[#allocation2 + $0x30] sm:$0xf0] %vm573_vm14, %v2345_v54  ;;  %v1696_v54 = vsel %vm229_vm2, %v1695_v44, %v1694_v45  ;;  %v1850_v55 = vsel %vm528_vm6, %v1849_v31, %v1848_v48 }
 0x172   : > { %2218 = vst.msk [vmem:[#allocation2 + $0x38] sm:$0xf] %vm4755_vm15, %v2216_v63  ;;  %v1698_v63 = vsel %vm232_vm3, %v1697_v49, %v1696_v54 }
 0x174   : > { %1537 = vrot.lane.b32.xlu1 %v1536_v11, %s3231_s14  ;;  %v1552_v11 = vsel %vm229_vm2, %v1551_v16, %v1550_v51  ;;  %vm4761_vm2 = vmmov %vm4754_vm7 }
 0x175   : > { %v1554_v0 = vsel %vm232_vm3, %v1553_v33, %v1552_v11  ;;  %v2886_v33 = vld [vmem:[#allocation2 + $0x10] sm:$0xff]  ;;  %v2884_v11 = vld [vmem:[#allocation2] sm:$0xff] }
 0x176   : > { %2591 = vrot.lane.b32.xlu0 %v2590_v5, %s4756_s25  ;;  %v1592_v17 = vpop.permute.xlu1 %1591  ;;  %2439 = vrot.lane.b32.xlu2 %v2438_v8, %s4756_s25  ;;  %v1998_v5 = vsel %vm522_vm4, %v1997_v62, %v1996_v56  ;;  %vm4763_vm4 = vcmask 913152  }
 0x177   : > { %1594 = vst.msk [vmem:[#allocation2 + $0x28] sm:$0xf] %vm254_vm8, %v1592_v17  ;;  %vm4758_vm8 = vcmask 781952   ;;  %v2000_v7 = vsel %vm525_vm5, %v1999_v61, %v1998_v5  ;;  %vm4767_vm7 = vmmov %vm4763_vm4 }
 0x178   : > { %v2826_v38 = vpop.permute.xlu0 %2825  ;;  %v2700_v6 = vpop.permute.xlu2 %2699  ;;  %v2002_v8 = vsel %vm528_vm6, %v2001_v50, %v2000_v7  ;;  %vm4762_vm3 = vmmov %vm4758_vm8 }
 0x179   : > { %2828 = vst.msk [vmem:[#allocation2 + $0x48] sm:$0xf] %vm4757_vm10, %v2826_v38  ;;  %vm4765_vm5 = vmmov %vm4762_vm3  ;;  %vm2898_vm10 = vcmask 1043456  }
 0x17a   : > { %2702 = vst.msk [vmem:[#allocation2 + $0x40] sm:$0xf] %vm4758_vm8, %v2700_v6  ;;  %vm4766_vm6 = vmmov %vm4759_vm9 }
 0x17b   : > { %vm4769_vm15 = vmmov %vm4762_vm3 }
 0x17c   : > { %1984 = vrot.lane.b32.xlu1 %v1983_v30, %s3238_s23  ;;  %vm4770_vm8 = vmmov %vm4763_vm4 }
 0x17e   : > { %1832 = vrot.lane.b32.xlu0 %v1831_v40, %s3238_s23  ;;  %v2074_v47 = vpop.permute.xlu1 %2073  ;;  %1681 = vrot.lane.b32.xlu2 %v1680_v26, %s3231_s14 }
 0x17f   : > { %2076 = vst.msk [vmem:[#allocation2 + $0x30] sm:$0xf] %vm4759_vm9, %v2074_v47 }
 0x180   : > { %v1890_v53 = vpop.permute.xlu0 %1889  ;;  %v1757_v58 = vpop.permute.xlu2 %1756 }
 0x181   : > { %1892 = vst.msk [vmem:[#allocation2 + $0x28] sm:$0xf0] %vm553_vm0, %v1890_v53  ;;  %vm4764_vm0 = vmmov %vm4760_vm1 }
 0x182   : > { %1759 = vst.msk [vmem:[#allocation2 + $0x20] sm:$0xf0] %vm573_vm14, %v1757_v58  ;;  %vm4771_vm9 = vmmov %vm4764_vm0  ;;  %v2887_v58 = vld [vmem:[#allocation2 + $0x18] sm:$0xff] }
 0x184   : > { %1851 = vrot.lane.b32.xlu1 %v1850_v55, %s3237_s22  ;;  %v2883_v55 = vld [vmem:[%s4709_s1] sm:$0x3] }
 0x186   : > { %1699 = vrot.lane.b32.xlu0 %v1698_v63, %s4756_s25  ;;  %v2516_v4 = vpop.permute.xlu1 %2515  ;;  %1555 = vrot.lane.b32.xlu2 %v1554_v0, %s4756_s25 }
 0x187   : > { %2518 = vst.msk [vmem:[#allocation2 + $0x38] sm:$0xf0] %vm593_vm13, %v2516_v4 }
 0x188   : > { %v2364_v2 = vpop.permute.xlu0 %2363  ;;  %v2234_v29 = vpop.permute.xlu2 %2233 }
 0x189   : > { %2366 = vst.msk [vmem:[#allocation2 + $0x30] sm:$0xf0] %vm593_vm13, %v2364_v2 }
 0x18a   : > { %2236 = vst.msk [vmem:[#allocation2 + $0x38] sm:$0xf] %vm4760_vm1, %v2234_v29  ;;  %vm4773_vm1 = vmmov %vm4762_vm3  ;;  %v2945_v29 = vld [vmem:[#allocation3] sm:$0x3] }
 0x18e   : > { %v1610_v9 = vpop.permute.xlu1 %1609  ;;  %2003 = vrot.lane.b32.xlu2 %v2002_v8, %s3237_s22  ;;  %v2955_v8 = vld [vmem:[#allocation4] sm:$0x3] }
 0x18f   : > { %1612 = vst.msk [vmem:[#allocation2 + $0x28] sm:$0xf] %vm4761_vm2, %v1610_v9  ;;  %vm4774_vm2 = vmmov %vm4763_vm4 }
 0x190   : > { %v2844_v10 = vpop.permute.xlu0 %2843  ;;  %v2718_v59 = vpop.permute.xlu2 %2717 }
 0x191   : > { %2846 = vst.msk [vmem:[#allocation2 + $0x48] sm:$0xf] %vm4762_vm3, %v2844_v10  ;;  %vm4775_vm3 = vcmask 917252  }
 0x192   : > { %2720 = vst.msk [vmem:[#allocation2 + $0x40] sm:$0xf] %vm4763_vm4, %v2718_v59  ;;  %vm4776_vm4 = vmmov %vm4775_vm3 }
 0x196   : > { %v2092_v13 = vpop.permute.xlu1 %2091 }
 0x197   : > { %2094 = vst.msk [vmem:[#allocation2 + $0x30] sm:$0xf] %vm4764_vm0, %v2092_v13  ;;  %vm4777_vm0 = vcmask 1048452  }
 0x198   : > { %v1909_v14 = vpop.permute.xlu0 %1908  ;;  %v1776_v15 = vpop.permute.xlu2 %1775 }
 0x199   : > { %1911 = vst.msk [vmem:[#allocation2 + $0x28] sm:$0xf0] %vm573_vm14, %v1909_v14  ;;  %vm4768_vm14 = vcmask 1044352  }
 0x19a   : > { %1778 = vst.msk [vmem:[#allocation2 + $0x20] sm:$0xf0] %vm593_vm13, %v1776_v15 }
 0x19e   : > { %v2535_v17 = vpop.permute.xlu1 %2534 }
 0x19f   : > { %2537 = vst.msk [vmem:[#allocation2 + $0x38] sm:$0xf0] %vm613_vm12, %v2535_v17 }
 0x1a0   : > { %v2383_v18 = vpop.permute.xlu0 %2382  ;;  %v2252_v1 = vpop.permute.xlu2 %2251 }
 0x1a1   : > { %2385 = vst.msk [vmem:[#allocation2 + $0x30] sm:$0xf0] %vm613_vm12, %v2383_v18 }
 0x1a2   : > { %2254 = vst.msk [vmem:[#allocation2 + $0x38] sm:$0xf] %vm4765_vm5, %v2252_v1  ;;  %vm4778_vm5 = vmmov %vm4773_vm1 }
 0x1a6   : > { %v1628_v19 = vpop.permute.xlu1 %1627 }
 0x1a7   : > { %1630 = vst.msk [vmem:[#allocation2 + $0x28] sm:$0xf] %vm4766_vm6, %v1628_v19 }
 0x1a8   : > { %v2862_v21 = vpop.permute.xlu0 %2861  ;;  %v2736_v12 = vpop.permute.xlu2 %2735 }
 0x1a9   : > { %2864 = vst.msk [vmem:[#allocation2 + $0x48] sm:$0xf] %vm4767_vm7, %v2862_v21 }
 0x1aa   : > { %2738 = vst.msk [vmem:[#allocation2 + $0x40] sm:$0xf] %vm4768_vm14, %v2736_v12 }
 0x1ae   : > { %v2110_v57 = vpop.permute.xlu1 %2109 }
 0x1af   : > { %2112 = vst.msk [vmem:[#allocation2 + $0x30] sm:$0xf] %vm4769_vm15, %v2110_v57 }
 0x1b0   : > { %v1928_v22 = vpop.permute.xlu0 %1927  ;;  %v1795_v23 = vpop.permute.xlu2 %1794 }
 0x1b1   : > { %1930 = vst.msk [vmem:[#allocation2 + $0x28] sm:$0xf0] %vm593_vm13, %v1928_v22  ;;  %v2892_v38 = vld [vmem:[#allocation2 + $0x40] sm:$0xf]  ;;  %vm4772_vm13 = vmmov %vm4768_vm14 }
 0x1b2   : > { %1797 = vst.msk [vmem:[#allocation2 + $0x20] sm:$0xf0] %vm613_vm12, %v1795_v23  ;;  %3082 = vmatpush.msk.msra.mxu0 %vm2898_vm10, %v2892_v38  ;;  %vm4780_vm6 = vmmov %vm4772_vm13 }
 0x1b3   : > { %vm4781_vm7 = vmmov %vm4780_vm6 }
 0x1b4   : > { %vm4782_vm14 = vmmov %vm4774_vm2 }
 0x1b5   : > { %vm4783_vm15 = vmmov %vm4780_vm6 }
 0x1b6   : > { %v2554_v24 = vpop.permute.xlu1 %2553 }
 0x1b7   : > { %2556 = vst.msk [vmem:[#allocation2 + $0x38] sm:$0xf0] %vm633_vm11, %v2554_v24 }
 0x1b8   : > { %v2402_v25 = vpop.permute.xlu0 %2401  ;;  %v2270_v27 = vpop.permute.xlu2 %2269 }
 0x1b9   : > { %2404 = vst.msk [vmem:[#allocation2 + $0x30] sm:$0xf0] %vm633_vm11, %v2402_v25 }
 0x1ba   : > { %2272 = vst.msk [vmem:[#allocation2 + $0x38] sm:$0xf] %vm4770_vm8, %v2270_v27  ;;  %vm4786_vm8 = vmmov %vm4777_vm0 }
 0x1be   : > { %v1646_v28 = vpop.permute.xlu1 %1645 }
 0x1bf   : > { %1648 = vst.msk [vmem:[#allocation2 + $0x28] sm:$0xf] %vm4771_vm9, %v1646_v28  ;;  %vm4787_vm9 = vmmov %vm4775_vm3 }
 0x1c0   : > { %v2880_v30 = vpop.permute.xlu0 %2879  ;;  %v1520_v32 = vpop.permute.xlu2 %1519 }
 0x1c1   : > { %2882 = vst.msk [vmem:[#allocation2 + $0x48] sm:$0xf] %vm4772_vm13, %v2880_v30  ;;  %vm4788_vm13 = vmmov %vm4777_vm0 }
 0x1c2   : > { %1522 = vst.msk [vmem:[#allocation2 + $0x20] sm:$0xf] %vm4773_vm1, %v1520_v32  ;;  %vm4789_vm1 = vmmov %vm4780_vm6 }
 0x1c6   : > { %v2128_v34 = vpop.permute.xlu1 %2127 }
 0x1c7   : > { %2130 = vst.msk [vmem:[#allocation2 + $0x30] sm:$0xf] %vm4774_vm2, %v2128_v34 }
 0x1c8   : > { %v1947_v6 = vpop.permute.xlu0 %1946  ;;  %v2893_v35 = vld [vmem:[#allocation2 + $0x48] sm:$0xf]  ;;  %v1966_v36 = vpop.permute.xlu2 %1965 }
 0x1c9   : > { %1949 = vst.msk [vmem:[#allocation2 + $0x28] sm:$0xf0] %vm613_vm12, %v1947_v6  ;;  %3084 = vmatpush.msk.msra.mxu1 %vm2898_vm10, %v2893_v35  ;;  %vm4779_vm12 = vmmov %vm4774_vm2  ;;  %vm2894_vm2 = vcmask 293888  }
 0x1ca   : > { %1968 = vst.msk [vmem:[#allocation2 + $0x28] sm:$0xf0] %vm633_vm11, %v1966_v36  ;;  %vm4785_vm10 = vmmov %vm4775_vm3 }
 0x1ce   : > { %v2573_v37 = vpop.permute.xlu1 %2572 }
 0x1cf   : > { %2575 = vst.msk [vmem:[#allocation2 + $0x38] sm:$0xf0] %vm4775_vm3, %v2573_v37  ;;  %vm2946_vm3 = vcmask 1041408  }
 0x1d0   : > { %v2421_v39 = vpop.permute.xlu0 %2420  ;;  %v2440_v40 = vpop.permute.xlu2 %2439 }
 0x1d1   : > { %2423 = vst.msk [vmem:[#allocation2 + $0x30] sm:$0xf0] %vm4776_vm4, %v2421_v39  ;;  %vm2953_vm4 = vcmask 1024  }
 0x1d2   : > { %2442 = vst.msk [vmem:[#allocation2 + $0x30] sm:$0xf0] %vm4777_vm0, %v2440_v40 }
 0x1d6   : > { %v1814_v41 = vpop.permute.xlu1 %1813 }
 0x1d7   : > { %1816 = vst.msk [vmem:[#allocation2 + $0x20] sm:$0xf0] %vm633_vm11, %v1814_v41  ;;  %vm4784_vm11 = vmmov %vm4777_vm0 }
 0x1d8   : > { %v1664_v42 = vpop.permute.xlu0 %1663  ;;  %v1682_v43 = vpop.permute.xlu2 %1681 }
 0x1d9   : > { %1666 = vst.msk [vmem:[#allocation2 + $0x28] sm:$0xf] %vm4778_vm5, %v1664_v42 }
 0x1da   : > { %1684 = vst.msk [vmem:[#allocation2 + $0x28] sm:$0xf] %vm4779_vm12, %v1682_v43 }
 0x1de   : > { %v2288_v44 = vpop.permute.xlu1 %2287 }
 0x1df   : > { %2290 = vst.msk [vmem:[#allocation2 + $0x38] sm:$0xf] %vm4780_vm6, %v2288_v44 }
 0x1e0   : > { %v2146_v26 = vpop.permute.xlu0 %2145  ;;  %v1556_v31 = vpop.permute.xlu2 %1555 }
 0x1e1   : > { %2148 = vst.msk [vmem:[#allocation2 + $0x30] sm:$0xf] %vm4781_vm7, %v2146_v26 }
 0x1e6   : > { %v1538_v45 = vpop.permute.xlu1 %1537 }
 0x1e7   : > { %1540 = vst.msk [vmem:[#allocation2 + $0x20] sm:$0xf] %vm4782_vm14, %v1538_v45 }
 0x1e8   : > { %v2592_v46 = vpop.permute.xlu0 %2591  ;;  %v2890_v16 = vld [vmem:[#allocation2 + $0x30] sm:$0xff]  ;;  %1558 = vst.msk [vmem:[#allocation2 + $0x20] sm:$0xf] %vm4783_vm15, %v1556_v31  ;;  %v2004_v47 = vpop.permute.xlu2 %2003 }
 0x1e9   : > { %2594 = vst.msk [vmem:[#allocation2 + $0x38] sm:$0xf0] %vm4784_vm11, %v2592_v46  ;;  %2917 = vmatpush.msra.mxu0 %v2890_v16 }
 0x1ee   : > { %v1985_v48 = vpop.permute.xlu1 %1984 }
 0x1ef   : > { %1987 = vst.msk [vmem:[#allocation2 + $0x28] sm:$0xf0] %vm4785_vm10, %v1985_v48 }
 0x1f0   : > { %v1833_v49 = vpop.permute.xlu0 %1832  ;;  %v2891_v51 = vld [vmem:[#allocation2 + $0x38] sm:$0xff]  ;;  %2006 = vst.msk [vmem:[#allocation2 + $0x28] sm:$0xf0] %vm4786_vm8, %v2004_v47 }
 0x1f1   : > { %1835 = vst.msk [vmem:[#allocation2 + $0x20] sm:$0xf0] %vm4787_vm9, %v1833_v49  ;;  %2937 = vmatpush.msra.mxu1 %v2891_v51 }
 0x1f6   : > { %v1852_v20 = vpop.permute.xlu1 %1851 }
 0x1f7   : > { %1854 = vst.msk [vmem:[#allocation2 + $0x20] sm:$0xf0] %vm4788_vm13, %v1852_v20 }
 0x1f8   : > { %v1700_v52 = vpop.permute.xlu0 %1699 }
 0x1f9   : > { %1702 = vst.msk [vmem:[#allocation2 + $0x28] sm:$0xf] %vm4789_vm1, %v1700_v52 }
 0x1fe   : > { %v2888_v53 = vld [vmem:[#allocation2 + $0x20] sm:$0xff] }
 0x1ff   : > { %2918 = vmatpush.msra.mxu0 %v2888_v53 }
 0x200   : > { %v2889_v54 = vld [vmem:[#allocation2 + $0x28] sm:$0xff] }
 0x201   : > { %2938 = vmatpush.msra.mxu1 %v2889_v54  ;;  %2919 = vmatpush.msra.mxu0 %v2886_v33 }
 0x203   : > { %2939 = vmatpush.msra.mxu1 %v2887_v58  ;;  %2920 = vmatpush.msra.mxu0 %v2884_v11 }
 0x204   : > { %3083 = vmatmul.msk.f32.vlgmr.msra.gmra.mxu0 %vm2894_vm2, %v2883_v55 }
 0x205   : > { %2940 = vmatpush.msra.mxu1 %v2885_v60 }
 0x206   : > { %3085 = vmatmul.msk.f32.vlgmr.msra.gmra.mxu1 %vm2894_vm2, %v2883_v55 }
 0x281   : > { %v2922_v56 = vpop.f32.mrf.mxu0 }
 0x282   : > { %v2947_v62 = vsel %vm2946_vm3, %v2922_v56, 0.0  ;;  %v2956_v63 = vmul.f32 %v2922_v56, %v2922_v56 }
 0x283   : > { %v2942_v0 = vpop.f32.mrf.mxu1 }
 0x284   : > { %v2948_v3 = vsel %vm2946_vm3, %v2942_v0, 0.0  ;;  %v2957_v61 = vmul.f32 %v2942_v0, %v2942_v0  ;;  %v2958_v4 = vsel %vm2946_vm3, %v2956_v63, 0.0 }
 0x285   : > { %v2949_v5 = vadd.f32 %v2948_v3, %v2947_v62 }
 0x286   : > { %v2959_v2 = vsel %vm2946_vm3, %v2957_v61, 0.0 }
 0x287   : > { %2950 = vadd.xlane.f32.xlu0 %v2949_v5  ;;  %v2960_v50 = vadd.f32 %v2959_v2, %v2958_v4 }
 0x289   : > { %2961 = vadd.xlane.f32.xlu1 %v2960_v50 }
 0x2fa   : > { %v2951_v7 = vpop.xlane.xlu0 %2950 }
 0x2fb   : > { %v2952_v9 = vadd.f32 %v2951_v7, %v2945_v29  ;;  %2968 = sbr.rel (%p3086_p5) target bundleno = 927 (0x39f), region = 44 }
 0x2fc   : > { %v2962_v10 = vpop.xlane.xlu1 %2961 }
 0x2fd   : > { %2954 = vst.msk [vmem:[#allocation3] sm:$0x3] %vm2953_vm4, %v2952_v9  ;;  %v2963_v59 = vadd.f32 %v2962_v10, %v2955_v8 }
 0x2ff   : > { %2964 = vst.msk [vmem:[#allocation4] sm:$0x3] %vm2953_vm4, %v2963_v59 }
 0x300   : > { %v3240_v15 = vmov 0   ;;  %v2986_v27 = vld [vmem:[%s4710_s2] sm:$0x3]  ;;  %vm3001_vm6 = vcmask 25600  }
 0x301   : > { %3141 = vset.pattern.permute.xlu0 %v3240_v15  ;;  %v2993_v32 = vld [vmem:[%s4711_s3] sm:$0x3] }
 0x304   : > { %v2969_v13 = vld [vmem:[#allocation3] sm:$0x3] }
 0x305   : > { %v2970_v17 = vmul.f32 0.001953125, %v2969_v13 }
 0x306   : > { %v2971_v14 = vld [vmem:[#allocation4] sm:$0x3] }
 0x307   : > { %v2972_v18 = vmul.f32 0.001953125, %v2971_v14  ;;  %v2973_v1 = vmul.f32 %v2970_v17, %v2970_v17 }
 0x309   : > { %v2974_v19 = vsub.f32 %v2972_v18, %v2973_v1 }
 0x30b   : > { %v2975_v21 = vadd.f32 1e-05, %v2974_v19 }
 0x30d   : > { %3142 = vrsqrt.f32 %v2975_v21  ;;  %vm2982_vm0 = vweird.f32 %v2975_v21 }
 0x313   : > { %v3143_v12 = vpop.eup %3142 }
 0x314   : > { %v2977_v57 = vmul.f32 %v3143_v12, %v2975_v21  ;;  %vm2983_vm5 = vweird.f32 %v3143_v12 }
 0x315   : > { %vm2984_vm12 = vmor %vm2982_vm0, %vm2983_vm5 }
 0x316   : > { %v2978_v22 = vmul.f32 %v3143_v12, %v2977_v57 }
 0x318   : > { %v2979_v23 = vmul.f32 0.5, %v2978_v22 }
 0x31a   : > { %v2980_v38 = vsub.f32 1.5, %v2979_v23 }
 0x31c   : > { %v2981_v24 = vmul.f32 %v3143_v12, %v2980_v38 }
 0x31e   : > { %v2985_v25 = vsel %vm2984_vm12, %v3143_v12, %v2981_v24 }
 0x31f   : > { %2989 = vperm.xlu0 %3141, %v2985_v25  }
 0x327   : > { %2996 = vperm.xlu0 %3141, %v2970_v17  }
 0x391   : > { %v2990_v28 = vpop.permute.xlu0 %2989 }
 0x392   : > { %v2992_v30 = vmul.f32 %v2990_v28, %v2986_v27 }
 0x394   : > { %3002 = vst.msk [vmem:[#allocation5] sm:$0x3] %vm3001_vm6, %v2992_v30 }
 0x399   : > { %v2997_v34 = vpop.permute.xlu0 %2996 }
 0x39a   : > { %v2999_v6 = vmul.f32 %v2997_v34, %v2992_v30 }
 0x39c   : > { %v3000_v35 = vsub.f32 %v2993_v32, %v2999_v6 }
 0x39e   : > { %3003 = vst.msk [vmem:[#allocation7] sm:$0x3] %vm3001_vm6, %v3000_v35 }
 0x39f PF: > { %p3102_p6 = scmp.eq.s32.totalorder %s3279_s19, 1  ;;  %s3241_s6 = smov [#allocation5]  }
 0x3a0   : > { %s3010_s7 = sshll.u32 %s3241_s6, 4  ;;  %s3012_s10 = sshll.u32 %s4712_s4, 4  ;;  %s3011_s7 = int_to_ptr.vmem [resolvable:$true] %s3010_s7  ;;  %s3013_s10 = int_to_ptr.hbm [resolvable:$true] %s3012_s10 }
 0x3a1   : > { %3095 = dma.vmem_to_hbm [thread:$0]  (%p3102_p6), %s3011_s7, 32, %s3013_s10, [#allocation6]  }
 0x3a2   : > { %s3024_s13 = sshll.u32 %s4713_s5, 4  ;;  %s3242_s14 = smov [#allocation7]   ;;  %s3025_s13 = int_to_ptr.hbm [resolvable:$true] %s3024_s13 }
 0x3a3   : > { %s3022_s15 = sshll.u32 %s3242_s14, 4  ;;  %s3023_s15 = int_to_ptr.vmem [resolvable:$true] %s3022_s15 }
 0x3a4   : > { %3097 = dma.vmem_to_hbm [thread:$0]  (%p3102_p6), %s3023_s15, 32, %s3025_s13, [#allocation8]  }
 0x3a5   : > { %3205 = dma.done.wait (%p3102_p6), [#allocation6], 32  }
 0x3a6   : > { %3207 = vsyncadd (%p3102_p6), [#allocation6], 4294967264 }
 0x3a7   : > { %3209 = dma.done.wait (%p3102_p6), [#allocation8], 32  }
 0x3a8   : > { %3211 = vsyncadd (%p3102_p6), [#allocation8], 4294967264 }
 0x3a9 PF: > { %s18_s18 = sadd.s32 1, %s3214_s18  }
 0x3aa   : > { %p15_p7 = scmp.ge.s32.totalorder %s18_s18, 4  }
 0x3ac   :  { %17 = sbr.rel (!%p15_p7) target bundleno = 2 (0x2), region = 79 }
 0x3b1   :  { %3043 = vsyncpa [#allocation6], 1 }
 0x3b2   :  { %3045 = vsyncpa [#allocation6 + $0x1], 1 }
 0x3b3   :  { %3046 = vsyncpa [#allocation8], 1 }

</bundles_post_ra>
